<compile_context>
chip_gen: v6e
topology: v6e:2x2x1
jax: 0.10.0
libtpu: 0.0.40
codegen_flags: <defaults>
</compile_context>

<pallas_src>
import jax
import jax.numpy as jnp
from jax.experimental import pallas as pl
from jax.experimental.pallas import tpu as pltpu

# ---- model dims -------------------------------------------------------------
NODE_DIM = 12
NODE_DIM_PAD = 16          # pad encoder input to a multiple of 8 sublanes
HIDDEN = 64
NUM_GNN_LAYERS = 3
N_NODES = 8                # nodes per graph (max_vehicles-ish, padded)
B_TILE = 32                # graphs per grid step -> M = 256 matmul rows

# ---- packed-slab layout (all section starts 16-row aligned for bf16) --------
FUSE1_W = 256              # fused head first-layer output width (224 used)
OUT_W = 128                # lane-dense packed output width (8 used)
SAFE_LO, SAFE_HI = 128, 192    # safety head's 64-wide block inside fused layer
ROUTE_LO, ROUTE_HI = 192, 224  # route head's 32-wide block

WE_R0 = 0                                   # (16, 64)   encoder weight (12 rows used)
WG_R0 = WE_R0 + NODE_DIM_PAD                # 3 x (64, 64) GCN weights       -> 16
WF1_R0 = WG_R0 + NUM_GNN_LAYERS * HIDDEN    # (64, 256) fused head layer 1   -> 208
SW2_R0 = WF1_R0 + HIDDEN                    # (64, 32)   safety hidden layer -> 272
W2A_R0 = SW2_R0 + HIDDEN                    # (256, 128) fused layer 2 (z)   -> 336
W2B_R0 = W2A_R0 + FUSE1_W                   # (32, 128)  fused layer 2 (s2)  -> 592
BIAS_BASE = W2B_R0 + 32                     # 624
BE_ROW = BIAS_BASE                          # encoder bias          -> 624
BG_ROWS = tuple(BIAS_BASE + 16 * (1 + l) for l in range(NUM_GNN_LAYERS))  # 640,656,672
BF1_ROW = BIAS_BASE + 64                    # fused layer-1 bias    -> 688
SB2_ROW = BIAS_BASE + 80                    # safety layer-2 bias   -> 704
B2_ROW = BIAS_BASE + 96                     # fused layer-2 bias    -> 720
SLAB_ROWS = B2_ROW + 16                     # 736
SLAB_W = 256


# ---- kernel -----------------------------------------------------------------
def gnn_kernel(x_ref, a_ref, p_ref, out_ref):
    f32 = jnp.float32
    bf16 = jnp.bfloat16
    M = B_TILE * N_NODES

    x = x_ref[...].reshape(M, NODE_DIM_PAD).astype(bf16)   # (256, 16)
    a = a_ref[...].astype(bf16)                            # (B_TILE, 8, 8)

    def w(r0, rows, cols):          # static slab view -> bf16 weight matrix
        return p_ref[r0:r0 + rows, 0:cols]

    def b(row, cols):               # static aligned slab view -> (1, cols) bias
        return p_ref[row:row + 1, 0:cols].astype(f32)

    # node encoder: Linear(12->64) + ReLU  (Dropout = identity in eval)
    h = jnp.maximum(
        jnp.dot(x, w(WE_R0, NODE_DIM_PAD, HIDDEN),
                preferred_element_type=f32) + b(BE_ROW, HIDDEN), 0.0)

    # 3x GCNConv + ReLU:  h = relu( A_norm @ (h @ W_l) + b_l )
    # dense transform on the flattened (256, 64) slab, per-graph aggregation
    # via a batched einsum (tiny 8x8 @ 8x64 per graph).
    for l in range(NUM_GNN_LAYERS):
        wg = w(WG_R0 + l * HIDDEN, HIDDEN, HIDDEN)
        hw = jnp.dot(h.astype(bf16), wg, preferred_element_type=f32)
        hw_b = hw.reshape(B_TILE, N_NODES, HIDDEN).astype(bf16)
        agg = jnp.einsum('bij,bjh->bih', a, hw_b, preferred_element_type=f32)
        h = jnp.maximum(agg.reshape(M, HIDDEN) + b(BG_ROWS[l], HIDDEN), 0.0)

    # fused first layer of all 6 heads: one (256, 64) @ (64, 256) matmul + ReLU
    #   lanes   0: 32 priority | 32: 64 cooperation | 64: 96 urgency
    #         96:128 speed     |128:192 safety L1   |192:224 route | pad
    z = jnp.maximum(
        jnp.dot(h.astype(bf16), w(WF1_R0, HIDDEN, FUSE1_W),
                preferred_element_type=f32) + b(BF1_ROW, FUSE1_W), 0.0)

    # safety head's extra hidden layer: 64 -> 32, ReLU
    s2 = jnp.maximum(
        jnp.dot(z[:, SAFE_LO:SAFE_HI].astype(bf16), w(SW2_R0, HIDDEN, 32),
                preferred_element_type=f32) + b(SB2_ROW, 32), 0.0)

    # fused second layer: block-diagonal weights produce the packed output
    #   cols: 0 pri | 1 coop | 2 urg | 3 safe | 4 spd | 5:8 route | 8:128 pad
    raw = (jnp.dot(z.astype(bf16), w(W2A_R0, FUSE1_W, OUT_W),
                   preferred_element_type=f32)
           + jnp.dot(s2.astype(bf16), w(W2B_R0, 32, OUT_W),
                     preferred_element_type=f32)
           + b(B2_ROW, OUT_W))

    # per-column activations via lane masks; single tanh pass serves both
    # tanh and sigmoid lanes: sigmoid(x) = 0.5 * (1 + tanh(0.5 * x)).
    col = jax.lax.broadcasted_iota(jnp.int32, raw.shape, 1)
    is_sig = (col >= 1) & (col <= 3)          # cooperation, urgency, safety
    is_route = (col >= 5) & (col <= 7)        # route softmax lanes

    scale = jnp.where(is_sig, 0.5, 1.0)
    t = jnp.tanh(raw * scale)
    out = jnp.where(is_sig, 0.5 * (t + 1.0), t)

    # softmax over the 3 route columns only (finite lanes -> -inf mask safe)
    rl = jnp.where(is_route, raw, -jnp.inf)
    m = jnp.max(rl, axis=-1, keepdims=True)
    e = jnp.exp(rl - m)
    denom = jnp.sum(e, axis=-1, keepdims=True)
    soft = e * pl.reciprocal(denom, approx=True)
    out = jnp.where(is_route, soft, out)

    out_ref[...] = out.reshape(B_TILE, N_NODES, OUT_W)


# ---- host-side parameter init / packing -------------------------------------
def init_params(key):
    """Deterministic synthetic parameter init (same shapes as the nn.Module)."""
    ks = iter(jax.random.split(key, 32))
    nrm = lambda shape, scale=0.1: (
        scale * jax.random.normal(next(ks), shape, jnp.float32))
    p = {}
    p["we"] = nrm((NODE_DIM, HIDDEN))
    p["be"] = nrm((1, HIDDEN))
    p["wg"] = nrm((NUM_GNN_LAYERS, HIDDEN, HIDDEN))
    p["bg"] = nrm((NUM_GNN_LAYERS, 1, HIDDEN))
    p["h1w"] = nrm((4, HIDDEN, 32))    # priority, cooperation, urgency, speed
    p["h1b"] = nrm((4, 1, 32))
    p["h2w"] = nrm((4, 32, 1))
    p["h2b"] = nrm((4, 1, 1))
    p["sw1"] = nrm((HIDDEN, 64))       # safety 64->64->32->1
    p["sb1"] = nrm((1, 64))
    p["sw2"] = nrm((64, 32))
    p["sb2"] = nrm((1, 32))
    p["sw3"] = nrm((32, 1))
    p["sb3"] = nrm((1, 1))
    p["rw1"] = nrm((HIDDEN, 32))       # route 64->32->3
    p["rb1"] = nrm((1, 32))
    p["rw2"] = nrm((32, 3))
    p["rb2"] = nrm((1, 3))
    # edge_encoder exists in __init__ but is unused in forward -> omitted.
    return p


def pack_params(p):
    """Pack all weights/biases into one contiguous (736, 256) bf16 slab."""
    slab = jnp.zeros((SLAB_ROWS, SLAB_W), jnp.float32)

    # encoder weight (padded 12 -> 16 input rows with zeros)
    slab = slab.at[WE_R0:WE_R0 + NODE_DIM, 0:HIDDEN].set(p["we"])
    # GCN weights
    for l in range(NUM_GNN_LAYERS):
        slab = slab.at[WG_R0 + l * HIDDEN:WG_R0 + (l + 1) * HIDDEN,
                       0:HIDDEN].set(p["wg"][l])

    # fused head first layer (64, 256) + bias
    wf1 = jnp.zeros((HIDDEN, FUSE1_W), jnp.float32)
    bf1 = jnp.zeros((FUSE1_W,), jnp.float32)
    for i in range(4):                      # pri, coop, urg, spd -> 32-lane blocks
        wf1 = wf1.at[:, 32 * i:32 * (i + 1)].set(p["h1w"][i])
        bf1 = bf1.at[32 * i:32 * (i + 1)].set(p["h1b"][i][0])
    wf1 = wf1.at[:, SAFE_LO:SAFE_HI].set(p["sw1"])
    bf1 = bf1.at[SAFE_LO:SAFE_HI].set(p["sb1"][0])
    wf1 = wf1.at[:, ROUTE_LO:ROUTE_HI].set(p["rw1"])
    bf1 = bf1.at[ROUTE_LO:ROUTE_HI].set(p["rb1"][0])
    slab = slab.at[WF1_R0:WF1_R0 + HIDDEN, 0:FUSE1_W].set(wf1)

    # safety second hidden layer
    slab = slab.at[SW2_R0:SW2_R0 + HIDDEN, 0:32].set(p["sw2"])

    # fused second layer: block-diagonal weights feeding the packed output
    w2a = jnp.zeros((FUSE1_W, OUT_W), jnp.float32)
    w2b = jnp.zeros((32, OUT_W), jnp.float32)
    b2 = jnp.zeros((OUT_W,), jnp.float32)
    head_cols = (0, 1, 2, 4)                # output cols of pri/coop/urg/spd
    for i in range(4):
        w2a = w2a.at[32 * i:32 * (i + 1), head_cols[i]].set(p["h2w"][i][:, 0])
        b2 = b2.at[head_cols[i]].set(p["h2b"][i][0, 0])
    w2a = w2a.at[ROUTE_LO:ROUTE_HI, 5:8].set(p["rw2"])
    b2 = b2.at[5:8].set(p["rb2"][0])
    w2b = w2b.at[:, 3].set(p["sw3"][:, 0])
    b2 = b2.at[3].set(p["sb3"][0, 0])
    slab = slab.at[W2A_R0:W2A_R0 + FUSE1_W, 0:OUT_W].set(w2a)
    slab = slab.at[W2B_R0:W2B_R0 + 32, 0:OUT_W].set(w2b)

    # bias rows (each at its own 16-row-aligned offset)
    slab = slab.at[BE_ROW, 0:HIDDEN].set(p["be"][0])
    for l in range(NUM_GNN_LAYERS):
        slab = slab.at[BG_ROWS[l], 0:HIDDEN].set(p["bg"][l][0])
    slab = slab.at[BF1_ROW, 0:FUSE1_W].set(bf1)
    slab = slab.at[SB2_ROW, 0:32].set(p["sb2"][0])
    slab = slab.at[B2_ROW, 0:OUT_W].set(b2)
    return slab.astype(jnp.bfloat16)


def normalize_adj(adj):
    """Per-graph dense GCNConv normalization: A_hat=A+I, D^-1/2 A_hat D^-1/2."""
    n = adj.shape[-1]
    idx = jnp.arange(n)
    a = adj.at[:, idx, idx].set(1.0)            # self loops
    deg = jnp.sum(a, axis=-1)
    dinv = 1.0 / jnp.sqrt(deg)
    return a * dinv[:, :, None] * dinv[:, None, :]


# ---- wrapper ----------------------------------------------------------------
@jax.jit
def forward(x, a_norm, slab):
    """x: (B, N, 12) f32, a_norm: (B, N, N) f32, slab: (736, 256) bf16."""
    B = x.shape[0]
    x_pad = jnp.pad(x, ((0, 0), (0, 0), (0, NODE_DIM_PAD - NODE_DIM)))
    packed = pl.pallas_call(
        gnn_kernel,
        out_shape=jax.ShapeDtypeStruct((B, N_NODES, OUT_W), jnp.float32),
        grid=(B // B_TILE,),
        in_specs=[
            pl.BlockSpec((B_TILE, N_NODES, NODE_DIM_PAD), lambda b: (b, 0, 0)),
            pl.BlockSpec((B_TILE, N_NODES, N_NODES), lambda b: (b, 0, 0)),
            # full-slab block, same index every step -> stays resident in VMEM
            pl.BlockSpec((SLAB_ROWS, SLAB_W), lambda b: (0, 0)),
        ],
        out_specs=pl.BlockSpec((B_TILE, N_NODES, OUT_W), lambda b: (b, 0, 0)),
        compiler_params=pltpu.CompilerParams(
            dimension_semantics=("parallel",)),
    )(x_pad, a_norm, slab)

    flat = packed.reshape(B * N_NODES, OUT_W)   # matches PyG's flattened nodes
    return {
        "priority": flat[:, 0:1],
        "cooperation": flat[:, 1:2],
        "urgency": flat[:, 2:3],
        "safety": flat[:, 3:4],
        "speed_adjustment": flat[:, 4:5],
        "route_preference": flat[:, 5:8],
    }


def forward_ref(x, a_norm, p):
    """Pure-JAX f32 reference for correctness checking (batched)."""
    h = jax.nn.relu(x @ p["we"] + p["be"])
    for l in range(NUM_GNN_LAYERS):
        hw = h @ p["wg"][l]
        h = jax.nn.relu(jnp.einsum('bij,bjh->bih', a_norm, hw) + p["bg"][l])
    bsz = h.shape[0] * h.shape[1]
    hf = h.reshape(bsz, HIDDEN)
    out = {}
    acts = {"priority": jnp.tanh, "cooperation": jax.nn.sigmoid,
            "urgency": jax.nn.sigmoid, "speed_adjustment": jnp.tanh}
    for i, name in enumerate(["priority", "cooperation", "urgency",
                              "speed_adjustment"]):
        z = jax.nn.relu(hf @ p["h1w"][i] + p["h1b"][i])
        out[name] = acts[name](z @ p["h2w"][i] + p["h2b"][i])
    s = jax.nn.relu(hf @ p["sw1"] + p["sb1"])
    s = jax.nn.relu(s @ p["sw2"] + p["sb2"])
    out["safety"] = jax.nn.sigmoid(s @ p["sw3"] + p["sb3"])
    r = jax.nn.relu(hf @ p["rw1"] + p["rb1"])
    out["route_preference"] = jax.nn.softmax(r @ p["rw2"] + p["rb2"], axis=-1)
    return out


if __name__ == "__main__":
    key = jax.random.PRNGKey(0)
    k_x, k_a, k_p = jax.random.split(key, 3)

    # batch of 64 small vehicle graphs, 8 nodes each, random symmetric adjacency
    B = 64
    x = jax.random.normal(k_x, (B, N_NODES, NODE_DIM), jnp.float32)
    probs = jax.random.uniform(k_a, (B, N_NODES, N_NODES))
    sym = 0.5 * (probs + jnp.swapaxes(probs, 1, 2))
    adj = (sym > 0.5).astype(jnp.float32)
    a_norm = normalize_adj(adj)

    params = init_params(k_p)
    slab = pack_params(params)            # single (736, 256) bf16 parameter slab

    out = forward(x, a_norm, slab)
    jax.block_until_ready(out)

    # bf16 weights/activations in the kernel -> relaxed tolerance vs f32 ref
    ref = forward_ref(x, a_norm, params)
    for k in out:
        assert out[k].shape == ref[k].shape, k
        err = float(jnp.max(jnp.abs(out[k] - ref[k])))
        assert jnp.allclose(out[k], ref[k], rtol=2e-2, atol=2e-2), (k, err)

    print("KERNEL_OK")
</pallas_src>

<mosaic_0001>
module attributes {stable_mosaic.version = 11 : i64} {
  func.func @gnn_kernel(%arg0: i32, %arg1: memref<32x8x16xf32, #tpu.memory_space<vmem>>, %arg2: memref<32x8x8xf32, #tpu.memory_space<vmem>>, %arg3: memref<736x256xbf16, #tpu.memory_space<vmem>>, %arg4: memref<32x8x128xf32, #tpu.memory_space<vmem>>) attributes {dimension_semantics = [#tpu.dimension_semantics<parallel>], iteration_bounds = array<i64: 2>, scalar_prefetch = 0 : i64, scratch_operands = 0 : i64, tpu.core_type = #tpu.core_type<tc>, window_params = [{transform_indices = @transform_0, window_bounds = array<i64: 32, 8, 16>}, {transform_indices = @transform_1, window_bounds = array<i64: 32, 8, 8>}, {pipeline_mode = #tpu.pipeline_mode<synchronous>, transform_indices = @transform_2, window_bounds = array<i64: 736, 256>}, {transform_indices = @transform_3, window_bounds = array<i64: 32, 8, 128>}]} {
    %c0 = arith.constant 0 : index
    %c0_0 = arith.constant 0 : index
    %c0_1 = arith.constant 0 : index
    %0 = vector.load %arg1[%c0, %c0_0, %c0_1] : memref<32x8x16xf32, #tpu.memory_space<vmem>>, vector<32x8x16xf32>
    %1 = vector.shape_cast %0 : vector<32x8x16xf32> to vector<256x16xf32>
    %2 = arith.truncf %1 : vector<256x16xf32> to vector<256x16xbf16>
    %c0_2 = arith.constant 0 : index
    %c0_3 = arith.constant 0 : index
    %c0_4 = arith.constant 0 : index
    %3 = vector.load %arg2[%c0_2, %c0_3, %c0_4] : memref<32x8x8xf32, #tpu.memory_space<vmem>>, vector<32x8x8xf32>
    %4 = arith.truncf %3 : vector<32x8x8xf32> to vector<32x8x8xbf16>
    %c0_5 = arith.constant 0 : index
    %c0_6 = arith.constant 0 : index
    %5 = vector.load %arg3[%c0_5, %c0_6] : memref<736x256xbf16, #tpu.memory_space<vmem>>, vector<16x64xbf16>
    %cst = arith.constant dense<0.000000e+00> : vector<256x64xf32>
    %6 = tpu.matmul %2, %5, %cst {dimension_numbers = #tpu.dot_dimension_numbers<[1], [0], [0], [1], [0, 0, 1, 1], [], []>} : vector<256x16xbf16>, vector<16x64xbf16>, vector<256x64xf32> -> vector<256x64xf32>
    %c624 = arith.constant 624 : index
    %c0_7 = arith.constant 0 : index
    %7 = vector.load %arg3[%c624, %c0_7] : memref<736x256xbf16, #tpu.memory_space<vmem>>, vector<1x64xbf16>
    %8 = arith.extf %7 : vector<1x64xbf16> to vector<1x64xf32>
    %9 = vector.broadcast %8 : vector<1x64xf32> to vector<256x64xf32>
    %10 = arith.addf %6, %9 : vector<256x64xf32>
    %cst_8 = arith.constant 0.000000e+00 : f32
    %11 = vector.broadcast %cst_8 : f32 to vector<256x64xf32>
    %12 = arith.maximumf %10, %11 : vector<256x64xf32>
    %c16 = arith.constant 16 : index
    %c0_9 = arith.constant 0 : index
    %13 = vector.load %arg3[%c16, %c0_9] : memref<736x256xbf16, #tpu.memory_space<vmem>>, vector<64x64xbf16>
    %14 = arith.truncf %12 : vector<256x64xf32> to vector<256x64xbf16>
    %cst_10 = arith.constant dense<0.000000e+00> : vector<256x64xf32>
    %15 = tpu.matmul %14, %13, %cst_10 {dimension_numbers = #tpu.dot_dimension_numbers<[1], [0], [0], [1], [0, 0, 1, 1], [], []>} : vector<256x64xbf16>, vector<64x64xbf16>, vector<256x64xf32> -> vector<256x64xf32>
    %16 = vector.shape_cast %15 : vector<256x64xf32> to vector<32x8x64xf32>
    %17 = arith.truncf %16 : vector<32x8x64xf32> to vector<32x8x64xbf16>
    "tpu.trace_start"() <{level = 10 : i32, message = "bij,bjh->bih"}> : () -> ()
    %cst_11 = arith.constant dense<0.000000e+00> : vector<32x8x64xf32>
    %18 = tpu.matmul %4, %17, %cst_11 {dimension_numbers = #tpu.dot_dimension_numbers<[2], [1], [1], [2], [0, 0, 0, 1, 1, 2], [0], [0]>} : vector<32x8x8xbf16>, vector<32x8x64xbf16>, vector<32x8x64xf32> -> vector<32x8x64xf32>
    "tpu.trace_stop"() : () -> ()
    %19 = vector.shape_cast %18 : vector<32x8x64xf32> to vector<256x64xf32>
    %c640 = arith.constant 640 : index
    %c0_12 = arith.constant 0 : index
    %20 = vector.load %arg3[%c640, %c0_12] : memref<736x256xbf16, #tpu.memory_space<vmem>>, vector<1x64xbf16>
    %21 = arith.extf %20 : vector<1x64xbf16> to vector<1x64xf32>
    %22 = vector.broadcast %21 : vector<1x64xf32> to vector<256x64xf32>
    %23 = arith.addf %19, %22 : vector<256x64xf32>
    %cst_13 = arith.constant 0.000000e+00 : f32
    %24 = vector.broadcast %cst_13 : f32 to vector<256x64xf32>
    %25 = arith.maximumf %23, %24 : vector<256x64xf32>
    %c80 = arith.constant 80 : index
    %c0_14 = arith.constant 0 : index
    %26 = vector.load %arg3[%c80, %c0_14] : memref<736x256xbf16, #tpu.memory_space<vmem>>, vector<64x64xbf16>
    %27 = arith.truncf %25 : vector<256x64xf32> to vector<256x64xbf16>
    %cst_15 = arith.constant dense<0.000000e+00> : vector<256x64xf32>
    %28 = tpu.matmul %27, %26, %cst_15 {dimension_numbers = #tpu.dot_dimension_numbers<[1], [0], [0], [1], [0, 0, 1, 1], [], []>} : vector<256x64xbf16>, vector<64x64xbf16>, vector<256x64xf32> -> vector<256x64xf32>
    %29 = vector.shape_cast %28 : vector<256x64xf32> to vector<32x8x64xf32>
    %30 = arith.truncf %29 : vector<32x8x64xf32> to vector<32x8x64xbf16>
    "tpu.trace_start"() <{level = 10 : i32, message = "bij,bjh->bih"}> : () -> ()
    %cst_16 = arith.constant dense<0.000000e+00> : vector<32x8x64xf32>
    %31 = tpu.matmul %4, %30, %cst_16 {dimension_numbers = #tpu.dot_dimension_numbers<[2], [1], [1], [2], [0, 0, 0, 1, 1, 2], [0], [0]>} : vector<32x8x8xbf16>, vector<32x8x64xbf16>, vector<32x8x64xf32> -> vector<32x8x64xf32>
    "tpu.trace_stop"() : () -> ()
    %32 = vector.shape_cast %31 : vector<32x8x64xf32> to vector<256x64xf32>
    %c656 = arith.constant 656 : index
    %c0_17 = arith.constant 0 : index
    %33 = vector.load %arg3[%c656, %c0_17] : memref<736x256xbf16, #tpu.memory_space<vmem>>, vector<1x64xbf16>
    %34 = arith.extf %33 : vector<1x64xbf16> to vector<1x64xf32>
    %35 = vector.broadcast %34 : vector<1x64xf32> to vector<256x64xf32>
    %36 = arith.addf %32, %35 : vector<256x64xf32>
    %cst_18 = arith.constant 0.000000e+00 : f32
    %37 = vector.broadcast %cst_18 : f32 to vector<256x64xf32>
    %38 = arith.maximumf %36, %37 : vector<256x64xf32>
    %c144 = arith.constant 144 : index
    %c0_19 = arith.constant 0 : index
    %39 = vector.load %arg3[%c144, %c0_19] : memref<736x256xbf16, #tpu.memory_space<vmem>>, vector<64x64xbf16>
    %40 = arith.truncf %38 : vector<256x64xf32> to vector<256x64xbf16>
    %cst_20 = arith.constant dense<0.000000e+00> : vector<256x64xf32>
    %41 = tpu.matmul %40, %39, %cst_20 {dimension_numbers = #tpu.dot_dimension_numbers<[1], [0], [0], [1], [0, 0, 1, 1], [], []>} : vector<256x64xbf16>, vector<64x64xbf16>, vector<256x64xf32> -> vector<256x64xf32>
    %42 = vector.shape_cast %41 : vector<256x64xf32> to vector<32x8x64xf32>
    %43 = arith.truncf %42 : vector<32x8x64xf32> to vector<32x8x64xbf16>
    "tpu.trace_start"() <{level = 10 : i32, message = "bij,bjh->bih"}> : () -> ()
    %cst_21 = arith.constant dense<0.000000e+00> : vector<32x8x64xf32>
    %44 = tpu.matmul %4, %43, %cst_21 {dimension_numbers = #tpu.dot_dimension_numbers<[2], [1], [1], [2], [0, 0, 0, 1, 1, 2], [0], [0]>} : vector<32x8x8xbf16>, vector<32x8x64xbf16>, vector<32x8x64xf32> -> vector<32x8x64xf32>
    "tpu.trace_stop"() : () -> ()
    %45 = vector.shape_cast %44 : vector<32x8x64xf32> to vector<256x64xf32>
    %c672 = arith.constant 672 : index
    %c0_22 = arith.constant 0 : index
    %46 = vector.load %arg3[%c672, %c0_22] : memref<736x256xbf16, #tpu.memory_space<vmem>>, vector<1x64xbf16>
    %47 = arith.extf %46 : vector<1x64xbf16> to vector<1x64xf32>
    %48 = vector.broadcast %47 : vector<1x64xf32> to vector<256x64xf32>
    %49 = arith.addf %45, %48 : vector<256x64xf32>
    %cst_23 = arith.constant 0.000000e+00 : f32
    %50 = vector.broadcast %cst_23 : f32 to vector<256x64xf32>
    %51 = arith.maximumf %49, %50 : vector<256x64xf32>
    %52 = arith.truncf %51 : vector<256x64xf32> to vector<256x64xbf16>
    %c208 = arith.constant 208 : index
    %c0_24 = arith.constant 0 : index
    %53 = vector.load %arg3[%c208, %c0_24] : memref<736x256xbf16, #tpu.memory_space<vmem>>, vector<64x256xbf16>
    %cst_25 = arith.constant dense<0.000000e+00> : vector<256x256xf32>
    %54 = tpu.matmul %52, %53, %cst_25 {dimension_numbers = #tpu.dot_dimension_numbers<[1], [0], [0], [1], [0, 0, 1, 1], [], []>} : vector<256x64xbf16>, vector<64x256xbf16>, vector<256x256xf32> -> vector<256x256xf32>
    %c688 = arith.constant 688 : index
    %c0_26 = arith.constant 0 : index
    %55 = vector.load %arg3[%c688, %c0_26] : memref<736x256xbf16, #tpu.memory_space<vmem>>, vector<1x256xbf16>
    %56 = arith.extf %55 : vector<1x256xbf16> to vector<1x256xf32>
    %57 = vector.broadcast %56 : vector<1x256xf32> to vector<256x256xf32>
    %58 = arith.addf %54, %57 : vector<256x256xf32>
    %cst_27 = arith.constant 0.000000e+00 : f32
    %59 = vector.broadcast %cst_27 : f32 to vector<256x256xf32>
    %60 = arith.maximumf %58, %59 : vector<256x256xf32>
    %61 = vector.extract_strided_slice %60 {offsets = [0, 128], sizes = [256, 64], strides = [1, 1]} : vector<256x256xf32> to vector<256x64xf32>
    %62 = arith.truncf %61 : vector<256x64xf32> to vector<256x64xbf16>
    %c272 = arith.constant 272 : index
    %c0_28 = arith.constant 0 : index
    %63 = vector.load %arg3[%c272, %c0_28] : memref<736x256xbf16, #tpu.memory_space<vmem>>, vector<64x32xbf16>
    %cst_29 = arith.constant dense<0.000000e+00> : vector<256x32xf32>
    %64 = tpu.matmul %62, %63, %cst_29 {dimension_numbers = #tpu.dot_dimension_numbers<[1], [0], [0], [1], [0, 0, 1, 1], [], []>} : vector<256x64xbf16>, vector<64x32xbf16>, vector<256x32xf32> -> vector<256x32xf32>
    %c704 = arith.constant 704 : index
    %c0_30 = arith.constant 0 : index
    %65 = vector.load %arg3[%c704, %c0_30] : memref<736x256xbf16, #tpu.memory_space<vmem>>, vector<1x32xbf16>
    %66 = arith.extf %65 : vector<1x32xbf16> to vector<1x32xf32>
    %67 = vector.broadcast %66 : vector<1x32xf32> to vector<256x32xf32>
    %68 = arith.addf %64, %67 : vector<256x32xf32>
    %cst_31 = arith.constant 0.000000e+00 : f32
    %69 = vector.broadcast %cst_31 : f32 to vector<256x32xf32>
    %70 = arith.maximumf %68, %69 : vector<256x32xf32>
    %71 = arith.truncf %60 : vector<256x256xf32> to vector<256x256xbf16>
    %c336 = arith.constant 336 : index
    %c0_32 = arith.constant 0 : index
    %72 = vector.load %arg3[%c336, %c0_32] : memref<736x256xbf16, #tpu.memory_space<vmem>>, vector<256x128xbf16>
    %cst_33 = arith.constant dense<0.000000e+00> : vector<256x128xf32>
    %73 = tpu.matmul %71, %72, %cst_33 {dimension_numbers = #tpu.dot_dimension_numbers<[1], [0], [0], [1], [0, 0, 1, 1], [], []>} : vector<256x256xbf16>, vector<256x128xbf16>, vector<256x128xf32> -> vector<256x128xf32>
    %74 = arith.truncf %70 : vector<256x32xf32> to vector<256x32xbf16>
    %c592 = arith.constant 592 : index
    %c0_34 = arith.constant 0 : index
    %75 = vector.load %arg3[%c592, %c0_34] : memref<736x256xbf16, #tpu.memory_space<vmem>>, vector<32x128xbf16>
    %cst_35 = arith.constant dense<0.000000e+00> : vector<256x128xf32>
    %76 = tpu.matmul %74, %75, %cst_35 {dimension_numbers = #tpu.dot_dimension_numbers<[1], [0], [0], [1], [0, 0, 1, 1], [], []>} : vector<256x32xbf16>, vector<32x128xbf16>, vector<256x128xf32> -> vector<256x128xf32>
    %77 = arith.addf %73, %76 : vector<256x128xf32>
    %c720 = arith.constant 720 : index
    %c0_36 = arith.constant 0 : index
    %78 = vector.load %arg3[%c720, %c0_36] : memref<736x256xbf16, #tpu.memory_space<vmem>>, vector<1x128xbf16>
    %79 = arith.extf %78 : vector<1x128xbf16> to vector<1x128xf32>
    %80 = vector.broadcast %79 : vector<1x128xf32> to vector<256x128xf32>
    %81 = arith.addf %77, %80 : vector<256x128xf32>
    %82 = tpu.iota {dimensions = array<i32: 1>} : vector<256x128xi32>
    %c1_i32 = arith.constant 1 : i32
    %83 = vector.broadcast %c1_i32 : i32 to vector<256x128xi32>
    %84 = arith.cmpi sge, %82, %83 : vector<256x128xi32>
    %c3_i32 = arith.constant 3 : i32
    %85 = vector.broadcast %c3_i32 : i32 to vector<256x128xi32>
    %86 = arith.cmpi sle, %82, %85 : vector<256x128xi32>
    %87 = arith.andi %84, %86 : vector<256x128xi1>
    %c5_i32 = arith.constant 5 : i32
    %88 = vector.broadcast %c5_i32 : i32 to vector<256x128xi32>
    %89 = arith.cmpi sge, %82, %88 : vector<256x128xi32>
    %c7_i32 = arith.constant 7 : i32
    %90 = vector.broadcast %c7_i32 : i32 to vector<256x128xi32>
    %91 = arith.cmpi sle, %82, %90 : vector<256x128xi32>
    %92 = arith.andi %89, %91 : vector<256x128xi1>
    %cst_37 = arith.constant 5.000000e-01 : f32
    %cst_38 = arith.constant 1.000000e+00 : f32
    %93 = vector.broadcast %cst_37 : f32 to vector<256x128xf32>
    %94 = vector.broadcast %cst_38 : f32 to vector<256x128xf32>
    %95 = arith.select %87, %93, %94 : vector<256x128xi1>, vector<256x128xf32>
    %96 = arith.mulf %81, %95 : vector<256x128xf32>
    %97 = math.tanh %96 : vector<256x128xf32>
    %cst_39 = arith.constant 1.000000e+00 : f32
    %98 = vector.broadcast %cst_39 : f32 to vector<256x128xf32>
    %99 = arith.addf %97, %98 : vector<256x128xf32>
    %cst_40 = arith.constant 5.000000e-01 : f32
    %100 = vector.broadcast %cst_40 : f32 to vector<256x128xf32>
    %101 = arith.mulf %100, %99 : vector<256x128xf32>
    %102 = arith.select %87, %101, %97 : vector<256x128xi1>, vector<256x128xf32>
    %cst_41 = arith.constant 0xFF800000 : f32
    %103 = vector.broadcast %cst_41 : f32 to vector<256x128xf32>
    %104 = arith.select %92, %81, %103 : vector<256x128xi1>, vector<256x128xf32>
    %cst_42 = arith.constant dense<0xFF800000> : vector<256xf32>
    %105 = vector.multi_reduction <maximumf>, %104, %cst_42 [1] : vector<256x128xf32> to vector<256xf32>
    %106 = vector.shape_cast %105 : vector<256xf32> to vector<256x1xf32>
    %107 = vector.broadcast %106 : vector<256x1xf32> to vector<256x128xf32>
    %108 = arith.subf %104, %107 : vector<256x128xf32>
    %109 = math.exp %108 : vector<256x128xf32>
    %cst_43 = arith.constant dense<0.000000e+00> : vector<256xf32>
    %110 = vector.multi_reduction <add>, %109, %cst_43 [1] : vector<256x128xf32> to vector<256xf32>
    %111 = vector.shape_cast %110 : vector<256xf32> to vector<256x1xf32>
    %112 = tpu.reciprocal %111 {approx = true} : vector<256x1xf32> -> vector<256x1xf32>
    %113 = vector.broadcast %112 : vector<256x1xf32> to vector<256x128xf32>
    %114 = arith.mulf %109, %113 : vector<256x128xf32>
    %115 = arith.select %92, %114, %102 : vector<256x128xi1>, vector<256x128xf32>
    %116 = vector.shape_cast %115 : vector<256x128xf32> to vector<32x8x128xf32>
    %c0_44 = arith.constant 0 : index
    %c0_45 = arith.constant 0 : index
    %c0_46 = arith.constant 0 : index
    %117 = vector.load %arg4[%c0_44, %c0_45, %c0_46] : memref<32x8x128xf32, #tpu.memory_space<vmem>>, vector<32x8x128xf32>
    tpu.vector_store %arg4[%c0_44, %c0_45, %c0_46], %116 {strides = array<i32>} : memref<32x8x128xf32, #tpu.memory_space<vmem>>, vector<32x8x128xf32>,
    return
  }
  func.func @transform_0(%arg0: i32) -> (i32, i32, i32) {
    %c0_i32 = arith.constant 0 : i32
    %c0_i32_0 = arith.constant 0 : i32
    %c0_i32_1 = arith.constant 0 : i32
    return %arg0, %c0_i32, %c0_i32_0 : i32, i32, i32
  }
  func.func @transform_1(%arg0: i32) -> (i32, i32, i32) {
    %c0_i32 = arith.constant 0 : i32
    %c0_i32_0 = arith.constant 0 : i32
    %c0_i32_1 = arith.constant 0 : i32
    return %arg0, %c0_i32, %c0_i32_0 : i32, i32, i32
  }
  func.func @transform_2(%arg0: i32) -> (i32, i32) {
    %c0_i32 = arith.constant 0 : i32
    %c0_i32_0 = arith.constant 0 : i32
    %c0_i32_1 = arith.constant 0 : i32
    return %c0_i32, %c0_i32_0 : i32, i32
  }
  func.func @transform_3(%arg0: i32) -> (i32, i32, i32) {
    %c0_i32 = arith.constant 0 : i32
    %c0_i32_0 = arith.constant 0 : i32
    %c0_i32_1 = arith.constant 0 : i32
    return %arg0, %c0_i32, %c0_i32_0 : i32, i32, i32
  }
}

</mosaic_0001>

<bundles_post_ra>
// kernel: forward.1
= control target key start
LH: loop header
LB: loop body
LE: loop exit
PB: predicated region body
PF: predicated region fallthrough
CT: control target
= control target key end

     0   :  { %s9524_s12 = smov 0   ;;  %s11646_s0 = inlined_call_operand.vmem [shape: f32[64,8,16], index: 0, kind: input, shape index: {}]   ;;  %s11647_s1 = inlined_call_operand.vmem [shape: f32[64,8,8], index: 1, kind: input, shape index: {}]   ;;  %s11648_s2 = inlined_call_operand.vmem [shape: bf16[736,256], index: 2, kind: input, shape index: {}]   ;;  %s11649_s3 = inlined_call_operand.vmem [shape: f32[64,8,128], index: 3, kind: output, shape index: {}]  }
   0x1 LB: > { %s7750_s13 = sadd.s32 4294967295, %s9498_s12   ;;  %p7754_p0 = scmp.ge.s32.totalorder %s9498_s12, 1  ;;  %s9498_s12 = sphi %s9524_s12, %s13_s12  }
   0x2   : > { %p149_p1 = scmp.lt.s32.totalorder %s9498_s12, 3 }
   0x4   : > { %p150_p2 = pnand %p7754_p0, %p149_p1 }
   0x6   : > { %153 = sbr.rel (%p150_p2) target bundleno = 2551 (0x9f7), region = 32 }
   0xb   : > { %v9253_v0 = vld [vmem:[%s11648_s2] ss:$8 sps:$4 sm:$0xff]   ;;  %s7755_s16 = sshll.u32 %s7750_s13, 5  ;;  %vm323_vm0 = vcmask 130048   ;;  %v9255_v50 = vld [vmem:[%s11648_s2 + $0x30] ss:$8 sps:$4 sm:$0xff]   ;;  %v313_v53 = vlaneseq }
   0xc   : > { %8433 = vmatprep.subr.bf16.mxu0 %v9253_v0  ;;  %p179_p3 = scmp.lt.s32.totalorder %s7755_s16, 63  ;;  %9239 = vmatprep.subr.bf16.mxu1 %v9253_v0  ;;  %v9254_v1 = vld [vmem:[%s11648_s2 + $0x40] ss:$8 sps:$4 sm:$0xff]   ;;  %v9257_v52 = vld [vmem:[%s11648_s2 + $0x10] ss:$8 sps:$4 sm:$0xff]   ;;  %vm613_vm1 = vcmask 523264  }
   0xd   : > { %8434 = vmatpush3.bf16.msra.mxu0 %v9253_v0  ;;  %9240 = vmatpush3.bf16.msra.mxu1 %v9253_v0  ;;  %v9256_v51 = vld [vmem:[%s11648_s2 + $0x20] ss:$8 sps:$4 sm:$0xff]   ;;  %v314_v54 = vshrl.u32 %v313_v53, 7  ;;  %v311_v55 = vld [vmem:[%s11648_s2 + $0x270] sm:$0x1]  ;;  %vm9501_vm2 = vmmov 0  }
   0xe   : > { %s11706_s16 = smov (!%p179_p3, %s7755_s16), 63  ;;  %8467 = vmatprep.subr.bf16.mxu0 %v9254_v1  ;;  %v312_v56 = vunpack.c.l.bf16 %v311_v55  ;;  %vm859_vm3 = vcmask 1043456   ;;  %vm855_vm4 = vcmask 64512   ;;  %vm6624_vm5 = vcmask 261120  }
   0xf   : > { %s9538_s19 = sshll.u32 %s11706_s16, 3  ;;  %v9607_v57 = vsub.s32 0, %v314_v54 }
  0x10   : > { %s9544_s22 = scalar_lea.vmem %s11646_s0, %s9538_s19  ;;  %s9670_s6 = scalar_lea.vmem %s11647_s1, %s9538_s19 }
  0x11   : > { %v197_v2 = vld [vmem:[%s9544_s22] sm:$0xff]  ;;  %v198_v3 = vld [vmem:[%s9544_s22 + $0x8] sm:$0xff]  ;;  %v199_v4 = vld [vmem:[%s9544_s22 + $0x10] sm:$0xff]  ;;  %v9610_v59 = vrot.slane %v312_v56, %v9607_v57  ;;  %s11393_s24 = scalar_lea.vmem %s11649_s3, %s9538_s19 }
  0x12   : > { %v229_v5 = vpack.c.bf16 %v198_v3, %v197_v2  ;;  %v200_v6 = vld [vmem:[%s9544_s22 + $0x18] sm:$0xff]  ;;  %v201_v7 = vld [vmem:[%s9544_s22 + $0x20] sm:$0xff]  ;;  %v202_v8 = vld [vmem:[%s9544_s22 + $0x28] sm:$0xff] }
  0x13   : > { %v230_v9 = vpack.c.bf16 %v200_v6, %v199_v4  ;;  %v231_v10 = vpack.c.bf16 %v202_v8, %v201_v7  ;;  %v203_v11 = vld [vmem:[%s9544_s22 + $0x30] sm:$0xff]  ;;  %v204_v12 = vld [vmem:[%s9544_s22 + $0x38] sm:$0xff]  ;;  %v205_v13 = vld [vmem:[%s9544_s22 + $0x40] sm:$0xff] }
  0x14   : > { %8435 = vmatprep.mubr.msk.bf16.mxu0 %vm323_vm0, %v229_v5  ;;  %v206_v14 = vld [vmem:[%s9544_s22 + $0x48] sm:$0xff]  ;;  %v232_v15 = vpack.c.bf16 %v204_v12, %v203_v11  ;;  %v225_v17 = vld [vmem:[%s9544_s22 + $0xe0] sm:$0xff]  ;;  %v227_v20 = vld [vmem:[%s9544_s22 + $0xf0] sm:$0xff] }
  0x15   : > { %8436 = vmatmul.mubr.msk.bf16.vlgmr.msra.gmra.mxu0 %vm323_vm0, %v230_v9  ;;  %v233_v16 = vpack.c.bf16 %v206_v14, %v205_v13  ;;  %v226_v18 = vld [vmem:[%s9544_s22 + $0xe8] sm:$0xff]  ;;  %v228_v21 = vld [vmem:[%s9544_s22 + $0xf8] sm:$0xff]  ;;  %v207_v22 = vld [vmem:[%s9544_s22 + $0x50] sm:$0xff] }
  0x16   : > { %8439 = vmatprep.mubr.msk.bf16.mxu0 %vm323_vm0, %v231_v10  ;;  %8468 = vmatpush3.bf16.msra.mxu0 %v9254_v1  ;;  %v243_v19 = vpack.c.bf16 %v226_v18, %v225_v17  ;;  %v208_v23 = vld [vmem:[%s9544_s22 + $0x58] sm:$0xff]  ;;  %v244_v24 = vpack.c.bf16 %v228_v21, %v227_v20  ;;  %v209_v25 = vld [vmem:[%s9544_s22 + $0x60] sm:$0xff]  ;;  %v210_v26 = vld [vmem:[%s9544_s22 + $0x68] sm:$0xff] }
  0x17   : > { %v234_v27 = vpack.c.bf16 %v208_v23, %v207_v22  ;;  %v235_v28 = vpack.c.bf16 %v210_v26, %v209_v25  ;;  %v211_v29 = vld [vmem:[%s9544_s22 + $0x70] sm:$0xff]  ;;  %v212_v30 = vld [vmem:[%s9544_s22 + $0x78] sm:$0xff]  ;;  %v213_v31 = vld [vmem:[%s9544_s22 + $0x80] sm:$0xff]  ;;  %8469 = vmatprep.subr.bf16.mxu0 %v9255_v50 }
  0x18   : > { %8463 = vmatprep.mubr.msk.bf16.mxu1 %vm323_vm0, %v243_v19  ;;  %v214_v32 = vld [vmem:[%s9544_s22 + $0x88] sm:$0xff]  ;;  %v236_v33 = vpack.c.bf16 %v212_v30, %v211_v29  ;;  %v215_v35 = vld [vmem:[%s9544_s22 + $0x90] sm:$0xff]  ;;  %v216_v36 = vld [vmem:[%s9544_s22 + $0x98] sm:$0xff] }
  0x19   : > { %8464 = vmatmul.mubr.msk.bf16.vlgmr.msra.gmra.mxu1 %vm323_vm0, %v244_v24  ;;  %v237_v34 = vpack.c.bf16 %v214_v32, %v213_v31  ;;  %v217_v37 = vld [vmem:[%s9544_s22 + $0xa0] sm:$0xff]  ;;  %v218_v38 = vld [vmem:[%s9544_s22 + $0xa8] sm:$0xff]  ;;  %v238_v39 = vpack.c.bf16 %v216_v36, %v215_v35  ;;  %v219_v41 = vld [vmem:[%s9544_s22 + $0xb0] sm:$0xff] }
  0x1a   : > { %v239_v40 = vpack.c.bf16 %v218_v38, %v217_v37  ;;  %v220_v42 = vld [vmem:[%s9544_s22 + $0xb8] sm:$0xff]  ;;  %v221_v43 = vld [vmem:[%s9544_s22 + $0xc0] sm:$0xff]  ;;  %v222_v44 = vld [vmem:[%s9544_s22 + $0xc8] sm:$0xff]  ;;  %8470 = vmatpush3.bf16.msra.mxu0 %v9255_v50 }
  0x1b   : > { %v240_v45 = vpack.c.bf16 %v220_v42, %v219_v41  ;;  %v241_v46 = vpack.c.bf16 %v222_v44, %v221_v43  ;;  %v223_v47 = vld [vmem:[%s9544_s22 + $0xd0] sm:$0xff]  ;;  %v224_v48 = vld [vmem:[%s9544_s22 + $0xd8] sm:$0xff]  ;;  %8471 = vmatprep.subr.bf16.mxu0 %v9256_v51 }
  0x1c   : > { %v242_v49 = vpack.c.bf16 %v224_v48, %v223_v47 }
  0x1d   : > { %8440 = vmatmul.mubr.msk.bf16.gmra.mxu0 %vm323_vm0, %v232_v15 }
  0x1e   : > { %8443 = vmatprep.mubr.msk.bf16.mxu0 %vm323_vm0, %v233_v16  ;;  %8472 = vmatpush3.bf16.msra.mxu0 %v9256_v51 }
  0x1f   : > { %8473 = vmatprep.subr.bf16.mxu0 %v9257_v52 }
  0x22   : > { %8474 = vmatpush3.bf16.msra.mxu0 %v9257_v52 }
  0x25   : > { %8444 = vmatmul.mubr.msk.bf16.gmra.mxu0 %vm323_vm0, %v234_v27 }
  0x26   : > { %8447 = vmatprep.mubr.msk.bf16.mxu0 %vm323_vm0, %v235_v28 }
  0x2d   : > { %8448 = vmatmul.mubr.msk.bf16.gmra.mxu0 %vm323_vm0, %v236_v33 }
  0x2e   : > { %8451 = vmatprep.mubr.msk.bf16.mxu0 %vm323_vm0, %v237_v34 }
  0x35   : > { %8452 = vmatmul.mubr.msk.bf16.gmra.mxu0 %vm323_vm0, %v238_v39 }
  0x36   : > { %8455 = vmatprep.mubr.msk.bf16.mxu0 %vm323_vm0, %v239_v40 }
  0x3d   : > { %8456 = vmatmul.mubr.msk.bf16.gmra.mxu0 %vm323_vm0, %v240_v45 }
  0x3e   : > { %8459 = vmatprep.mubr.msk.bf16.mxu0 %vm323_vm0, %v241_v46 }
  0x45   : > { %8460 = vmatmul.mubr.msk.bf16.gmra.mxu0 %vm323_vm0, %v242_v49 }
  0xd5   : > { %v8437_v58 = vpop.f32.mrf.mxu0 }
  0xd6   : > { %v415_v0 = vadd.f32 %v8437_v58, %v9610_v59 }
  0xd7   : > { %v406_v60 = vpop.f32.mrf.mxu0 }
  0xd8   : > { %v407_v62 = vadd.f32 %v406_v60, %v9610_v59  ;;  %v535_v7 = vmax.f32 %v415_v0, 0.0 }
  0xd9   : > { %v8438_v61 = vpop.f32.mrf.mxu0  ;;  %v8465_v58 = vpop.f32.mrf.mxu1 }
  0xda   : > { %v418_v63 = vadd.f32 %v8438_v61, %v9610_v59  ;;  %v533_v5 = vmax.f32 %v407_v62, 0.0 }
  0xdb   : > { %v409_v1 = vpop.f32.mrf.mxu0 }
  0xdc   : > { %v410_v2 = vadd.f32 %v409_v1, %v9610_v59  ;;  %v536_v3 = vmax.f32 %v418_v63, 0.0 }
  0xdd   : > { %v8441_v4 = vpop.f32.mrf.mxu0 }
  0xde   : > { %v534_v6 = vmax.f32 %v410_v2, 0.0  ;;  %v431_v8 = vadd.f32 %v8441_v4, %v9610_v59  ;;  %v574_v12 = vpack.c.bf16 %v536_v3, %v535_v7  ;;  %v518_v3 = vpop.f32.mrf.mxu1 }
  0xdf   : > { %v422_v9 = vpop.f32.mrf.mxu0 }
  0xe0   : > { %v573_v10 = vpack.c.bf16 %v534_v6, %v533_v5  ;;  %v423_v11 = vadd.f32 %v422_v9, %v9610_v59  ;;  %v539_v15 = vmax.f32 %v431_v8, 0.0 }
  0xe1   : > { %v8442_v13 = vpop.f32.mrf.mxu0 }
  0xe2   : > { %8475 = vmatprep.mubr.msk.bf16.mxu0 %vm613_vm1, %v573_v10  ;;  %v434_v14 = vadd.f32 %v8442_v13, %v9610_v59  ;;  %v537_v17 = vmax.f32 %v423_v11, 0.0  ;;  %v8466_v11 = vpop.f32.mrf.mxu1 }
  0xe3   : > { %8476 = vmatmul.mubr.msk.bf16.vlgmr.msra.gmra.mxu0 %vm613_vm1, %v574_v12  ;;  %v425_v16 = vpop.f32.mrf.mxu0 }
  0xe4   : > { %v540_v18 = vmax.f32 %v434_v14, 0.0  ;;  %v426_v19 = vadd.f32 %v425_v16, %v9610_v59 }
  0xe5   : > { %v8445_v20 = vpop.f32.mrf.mxu0 }
  0xe6   : > { %v538_v21 = vmax.f32 %v426_v19, 0.0  ;;  %v576_v22 = vpack.c.bf16 %v540_v18, %v539_v15  ;;  %v447_v23 = vadd.f32 %v8445_v20, %v9610_v59  ;;  %v521_v19 = vpop.f32.mrf.mxu1 }
  0xe7   : > { %v438_v24 = vpop.f32.mrf.mxu0 }
  0xe8   : > { %v575_v25 = vpack.c.bf16 %v538_v21, %v537_v17  ;;  %v439_v26 = vadd.f32 %v438_v24, %v9610_v59  ;;  %v543_v29 = vmax.f32 %v447_v23, 0.0  ;;  %v519_v24 = vadd.f32 %v518_v3, %v9610_v59 }
  0xe9   : > { %v8446_v27 = vpop.f32.mrf.mxu0 }
  0xea   : > { %8479 = vmatprep.mubr.msk.bf16.mxu0 %vm613_vm1, %v575_v25  ;;  %v450_v28 = vadd.f32 %v8446_v27, %v9610_v59  ;;  %v541_v31 = vmax.f32 %v439_v26, 0.0  ;;  %v522_v27 = vadd.f32 %v521_v19, %v9610_v59 }
  0xeb   : > { %8480 = vmatmul.mubr.msk.bf16.gmra.mxu0 %vm613_vm1, %v576_v22  ;;  %v441_v30 = vpop.f32.mrf.mxu0 }
  0xec   : > { %v544_v32 = vmax.f32 %v450_v28, 0.0  ;;  %v442_v33 = vadd.f32 %v441_v30, %v9610_v59 }
  0xed   : > { %v8449_v34 = vpop.f32.mrf.mxu0 }
  0xee   : > { %v542_v35 = vmax.f32 %v442_v33, 0.0  ;;  %v578_v36 = vpack.c.bf16 %v544_v32, %v543_v29  ;;  %v463_v37 = vadd.f32 %v8449_v34, %v9610_v59  ;;  %v561_v32 = vmax.f32 %v519_v24, 0.0  ;;  %v250_v24 = vld [vmem:[%s9670_s6 + $0x28] sm:$0xff] }
  0xef   : > { %v454_v38 = vpop.f32.mrf.mxu0 }
  0xf0   : > { %v577_v39 = vpack.c.bf16 %v542_v35, %v541_v31  ;;  %v455_v40 = vadd.f32 %v454_v38, %v9610_v59  ;;  %v547_v43 = vmax.f32 %v463_v37, 0.0 }
  0xf1   : > { %v8450_v41 = vpop.f32.mrf.mxu0 }
  0xf2   : > { %8483 = vmatprep.mubr.msk.bf16.mxu0 %vm613_vm1, %v577_v39  ;;  %v466_v42 = vadd.f32 %v8450_v41, %v9610_v59  ;;  %v545_v45 = vmax.f32 %v455_v40, 0.0  ;;  %v527_v39 = vadd.f32 %v8465_v58, %v9610_v59  ;;  %v530_v40 = vadd.f32 %v8466_v11, %v9610_v59 }
  0xf3   : > { %8484 = vmatmul.mubr.msk.bf16.gmra.mxu0 %vm613_vm1, %v578_v36  ;;  %v457_v44 = vpop.f32.mrf.mxu0  ;;  %v562_v36 = vmax.f32 %v522_v27, 0.0 }
  0xf4   : > { %v548_v46 = vmax.f32 %v466_v42, 0.0  ;;  %v458_v47 = vadd.f32 %v457_v44, %v9610_v59  ;;  %v564_v44 = vmax.f32 %v530_v40, 0.0 }
  0xf5   : > { %v8453_v48 = vpop.f32.mrf.mxu0  ;;  %v587_v42 = vpack.c.bf16 %v562_v36, %v561_v32 }
  0xf6   : > { %v546_v49 = vmax.f32 %v458_v47, 0.0  ;;  %v580_v50 = vpack.c.bf16 %v548_v46, %v547_v43  ;;  %v479_v51 = vadd.f32 %v8453_v48, %v9610_v59  ;;  %v563_v43 = vmax.f32 %v527_v39, 0.0  ;;  %v247_v47 = vld [vmem:[%s9670_s6 + $0x10] sm:$0xff] }
  0xf7   : > { %v470_v52 = vpop.f32.mrf.mxu0  ;;  %v9500_v46 = vmov 0.0  }
  0xf8   : > { %v579_v54 = vpack.c.bf16 %v546_v49, %v545_v45  ;;  %v471_v55 = vadd.f32 %v470_v52, %v9610_v59  ;;  %v551_v61 = vmax.f32 %v479_v51, 0.0  ;;  %v588_v45 = vpack.c.bf16 %v564_v44, %v563_v43  ;;  %8519 = vmatprep.subr.bf16.mxu1 %v9500_v46  ;;  %8507 = vmatprep.subr.bf16.mxu0 %v9500_v46  ;;  %v254_v44 = vld [vmem:[%s9670_s6 + $0x48] sm:$0xff] }
  0xf9   : > { %v8454_v56 = vpop.f32.mrf.mxu0  ;;  %8521 = vmatprep.mubr.msk.bf16.mxu1 %vm9501_vm2, %v9500_v46 }
  0xfa   : > { %8487 = vmatprep.mubr.msk.bf16.mxu0 %vm613_vm1, %v579_v54  ;;  %v482_v60 = vadd.f32 %v8454_v56, %v9610_v59  ;;  %v549_v63 = vmax.f32 %v471_v55, 0.0  ;;  %v9675_v54 = vpack.c.bf16 %v247_v47, %v247_v47 }
  0xfb   : > { %8488 = vmatmul.mubr.msk.bf16.gmra.mxu0 %vm613_vm1, %v580_v50  ;;  %v473_v62 = vpop.f32.mrf.mxu0  ;;  %v245_v50 = vld [vmem:[%s9670_s6] sm:$0xff] }
  0xfc   : > { %v552_v0 = vmax.f32 %v482_v60, 0.0  ;;  %v474_v1 = vadd.f32 %v473_v62, %v9610_v59  ;;  %v9678_v58 = vpack.c.bf16 %v245_v50, %v245_v50 }
  0xfd   : > { %v8457_v2 = vpop.f32.mrf.mxu0 }
  0xfe   : > { %v550_v4 = vmax.f32 %v474_v1, 0.0  ;;  %v582_v5 = vpack.c.bf16 %v552_v0, %v551_v61  ;;  %v495_v6 = vadd.f32 %v8457_v2, %v9610_v59  ;;  %v246_v0 = vld [vmem:[%s9670_s6 + $0x8] sm:$0xff]  ;;  %v249_v2 = vld [vmem:[%s9670_s6 + $0x20] sm:$0xff] }
  0xff   : > { %v486_v7 = vpop.f32.mrf.mxu0 }
 0x100   : > { %v581_v8 = vpack.c.bf16 %v550_v4, %v549_v63  ;;  %v487_v9 = vadd.f32 %v486_v7, %v9610_v59  ;;  %v555_v13 = vmax.f32 %v495_v6, 0.0  ;;  %v9694_v7 = vpack.c.bf16 %v246_v0, %v246_v0 }
 0x101   : > { %v8458_v10 = vpop.f32.mrf.mxu0 }
 0x102   : > { %8491 = vmatprep.mubr.msk.bf16.mxu0 %vm613_vm1, %v581_v8  ;;  %v498_v12 = vadd.f32 %v8458_v10, %v9610_v59  ;;  %v553_v15 = vmax.f32 %v487_v9, 0.0  ;;  %v9697_v9 = vpack.c.bf16 %v249_v2, %v249_v2 }
 0x103   : > { %8492 = vmatmul.mubr.msk.bf16.gmra.mxu0 %vm613_vm1, %v582_v5  ;;  %v489_v14 = vpop.f32.mrf.mxu0 }
 0x104   : > { %v556_v16 = vmax.f32 %v498_v12, 0.0  ;;  %v490_v17 = vadd.f32 %v489_v14, %v9610_v59  ;;  %v248_v14 = vld [vmem:[%s9670_s6 + $0x18] sm:$0xff] }
 0x105   : > { %v8461_v18 = vpop.f32.mrf.mxu0  ;;  %v9714_v19 = vpack.c.bf16 %v248_v14, %v248_v14 }
 0x106   : > { %v554_v20 = vmax.f32 %v490_v17, 0.0  ;;  %v584_v21 = vpack.c.bf16 %v556_v16, %v555_v13  ;;  %v511_v22 = vadd.f32 %v8461_v18, %v9610_v59 }
 0x107   : > { %v502_v23 = vpop.f32.mrf.mxu0 }
 0x108   : > { %v583_v25 = vpack.c.bf16 %v554_v20, %v553_v15  ;;  %v503_v26 = vadd.f32 %v502_v23, %v9610_v59  ;;  %v559_v30 = vmax.f32 %v511_v22, 0.0  ;;  %v251_v15 = vld [vmem:[%s9670_s6 + $0x30] sm:$0xff] }
 0x109   : > { %v8462_v28 = vpop.f32.mrf.mxu0  ;;  %v9716_v20 = vpack.c.bf16 %v251_v15, %v251_v15 }
 0x10a   : > { %8495 = vmatprep.mubr.msk.bf16.mxu0 %vm613_vm1, %v583_v25  ;;  %v514_v29 = vadd.f32 %v8462_v28, %v9610_v59  ;;  %v557_v33 = vmax.f32 %v503_v26, 0.0  ;;  %v253_v25 = vld [vmem:[%s9670_s6 + $0x40] sm:$0xff]  ;;  %v9732_v28 = vpack.c.bf16 %v250_v24, %v250_v24 }
 0x10b   : > { %8496 = vmatmul.mubr.msk.bf16.gmra.mxu0 %vm613_vm1, %v584_v21  ;;  %v505_v31 = vpop.f32.mrf.mxu0 }
 0x10c   : > { %v560_v34 = vmax.f32 %v514_v29, 0.0  ;;  %v506_v35 = vadd.f32 %v505_v31, %v9610_v59 }
 0x10e   : > { %v558_v37 = vmax.f32 %v506_v35, 0.0  ;;  %v586_v38 = vpack.c.bf16 %v560_v34, %v559_v30  ;;  %v9734_v30 = vpack.c.bf16 %v253_v25, %v253_v25  ;;  %v252_v34 = vld [vmem:[%s9670_s6 + $0x38] sm:$0xff]  ;;  %v255_v35 = vld [vmem:[%s9670_s6 + $0x50] sm:$0xff] }
 0x10f   : > { %v9750_v39 = vpack.c.bf16 %v252_v34, %v252_v34  ;;  %v9752_v40 = vpack.c.bf16 %v255_v35, %v255_v35 }
 0x110   : > { %v585_v41 = vpack.c.bf16 %v558_v37, %v557_v33 }
 0x112   : > { %8499 = vmatprep.mubr.msk.bf16.mxu0 %vm613_vm1, %v585_v41 }
 0x113   : > { %8500 = vmatmul.mubr.msk.bf16.gmra.mxu0 %vm613_vm1, %v586_v38 }
 0x114   : > { %8503 = vmatprep.mubr.msk.bf16.mxu0 %vm613_vm1, %v587_v42 }
 0x11b   : > { %8504 = vmatmul.mubr.msk.bf16.gmra.mxu0 %vm613_vm1, %v588_v45  ;;  %v257_v45 = vld [vmem:[%s9670_s6 + $0x60] sm:$0xff] }
 0x11c   : > { %8509 = vmatprep.mubr.msk.bf16.mxu0 %vm9501_vm2, %v9500_v46  ;;  %v9770_v50 = vpack.c.bf16 %v257_v45, %v257_v45 }
 0x1a3   : > { %v8477_v59 = vpop.f32.mrf.mxu0 }
 0x1a4   : > { %v825_v48 = vpack.c.bf16 %v8477_v59, %v8477_v59 }
 0x1a5   : > { %v696_v49 = vpop.f32.mrf.mxu0 }
 0x1a6   : > { %v953_v51 = vsel %vm859_vm3, %v825_v48, 0  ;;  %v823_v52 = vpack.c.bf16 %v696_v49, %v696_v49  ;;  %v9768_v48 = vpack.c.bf16 %v254_v44, %v254_v44  ;;  %v267_v44 = vld [vmem:[%s9670_s6 + $0xb0] sm:$0xff] }
 0x1a7   : > { %v8478_v55 = vpop.f32.mrf.mxu0  ;;  %8520 = vmatpush3.bf16.msra.mxu1 %v953_v51 }
 0x1a8   : > { %v861_v56 = vsel %vm859_vm3, %v823_v52, 0  ;;  %8531 = vmatprep.subr.bf16.mxu1 %v9500_v46  ;;  %v826_v6 = vpack.c.bf16 %v8478_v55, %v8478_v55 }
 0x1a9   : > { %v699_v60 = vpop.f32.mrf.mxu0  ;;  %8508 = vmatpush3.bf16.msra.mxu0 %v861_v56  ;;  %v256_v56 = vld [vmem:[%s9670_s6 + $0x58] sm:$0xff] }
 0x1aa   : > { %v824_v61 = vpack.c.bf16 %v699_v60, %v699_v60  ;;  %8513 = vmatprep.subr.bf16.mxu0 %v9500_v46  ;;  %8522 = vmatmul.mubr.msk.bf16.vlgmr.msra.gmra.mxu1 %vm855_vm4, %v9675_v54  ;;  %v999_v13 = vsel %vm859_vm3, %v826_v6, 0  ;;  %v259_v60 = vld [vmem:[%s9670_s6 + $0x70] sm:$0xff]  ;;  %v9786_v0 = vpack.c.bf16 %v256_v56, %v256_v56  ;;  %v261_v6 = vld [vmem:[%s9670_s6 + $0x80] sm:$0xff] }
 0x1ab   : > { %v8481_v62 = vpop.f32.mrf.mxu0  ;;  %8533 = vmatprep.mubr.msk.bf16.mxu1 %vm9501_vm2, %v9500_v46 }
 0x1ac   : > { %8510 = vmatmul.mubr.msk.bf16.vlgmr.msra.gmra.mxu0 %vm855_vm4, %v9678_v58  ;;  %v907_v63 = vsel %vm859_vm3, %v824_v61, 0  ;;  %v829_v4 = vpack.c.bf16 %v8481_v62, %v8481_v62 }
 0x1ad   : > { %8514 = vmatpush3.bf16.msra.mxu0 %v907_v63  ;;  %8515 = vmatprep.mubr.msk.bf16.mxu0 %vm9501_vm2, %v9500_v46  ;;  %v712_v1 = vpop.f32.mrf.mxu0 }
 0x1ae   : > { %8525 = vmatprep.subr.bf16.mxu0 %v9500_v46  ;;  %v827_v3 = vpack.c.bf16 %v712_v1, %v712_v1  ;;  %v1137_v11 = vsel %vm859_vm3, %v829_v4, 0  ;;  %v9788_v1 = vpack.c.bf16 %v259_v60, %v259_v60  ;;  %v266_v60 = vld [vmem:[%s9670_s6 + $0xa8] sm:$0xff] }
 0x1af   : > { %v8482_v5 = vpop.f32.mrf.mxu0 }
 0x1b0   : > { %v1045_v8 = vsel %vm859_vm3, %v827_v3, 0  ;;  %v830_v26 = vpack.c.bf16 %v8482_v5, %v8482_v5  ;;  %v258_v5 = vld [vmem:[%s9670_s6 + $0x68] sm:$0xff] }
 0x1b1   : > { %v715_v10 = vpop.f32.mrf.mxu0  ;;  %8532 = vmatpush3.bf16.msra.mxu1 %v1045_v8 }
 0x1b2   : > { %8543 = vmatprep.subr.bf16.mxu1 %v9500_v46  ;;  %v828_v16 = vpack.c.bf16 %v715_v10, %v715_v10  ;;  %v1183_v31 = vsel %vm859_vm3, %v830_v26, 0 }
 0x1b3   : > { %v8485_v12 = vpop.f32.mrf.mxu0 }
 0x1b4   : > { %8516 = vmatmul.mubr.msk.bf16.vlgmr.msra.gmra.mxu0 %vm855_vm4, %v9694_v7  ;;  %8534 = vmatmul.mubr.msk.bf16.vlgmr.msra.gmra.mxu1 %vm855_vm4, %v9697_v9  ;;  %v1091_v21 = vsel %vm859_vm3, %v828_v16, 0  ;;  %v833_v27 = vpack.c.bf16 %v8485_v12, %v8485_v12 }
 0x1b5   : > { %8526 = vmatpush3.bf16.msra.mxu0 %v999_v13  ;;  %8527 = vmatprep.mubr.msk.bf16.mxu0 %vm9501_vm2, %v9500_v46  ;;  %v728_v17 = vpop.f32.mrf.mxu0  ;;  %v9806_v13 = vpack.c.bf16 %v261_v6, %v261_v6 }
 0x1b6   : > { %8537 = vmatprep.subr.bf16.mxu0 %v9500_v46  ;;  %8544 = vmatpush3.bf16.msra.mxu1 %v1137_v11  ;;  %v831_v18 = vpack.c.bf16 %v728_v17, %v728_v17  ;;  %v1321_v33 = vsel %vm859_vm3, %v833_v27, 0  ;;  %v9804_v11 = vpack.c.bf16 %v258_v5, %v258_v5  ;;  %v260_v17 = vld [vmem:[%s9670_s6 + $0x78] sm:$0xff] }
 0x1b7   : > { %8545 = vmatprep.mubr.msk.bf16.mxu1 %vm9501_vm2, %v9500_v46  ;;  %8555 = vmatprep.subr.bf16.mxu1 %v9500_v46  ;;  %v8486_v23 = vpop.f32.mrf.mxu0  ;;  %v9822_v24 = vpack.c.bf16 %v260_v17, %v260_v17 }
 0x1b8   : > { %v1229_v22 = vsel %vm859_vm3, %v831_v18, 0  ;;  %v834_v59 = vpack.c.bf16 %v8486_v23, %v8486_v23  ;;  %v263_v18 = vld [vmem:[%s9670_s6 + $0x90] sm:$0xff] }
 0x1b9   : > { %v731_v29 = vpop.f32.mrf.mxu0  ;;  %v9824_v25 = vpack.c.bf16 %v263_v18, %v263_v18 }
 0x1ba   : > { %v832_v36 = vpack.c.bf16 %v731_v29, %v731_v29  ;;  %v1367_v51 = vsel %vm859_vm3, %v834_v59, 0 }
 0x1bb   : > { %v8489_v32 = vpop.f32.mrf.mxu0 }
 0x1bc   : > { %8528 = vmatmul.mubr.msk.bf16.vlgmr.msra.gmra.mxu0 %vm855_vm4, %v9714_v19  ;;  %8546 = vmatmul.mubr.msk.bf16.vlgmr.msra.gmra.mxu1 %vm855_vm4, %v9716_v20  ;;  %v1275_v41 = vsel %vm859_vm3, %v832_v36, 0  ;;  %v837_v47 = vpack.c.bf16 %v8489_v32, %v8489_v32  ;;  %v265_v32 = vld [vmem:[%s9670_s6 + $0xa0] sm:$0xff] }
 0x1bd   : > { %8538 = vmatpush3.bf16.msra.mxu0 %v1091_v21  ;;  %8539 = vmatprep.mubr.msk.bf16.mxu0 %vm9501_vm2, %v9500_v46  ;;  %v744_v37 = vpop.f32.mrf.mxu0 }
 0x1be   : > { %8549 = vmatprep.subr.bf16.mxu0 %v9500_v46  ;;  %8556 = vmatpush3.bf16.msra.mxu1 %v1229_v22  ;;  %v835_v38 = vpack.c.bf16 %v744_v37, %v744_v37  ;;  %v1505_v55 = vsel %vm859_vm3, %v837_v47, 0  ;;  %v9842_v37 = vpack.c.bf16 %v265_v32, %v265_v32 }
 0x1bf   : > { %8557 = vmatprep.mubr.msk.bf16.mxu1 %vm9501_vm2, %v9500_v46  ;;  %8567 = vmatprep.subr.bf16.mxu1 %v9500_v46  ;;  %v8490_v43 = vpop.f32.mrf.mxu0 }
 0x1c0   : > { %v1413_v42 = vsel %vm859_vm3, %v835_v38, 0  ;;  %v838_v8 = vpack.c.bf16 %v8490_v43, %v8490_v43  ;;  %v264_v43 = vld [vmem:[%s9670_s6 + $0x98] sm:$0xff] }
 0x1c1   : > { %v747_v49 = vpop.f32.mrf.mxu0 }
 0x1c2   : > { %v836_v61 = vpack.c.bf16 %v747_v49, %v747_v49  ;;  %v1551_v14 = vsel %vm859_vm3, %v838_v8, 0  ;;  %v9858_v49 = vpack.c.bf16 %v264_v43, %v264_v43  ;;  %v275_v43 = vld [vmem:[%s9670_s6 + $0xf0] sm:$0xff] }
 0x1c3   : > { %v8493_v52 = vpop.f32.mrf.mxu0 }
 0x1c4   : > { %8540 = vmatmul.mubr.msk.bf16.vlgmr.msra.gmra.mxu0 %vm855_vm4, %v9732_v28  ;;  %8558 = vmatmul.mubr.msk.bf16.vlgmr.msra.gmra.mxu1 %vm855_vm4, %v9734_v30  ;;  %v1459_v2 = vsel %vm859_vm3, %v836_v61, 0  ;;  %v841_v10 = vpack.c.bf16 %v8493_v52, %v8493_v52  ;;  %v269_v61 = vld [vmem:[%s9670_s6 + $0xc0] sm:$0xff] }
 0x1c5   : > { %8550 = vmatpush3.bf16.msra.mxu0 %v1183_v31  ;;  %8551 = vmatprep.mubr.msk.bf16.mxu0 %vm9501_vm2, %v9500_v46  ;;  %v760_v62 = vpop.f32.mrf.mxu0  ;;  %v262_v31 = vld [vmem:[%s9670_s6 + $0x88] sm:$0xff] }
 0x1c6   : > { %8561 = vmatprep.subr.bf16.mxu0 %v9500_v46  ;;  %8568 = vmatpush3.bf16.msra.mxu1 %v1321_v33  ;;  %v839_v63 = vpack.c.bf16 %v760_v62, %v760_v62  ;;  %v1689_v16 = vsel %vm859_vm3, %v841_v10, 0  ;;  %v9840_v35 = vpack.c.bf16 %v262_v31, %v262_v31  ;;  %v268_v10 = vld [vmem:[%s9670_s6 + $0xb8] sm:$0xff] }
 0x1c7   : > { %8569 = vmatprep.mubr.msk.bf16.mxu1 %vm9501_vm2, %v9500_v46  ;;  %8579 = vmatprep.subr.bf16.mxu1 %v9500_v46  ;;  %v8494_v4 = vpop.f32.mrf.mxu0  ;;  %v9894_v17 = vpack.c.bf16 %v268_v10, %v268_v10 }
 0x1c8   : > { %v1597_v3 = vsel %vm859_vm3, %v839_v63, 0  ;;  %v842_v33 = vpack.c.bf16 %v8494_v4, %v8494_v4  ;;  %v9878_v4 = vpack.c.bf16 %v269_v61, %v269_v61 }
 0x1c9   : > { %v763_v12 = vpop.f32.mrf.mxu0 }
 0x1ca   : > { %v840_v21 = vpack.c.bf16 %v763_v12, %v763_v12  ;;  %v1735_v38 = vsel %vm859_vm3, %v842_v33, 0  ;;  %v271_v12 = vld [vmem:[%s9670_s6 + $0xd0] sm:$0xff] }
 0x1cb   : > { %v8497_v15 = vpop.f32.mrf.mxu0  ;;  %v9896_v18 = vpack.c.bf16 %v271_v12, %v271_v12 }
 0x1cc   : > { %8552 = vmatmul.mubr.msk.bf16.vlgmr.msra.gmra.mxu0 %vm855_vm4, %v9750_v39  ;;  %8570 = vmatmul.mubr.msk.bf16.vlgmr.msra.gmra.mxu1 %vm855_vm4, %v9752_v40  ;;  %v1643_v26 = vsel %vm859_vm3, %v840_v21, 0  ;;  %v845_v34 = vpack.c.bf16 %v8497_v15, %v8497_v15 }
 0x1cd   : > { %8562 = vmatpush3.bf16.msra.mxu0 %v1275_v41  ;;  %8563 = vmatprep.mubr.msk.bf16.mxu0 %vm9501_vm2, %v9500_v46  ;;  %v776_v22 = vpop.f32.mrf.mxu0 }
 0x1ce   : > { %8573 = vmatprep.subr.bf16.mxu0 %v9500_v46  ;;  %8580 = vmatpush3.bf16.msra.mxu1 %v1413_v42  ;;  %v843_v23 = vpack.c.bf16 %v776_v22, %v776_v22  ;;  %v1873_v42 = vsel %vm859_vm3, %v845_v34, 0 }
 0x1cf   : > { %8581 = vmatprep.mubr.msk.bf16.mxu1 %vm9501_vm2, %v9500_v46  ;;  %8591 = vmatprep.subr.bf16.mxu1 %v9500_v46  ;;  %v8498_v29 = vpop.f32.mrf.mxu0 }
 0x1d0   : > { %v1781_v27 = vsel %vm859_vm3, %v843_v23, 0  ;;  %v846_v62 = vpack.c.bf16 %v8498_v29, %v8498_v29  ;;  %v270_v23 = vld [vmem:[%s9670_s6 + $0xc8] sm:$0xff] }
 0x1d1   : > { %v779_v36 = vpop.f32.mrf.mxu0  ;;  %v9912_v32 = vpack.c.bf16 %v270_v23, %v270_v23 }
 0x1d2   : > { %v844_v45 = vpack.c.bf16 %v779_v36, %v779_v36  ;;  %v1919_v5 = vsel %vm859_vm3, %v846_v62, 0 }
 0x1d3   : > { %v8501_v41 = vpop.f32.mrf.mxu0 }
 0x1d4   : > { %8564 = vmatmul.mubr.msk.bf16.vlgmr.msra.gmra.mxu0 %vm855_vm4, %v9768_v48  ;;  %8582 = vmatmul.mubr.msk.bf16.vlgmr.msra.gmra.mxu1 %vm855_vm4, %v9770_v50  ;;  %v1827_v52 = vsel %vm859_vm3, %v844_v45, 0  ;;  %v849_v63 = vpack.c.bf16 %v8501_v41, %v8501_v41  ;;  %v9258_v41 = vld [vmem:[%s11648_s2 + $0x80] ss:$8 sps:$4 sm:$0xff]  }
 0x1d5   : > { %8574 = vmatpush3.bf16.msra.mxu0 %v1367_v51  ;;  %8575 = vmatprep.mubr.msk.bf16.mxu0 %vm9501_vm2, %v9500_v46  ;;  %v792_v59 = vpop.f32.mrf.mxu0  ;;  %v9860_v51 = vpack.c.bf16 %v267_v44, %v267_v44 }
 0x1d6   : > { %8585 = vmatprep.subr.bf16.mxu0 %v9500_v46  ;;  %8592 = vmatpush3.bf16.msra.mxu1 %v1505_v55  ;;  %v847_v47 = vpack.c.bf16 %v792_v59, %v792_v59  ;;  %v2057_v8 = vsel %vm859_vm3, %v849_v63, 0  ;;  %v9934_v59 = vpack.c.bf16 %v275_v43, %v275_v43  ;;  %v9261_v63 = vld [vmem:[%s11648_s2 + $0x50] ss:$8 sps:$4 sm:$0xff]  }
 0x1d7   : > { %8593 = vmatprep.mubr.msk.bf16.mxu1 %vm9501_vm2, %v9500_v46  ;;  %8603 = vmatprep.subr.bf16.mxu1 %v9500_v46  ;;  %v8502_v56 = vpop.f32.mrf.mxu0 }
 0x1d8   : > { %v1965_v55 = vsel %vm859_vm3, %v847_v47, 0 }
 0x1dc   : > { %8576 = vmatmul.mubr.msk.bf16.vlgmr.msra.gmra.mxu0 %vm855_vm4, %v9786_v0  ;;  %8594 = vmatmul.mubr.msk.bf16.vlgmr.msra.gmra.mxu1 %vm855_vm4, %v9788_v1 }
 0x1dd   : > { %8586 = vmatpush3.bf16.msra.mxu0 %v1459_v2  ;;  %8587 = vmatprep.mubr.msk.bf16.mxu0 %vm9501_vm2, %v9500_v46  ;;  %v9876_v2 = vpack.c.bf16 %v266_v60, %v266_v60  ;;  %v9260_v60 = vld [vmem:[%s11648_s2 + $0x60] ss:$8 sps:$4 sm:$0xff]  }
 0x1de   : > { %8597 = vmatprep.subr.bf16.mxu0 %v9500_v46  ;;  %8604 = vmatpush3.bf16.msra.mxu1 %v1597_v3  ;;  %v795_v3 = vpop.f32.mrf.mxu0 }
 0x1df   : > { %8605 = vmatprep.mubr.msk.bf16.mxu1 %vm9501_vm2, %v9500_v46  ;;  %8615 = vmatprep.subr.bf16.mxu1 %v9500_v46 }
 0x1e0   : > { %v8505_v6 = vpop.f32.mrf.mxu0 }
 0x1e1   : > { %v853_v29 = vpack.c.bf16 %v8505_v6, %v8505_v6  ;;  %v2329_v6 = vld [vmem:[%s11648_s2 + $0x280] sm:$0x1] }
 0x1e2   : > { %v808_v15 = vpop.f32.mrf.mxu0  ;;  %v2330_v10 = vunpack.c.l.bf16 %v2329_v6 }
 0x1e3   : > { %v2241_v36 = vsel %vm859_vm3, %v853_v29, 0 }
 0x1e4   : > { %8588 = vmatmul.mubr.msk.bf16.vlgmr.msra.gmra.mxu0 %vm855_vm4, %v9804_v11  ;;  %8606 = vmatmul.mubr.msk.bf16.vlgmr.msra.gmra.mxu1 %vm855_vm4, %v9806_v13  ;;  %v8506_v31 = vpop.f32.mrf.mxu0 }
 0x1e5   : > { %8598 = vmatpush3.bf16.msra.mxu0 %v1551_v14  ;;  %8599 = vmatprep.mubr.msk.bf16.mxu0 %vm9501_vm2, %v9500_v46  ;;  %v848_v14 = vpack.c.bf16 %v795_v3, %v795_v3  ;;  %v276_v3 = vld [vmem:[%s9670_s6 + $0xf8] sm:$0xff] }
 0x1e6   : > { %8609 = vmatprep.subr.bf16.mxu0 %v9500_v46  ;;  %8616 = vmatpush3.bf16.msra.mxu1 %v1689_v16  ;;  %v851_v16 = vpack.c.bf16 %v808_v15, %v808_v15 }
 0x1e7   : > { %8617 = vmatprep.mubr.msk.bf16.mxu1 %vm9501_vm2, %v9500_v46  ;;  %8627 = vmatprep.subr.bf16.mxu1 %v9500_v46  ;;  %v2011_v21 = vsel %vm859_vm3, %v848_v14, 0 }
 0x1e8   : > { %v2149_v22 = vsel %vm859_vm3, %v851_v16, 0 }
 0x1ec   : > { %8600 = vmatmul.mubr.msk.bf16.vlgmr.msra.gmra.mxu0 %vm855_vm4, %v9822_v24  ;;  %8618 = vmatmul.mubr.msk.bf16.vlgmr.msra.gmra.mxu1 %vm855_vm4, %v9824_v25 }
 0x1ed   : > { %8610 = vmatpush3.bf16.msra.mxu0 %v1643_v26  ;;  %8611 = vmatprep.mubr.msk.bf16.mxu0 %vm9501_vm2, %v9500_v46  ;;  %v273_v26 = vld [vmem:[%s9670_s6 + $0xe0] sm:$0xff] }
 0x1ee   : > { %8621 = vmatprep.subr.bf16.mxu0 %v9500_v46  ;;  %8628 = vmatpush3.bf16.msra.mxu1 %v1781_v27  ;;  %v850_v27 = vpack.c.bf16 %v8502_v56, %v8502_v56  ;;  %v9914_v33 = vpack.c.bf16 %v273_v26, %v273_v26  ;;  %v854_v56 = vpack.c.bf16 %v8506_v31, %v8506_v31 }
 0x1ef   : > { %8629 = vmatprep.mubr.msk.bf16.mxu1 %vm9501_vm2, %v9500_v46  ;;  %8639 = vmatprep.subr.bf16.mxu1 %v9500_v46 }
 0x1f0   : > { %v2103_v34 = vsel %vm859_vm3, %v850_v27, 0  ;;  %v2287_v62 = vsel %vm859_vm3, %v854_v56, 0 }
 0x1f4   : > { %8612 = vmatmul.mubr.msk.bf16.vlgmr.msra.gmra.mxu0 %vm855_vm4, %v9840_v35  ;;  %8630 = vmatmul.mubr.msk.bf16.vlgmr.msra.gmra.mxu1 %vm855_vm4, %v9842_v37 }
 0x1f5   : > { %8622 = vmatpush3.bf16.msra.mxu0 %v1735_v38  ;;  %8623 = vmatprep.mubr.msk.bf16.mxu0 %vm9501_vm2, %v9500_v46  ;;  %v811_v38 = vpop.f32.mrf.mxu0 }
 0x1f6   : > { %8633 = vmatprep.subr.bf16.mxu0 %v9500_v46  ;;  %8640 = vmatpush3.bf16.msra.mxu1 %v1873_v42  ;;  %v272_v42 = vld [vmem:[%s9670_s6 + $0xd8] sm:$0xff]  ;;  %v852_v44 = vpack.c.bf16 %v811_v38, %v811_v38 }
 0x1f7   : > { %8641 = vmatprep.mubr.msk.bf16.mxu1 %vm9501_vm2, %v9500_v46  ;;  %8651 = vmatprep.subr.bf16.mxu1 %v9500_v46  ;;  %v9932_v45 = vpack.c.bf16 %v272_v42, %v272_v42 }
 0x1f8   : > { %v2195_v47 = vsel %vm859_vm3, %v852_v44, 0 }
 0x1fc   : > { %8624 = vmatmul.mubr.msk.bf16.vlgmr.msra.gmra.mxu0 %vm855_vm4, %v9858_v49  ;;  %8642 = vmatmul.mubr.msk.bf16.vlgmr.msra.gmra.mxu1 %vm855_vm4, %v9860_v51 }
 0x1fd   : > { %8634 = vmatpush3.bf16.msra.mxu0 %v1827_v52  ;;  %8635 = vmatprep.mubr.msk.bf16.mxu0 %vm9501_vm2, %v9500_v46  ;;  %v9259_v52 = vld [vmem:[%s11648_s2 + $0x70] ss:$8 sps:$4 sm:$0xff]  }
 0x1fe   : > { %8645 = vmatprep.subr.bf16.mxu0 %v9500_v46  ;;  %8652 = vmatpush3.bf16.msra.mxu1 %v1965_v55  ;;  %v274_v55 = vld [vmem:[%s9670_s6 + $0xe8] sm:$0xff] }
 0x1ff   : > { %8653 = vmatprep.mubr.msk.bf16.mxu1 %vm9501_vm2, %v9500_v46  ;;  %8663 = vmatprep.subr.bf16.mxu1 %v9500_v46  ;;  %v9951_v61 = vpack.c.bf16 %v274_v55, %v274_v55 }
 0x204   : > { %8636 = vmatmul.mubr.msk.bf16.vlgmr.msra.gmra.mxu0 %vm855_vm4, %v9876_v2  ;;  %8654 = vmatmul.mubr.msk.bf16.vlgmr.msra.gmra.mxu1 %vm855_vm4, %v9878_v4 }
 0x205   : > { %8646 = vmatpush3.bf16.msra.mxu0 %v1919_v5  ;;  %8647 = vmatprep.mubr.msk.bf16.mxu0 %vm9501_vm2, %v9500_v46  ;;  %v9963_v5 = vpack.c.bf16 %v276_v3, %v276_v3 }
 0x206   : > { %8657 = vmatprep.subr.bf16.mxu0 %v9500_v46  ;;  %8664 = vmatpush3.bf16.msra.mxu1 %v2057_v8 }
 0x207   : > { %8665 = vmatprep.mubr.msk.bf16.mxu1 %vm9501_vm2, %v9500_v46  ;;  %8675 = vmatprep.subr.bf16.mxu1 %v9500_v46 }
 0x20c   : > { %8648 = vmatmul.mubr.msk.bf16.vlgmr.msra.gmra.mxu0 %vm855_vm4, %v9894_v17  ;;  %8666 = vmatmul.mubr.msk.bf16.vlgmr.msra.gmra.mxu1 %vm855_vm4, %v9896_v18 }
 0x20d   : > { %8658 = vmatpush3.bf16.msra.mxu0 %v2011_v21  ;;  %8659 = vmatprep.mubr.msk.bf16.mxu0 %vm9501_vm2, %v9500_v46  ;;  %v9974_v21 = vrot.slane %v2330_v10, %v9607_v57 }
 0x20e   : > { %8669 = vmatprep.subr.bf16.mxu0 %v9500_v46  ;;  %8676 = vmatpush3.bf16.msra.mxu1 %v2149_v22 }
 0x20f   : > { %8677 = vmatprep.mubr.msk.bf16.mxu1 %vm9501_vm2, %v9500_v46  ;;  %8687 = vmatprep.subr.bf16.mxu1 %v9500_v46 }
 0x214   : > { %8660 = vmatmul.mubr.msk.bf16.vlgmr.msra.gmra.mxu0 %vm855_vm4, %v9912_v32  ;;  %8678 = vmatmul.mubr.msk.bf16.vlgmr.msra.gmra.mxu1 %vm855_vm4, %v9914_v33 }
 0x215   : > { %8670 = vmatpush3.bf16.msra.mxu0 %v2103_v34  ;;  %8671 = vmatprep.mubr.msk.bf16.mxu0 %vm9501_vm2, %v9500_v46 }
 0x216   : > { %8681 = vmatprep.subr.bf16.mxu0 %v9500_v46  ;;  %8688 = vmatpush3.bf16.msra.mxu1 %v2241_v36 }
 0x217   : > { %8689 = vmatprep.mubr.msk.bf16.mxu1 %vm9501_vm2, %v9500_v46  ;;  %8699 = vmatprep.subr.bf16.mxu1 %v9258_v41 }
 0x21c   : > { %8672 = vmatmul.mubr.msk.bf16.vlgmr.msra.gmra.mxu0 %vm855_vm4, %v9932_v45  ;;  %8690 = vmatmul.mubr.msk.bf16.vlgmr.msra.gmra.mxu1 %vm855_vm4, %v9934_v59 }
 0x21d   : > { %8682 = vmatpush3.bf16.msra.mxu0 %v2195_v47  ;;  %8683 = vmatprep.mubr.msk.bf16.mxu0 %vm9501_vm2, %v9500_v46 }
 0x21e   : > { %8693 = vmatprep.subr.bf16.mxu0 %v9500_v46  ;;  %8700 = vmatpush3.bf16.msra.mxu1 %v9258_v41 }
 0x21f   : > { %8701 = vmatprep.subr.bf16.mxu1 %v9259_v52 }
 0x222   : > { %8702 = vmatpush3.bf16.msra.mxu1 %v9259_v52 }
 0x223   : > { %8703 = vmatprep.subr.bf16.mxu1 %v9260_v60 }
 0x224   : > { %8684 = vmatmul.mubr.msk.bf16.vlgmr.msra.gmra.mxu0 %vm855_vm4, %v9951_v61 }
 0x225   : > { %8694 = vmatpush3.bf16.msra.mxu0 %v2287_v62  ;;  %8695 = vmatprep.mubr.msk.bf16.mxu0 %vm9501_vm2, %v9500_v46 }
 0x226   : > { %8704 = vmatpush3.bf16.msra.mxu1 %v9260_v60  ;;  %8739 = vmatprep.subr.bf16.mxu0 %v9500_v46 }
 0x227   : > { %8705 = vmatprep.subr.bf16.mxu1 %v9261_v63 }
 0x22a   : > { %8706 = vmatpush3.bf16.msra.mxu1 %v9261_v63 }
 0x22b   : > { %8793 = vmatprep.subr.bf16.mxu1 %v9500_v46 }
 0x22c   : > { %8696 = vmatmul.mubr.msk.bf16.vlgmr.msra.gmra.mxu0 %vm855_vm4, %v9963_v5 }
 0x22d   : > { %8741 = vmatprep.mubr.msk.bf16.mxu0 %vm9501_vm2, %v9500_v46 }
 0x26a   : > { %v989_v8 = vpop.f32.mrf.mxu1 }
 0x26b   : > { %v2337_v52 = vadd.f32 %v9974_v21, %v989_v8 }
 0x26c   : > { %v897_v12 = vpop.f32.mrf.mxu0  ;;  %v8523_v14 = vpop.f32.mrf.mxu1 }
 0x26d   : > { %v2335_v27 = vadd.f32 %v9974_v21, %v897_v12  ;;  %v2369_v63 = vmax.f32 %v2337_v52, 0.0 }
 0x26e   : > { %v8511_v15 = vpop.f32.mrf.mxu0  ;;  %v992_v16 = vpop.f32.mrf.mxu1 }
 0x26f   : > { %v2367_v41 = vmax.f32 %v2335_v27, 0.0 }
 0x270   : > { %v900_v22 = vpop.f32.mrf.mxu0  ;;  %v8524_v23 = vpop.f32.mrf.mxu1 }
 0x272   : > { %v8512_v26 = vpop.f32.mrf.mxu0 }
 0x274   : > { %v943_v29 = vpop.f32.mrf.mxu0  ;;  %v1081_v31 = vpop.f32.mrf.mxu1 }
 0x275   : > { %v2336_v34 = vadd.f32 %v9974_v21, %v943_v29  ;;  %v2339_v22 = vadd.f32 %v9974_v21, %v1081_v31 }
 0x276   : > { %v8517_v36 = vpop.f32.mrf.mxu0  ;;  %v8535_v38 = vpop.f32.mrf.mxu1 }
 0x277   : > { %v2368_v42 = vmax.f32 %v2336_v34, 0.0  ;;  %v2371_v29 = vmax.f32 %v2339_v22, 0.0 }
 0x278   : > { %v946_v43 = vpop.f32.mrf.mxu0  ;;  %v1084_v44 = vpop.f32.mrf.mxu1 }
 0x279   : > { %v2407_v47 = vpack.c.bf16 %v2368_v42, %v2367_v41 }
 0x27a   : > { %v8518_v55 = vpop.f32.mrf.mxu0  ;;  %v8536_v56 = vpop.f32.mrf.mxu1 }
 0x27b   : > { %8707 = vmatprep.mubr.msk.bf16.mxu1 %vm613_vm1, %v2407_v47 }
 0x27c   : > { %v1035_v60 = vpop.f32.mrf.mxu0  ;;  %v1173_v62 = vpop.f32.mrf.mxu1 }
 0x27d   : > { %v2338_v3 = vadd.f32 %v9974_v21, %v1035_v60  ;;  %v2341_v47 = vadd.f32 %v9974_v21, %v1173_v62 }
 0x27e   : > { %v8529_v6 = vpop.f32.mrf.mxu0  ;;  %v8547_v10 = vpop.f32.mrf.mxu1 }
 0x27f   : > { %v2370_v12 = vmax.f32 %v2338_v3, 0.0  ;;  %v2373_v60 = vmax.f32 %v2341_v47, 0.0 }
 0x280   : > { %v1038_v14 = vpop.f32.mrf.mxu0  ;;  %v1176_v15 = vpop.f32.mrf.mxu1 }
 0x281   : > { %v2408_v16 = vpack.c.bf16 %v2370_v12, %v2369_v63 }
 0x282   : > { %v8530_v23 = vpop.f32.mrf.mxu0  ;;  %v8548_v26 = vpop.f32.mrf.mxu1 }
 0x283   : > { %8708 = vmatmul.mubr.msk.bf16.vlgmr.msra.gmra.mxu1 %vm613_vm1, %v2408_v16 }
 0x284   : > { %v1127_v8 = vpop.f32.mrf.mxu0  ;;  %v1265_v27 = vpop.f32.mrf.mxu1 }
 0x285   : > { %v2340_v34 = vadd.f32 %v9974_v21, %v1127_v8  ;;  %v2343_v16 = vadd.f32 %v9974_v21, %v1265_v27 }
 0x286   : > { %v8541_v36 = vpop.f32.mrf.mxu0  ;;  %v8559_v38 = vpop.f32.mrf.mxu1 }
 0x287   : > { %v2372_v41 = vmax.f32 %v2340_v34, 0.0  ;;  %v2375_v8 = vmax.f32 %v2343_v16, 0.0 }
 0x288   : > { %v1130_v42 = vpop.f32.mrf.mxu0  ;;  %v1268_v43 = vpop.f32.mrf.mxu1 }
 0x289   : > { %v2409_v44 = vpack.c.bf16 %v2372_v41, %v2371_v29 }
 0x28a   : > { %v8542_v52 = vpop.f32.mrf.mxu0  ;;  %v8560_v55 = vpop.f32.mrf.mxu1 }
 0x28b   : > { %8711 = vmatprep.mubr.msk.bf16.mxu1 %vm613_vm1, %v2409_v44 }
 0x28c   : > { %v1219_v31 = vpop.f32.mrf.mxu0  ;;  %v1357_v56 = vpop.f32.mrf.mxu1 }
 0x28d   : > { %v2342_v63 = vadd.f32 %v9974_v21, %v1219_v31  ;;  %v2345_v44 = vadd.f32 %v9974_v21, %v1357_v56 }
 0x28e   : > { %v8553_v3 = vpop.f32.mrf.mxu0  ;;  %v8571_v6 = vpop.f32.mrf.mxu1 }
 0x28f   : > { %v2374_v10 = vmax.f32 %v2342_v63, 0.0  ;;  %v2377_v31 = vmax.f32 %v2345_v44, 0.0 }
 0x290   : > { %v1222_v12 = vpop.f32.mrf.mxu0  ;;  %v1360_v14 = vpop.f32.mrf.mxu1 }
 0x291   : > { %v2410_v15 = vpack.c.bf16 %v2374_v10, %v2373_v60 }
 0x292   : > { %v8554_v22 = vpop.f32.mrf.mxu0  ;;  %v8572_v23 = vpop.f32.mrf.mxu1 }
 0x293   : > { %8712 = vmatmul.mubr.msk.bf16.gmra.mxu1 %vm613_vm1, %v2410_v15 }
 0x294   : > { %v1311_v62 = vpop.f32.mrf.mxu0  ;;  %v1449_v26 = vpop.f32.mrf.mxu1 }
 0x295   : > { %v2344_v29 = vadd.f32 %v9974_v21, %v1311_v62  ;;  %v2347_v15 = vadd.f32 %v9974_v21, %v1449_v26 }
 0x296   : > { %v8565_v34 = vpop.f32.mrf.mxu0  ;;  %v8583_v36 = vpop.f32.mrf.mxu1 }
 0x297   : > { %v2376_v38 = vmax.f32 %v2344_v29, 0.0  ;;  %v2379_v62 = vmax.f32 %v2347_v15, 0.0 }
 0x298   : > { %v1314_v41 = vpop.f32.mrf.mxu0  ;;  %v1452_v42 = vpop.f32.mrf.mxu1 }
 0x299   : > { %v2411_v43 = vpack.c.bf16 %v2376_v38, %v2375_v8 }
 0x29a   : > { %v8566_v47 = vpop.f32.mrf.mxu0  ;;  %v8584_v52 = vpop.f32.mrf.mxu1 }
 0x29b   : > { %8715 = vmatprep.mubr.msk.bf16.mxu1 %vm613_vm1, %v2411_v43 }
 0x29c   : > { %v1403_v27 = vpop.f32.mrf.mxu0  ;;  %v1541_v55 = vpop.f32.mrf.mxu1 }
 0x29d   : > { %v2346_v60 = vadd.f32 %v9974_v21, %v1403_v27  ;;  %v2349_v43 = vadd.f32 %v9974_v21, %v1541_v55 }
 0x29e   : > { %v8577_v63 = vpop.f32.mrf.mxu0  ;;  %v8595_v3 = vpop.f32.mrf.mxu1 }
 0x29f   : > { %v2378_v6 = vmax.f32 %v2346_v60, 0.0  ;;  %v2381_v27 = vmax.f32 %v2349_v43, 0.0 }
 0x2a0   : > { %v1406_v10 = vpop.f32.mrf.mxu0  ;;  %v1544_v12 = vpop.f32.mrf.mxu1 }
 0x2a1   : > { %v2412_v14 = vpack.c.bf16 %v2378_v6, %v2377_v31 }
 0x2a2   : > { %v8578_v16 = vpop.f32.mrf.mxu0  ;;  %v8596_v22 = vpop.f32.mrf.mxu1 }
 0x2a3   : > { %8716 = vmatmul.mubr.msk.bf16.gmra.mxu1 %vm613_vm1, %v2412_v14 }
 0x2a4   : > { %v1495_v56 = vpop.f32.mrf.mxu0  ;;  %v1633_v23 = vpop.f32.mrf.mxu1 }
 0x2a5   : > { %v2348_v8 = vadd.f32 %v9974_v21, %v1495_v56  ;;  %v2351_v14 = vadd.f32 %v9974_v21, %v1633_v23 }
 0x2a6   : > { %v8589_v29 = vpop.f32.mrf.mxu0  ;;  %v8607_v34 = vpop.f32.mrf.mxu1 }
 0x2a7   : > { %v2380_v36 = vmax.f32 %v2348_v8, 0.0  ;;  %v2383_v56 = vmax.f32 %v2351_v14, 0.0 }
 0x2a8   : > { %v1498_v38 = vpop.f32.mrf.mxu0  ;;  %v1636_v41 = vpop.f32.mrf.mxu1 }
 0x2a9   : > { %v2413_v42 = vpack.c.bf16 %v2380_v36, %v2379_v62 }
 0x2aa   : > { %v8590_v44 = vpop.f32.mrf.mxu0  ;;  %v8608_v47 = vpop.f32.mrf.mxu1 }
 0x2ab   : > { %8719 = vmatprep.mubr.msk.bf16.mxu1 %vm613_vm1, %v2413_v42 }
 0x2ac   : > { %v1587_v26 = vpop.f32.mrf.mxu0  ;;  %v1725_v52 = vpop.f32.mrf.mxu1 }
 0x2ad   : > { %v2350_v31 = vadd.f32 %v9974_v21, %v1587_v26  ;;  %v2353_v42 = vadd.f32 %v9974_v21, %v1725_v52 }
 0x2ae   : > { %v8601_v60 = vpop.f32.mrf.mxu0  ;;  %v8619_v63 = vpop.f32.mrf.mxu1 }
 0x2af   : > { %v2382_v3 = vmax.f32 %v2350_v31, 0.0  ;;  %v2385_v26 = vmax.f32 %v2353_v42, 0.0 }
 0x2b0   : > { %v1590_v6 = vpop.f32.mrf.mxu0  ;;  %v1728_v10 = vpop.f32.mrf.mxu1 }
 0x2b1   : > { %v2414_v12 = vpack.c.bf16 %v2382_v3, %v2381_v27 }
 0x2b2   : > { %v8602_v15 = vpop.f32.mrf.mxu0  ;;  %v8620_v16 = vpop.f32.mrf.mxu1 }
 0x2b3   : > { %8720 = vmatmul.mubr.msk.bf16.gmra.mxu1 %vm613_vm1, %v2414_v12 }
 0x2b4   : > { %v1679_v55 = vpop.f32.mrf.mxu0  ;;  %v1817_v22 = vpop.f32.mrf.mxu1 }
 0x2b5   : > { %v2352_v62 = vadd.f32 %v9974_v21, %v1679_v55  ;;  %v2355_v12 = vadd.f32 %v9974_v21, %v1817_v22 }
 0x2b6   : > { %v8613_v8 = vpop.f32.mrf.mxu0  ;;  %v8631_v29 = vpop.f32.mrf.mxu1 }
 0x2b7   : > { %v2384_v34 = vmax.f32 %v2352_v62, 0.0  ;;  %v2387_v55 = vmax.f32 %v2355_v12, 0.0 }
 0x2b8   : > { %v1682_v36 = vpop.f32.mrf.mxu0  ;;  %v1820_v38 = vpop.f32.mrf.mxu1 }
 0x2b9   : > { %v2415_v41 = vpack.c.bf16 %v2384_v34, %v2383_v56 }
 0x2ba   : > { %v8614_v43 = vpop.f32.mrf.mxu0  ;;  %v8632_v44 = vpop.f32.mrf.mxu1 }
 0x2bb   : > { %8723 = vmatprep.mubr.msk.bf16.mxu1 %vm613_vm1, %v2415_v41 }
 0x2bc   : > { %v1771_v23 = vpop.f32.mrf.mxu0  ;;  %v1909_v47 = vpop.f32.mrf.mxu1 }
 0x2bd   : > { %v2354_v27 = vadd.f32 %v9974_v21, %v1771_v23  ;;  %v2357_v41 = vadd.f32 %v9974_v21, %v1909_v47 }
 0x2be   : > { %v8625_v31 = vpop.f32.mrf.mxu0  ;;  %v8643_v60 = vpop.f32.mrf.mxu1 }
 0x2bf   : > { %v2386_v63 = vmax.f32 %v2354_v27, 0.0  ;;  %v2389_v23 = vmax.f32 %v2357_v41, 0.0 }
 0x2c0   : > { %v1774_v3 = vpop.f32.mrf.mxu0  ;;  %v1912_v6 = vpop.f32.mrf.mxu1 }
 0x2c1   : > { %v2416_v10 = vpack.c.bf16 %v2386_v63, %v2385_v26 }
 0x2c2   : > { %v8626_v14 = vpop.f32.mrf.mxu0  ;;  %v8644_v15 = vpop.f32.mrf.mxu1 }
 0x2c3   : > { %8724 = vmatmul.mubr.msk.bf16.gmra.mxu1 %vm613_vm1, %v2416_v10 }
 0x2c4   : > { %v1863_v52 = vpop.f32.mrf.mxu0  ;;  %v2001_v16 = vpop.f32.mrf.mxu1 }
 0x2c5   : > { %v2356_v56 = vadd.f32 %v9974_v21, %v1863_v52  ;;  %v2359_v10 = vadd.f32 %v9974_v21, %v2001_v16 }
 0x2c6   : > { %v8637_v62 = vpop.f32.mrf.mxu0  ;;  %v8655_v8 = vpop.f32.mrf.mxu1 }
 0x2c7   : > { %v2388_v29 = vmax.f32 %v2356_v56, 0.0  ;;  %v2391_v52 = vmax.f32 %v2359_v10, 0.0 }
 0x2c8   : > { %v1866_v34 = vpop.f32.mrf.mxu0  ;;  %v2004_v36 = vpop.f32.mrf.mxu1 }
 0x2c9   : > { %v2417_v38 = vpack.c.bf16 %v2388_v29, %v2387_v55 }
 0x2ca   : > { %v8638_v42 = vpop.f32.mrf.mxu0  ;;  %v8656_v43 = vpop.f32.mrf.mxu1 }
 0x2cb   : > { %8727 = vmatprep.mubr.msk.bf16.mxu1 %vm613_vm1, %v2417_v38 }
 0x2cc   : > { %v1955_v22 = vpop.f32.mrf.mxu0  ;;  %v2093_v44 = vpop.f32.mrf.mxu1 }
 0x2cd   : > { %v2358_v26 = vadd.f32 %v9974_v21, %v1955_v22  ;;  %v2361_v38 = vadd.f32 %v9974_v21, %v2093_v44 }
 0x2ce   : > { %v8649_v27 = vpop.f32.mrf.mxu0  ;;  %v8667_v31 = vpop.f32.mrf.mxu1 }
 0x2cf   : > { %v2390_v60 = vmax.f32 %v2358_v26, 0.0  ;;  %v2393_v22 = vmax.f32 %v2361_v38, 0.0 }
 0x2d0   : > { %v1958_v63 = vpop.f32.mrf.mxu0  ;;  %v2096_v3 = vpop.f32.mrf.mxu1 }
 0x2d1   : > { %v2418_v6 = vpack.c.bf16 %v2390_v60, %v2389_v23 }
 0x2d2   : > { %v8650_v12 = vpop.f32.mrf.mxu0  ;;  %v8668_v14 = vpop.f32.mrf.mxu1 }
 0x2d3   : > { %8728 = vmatmul.mubr.msk.bf16.gmra.mxu1 %vm613_vm1, %v2418_v6 }
 0x2d4   : > { %v2047_v47 = vpop.f32.mrf.mxu0  ;;  %v2185_v15 = vpop.f32.mrf.mxu1 }
 0x2d5   : > { %v2360_v55 = vadd.f32 %v9974_v21, %v2047_v47  ;;  %v2363_v6 = vadd.f32 %v9974_v21, %v2185_v15 }
 0x2d6   : > { %v8661_v56 = vpop.f32.mrf.mxu0  ;;  %v8679_v62 = vpop.f32.mrf.mxu1 }
 0x2d7   : > { %v2392_v8 = vmax.f32 %v2360_v55, 0.0  ;;  %v2395_v14 = vmax.f32 %v2363_v6, 0.0 }
 0x2d8   : > { %v2050_v29 = vpop.f32.mrf.mxu0  ;;  %v2188_v34 = vpop.f32.mrf.mxu1 }
 0x2d9   : > { %v2419_v36 = vpack.c.bf16 %v2392_v8, %v2391_v52 }
 0x2da   : > { %v8662_v41 = vpop.f32.mrf.mxu0  ;;  %v8680_v42 = vpop.f32.mrf.mxu1 }
 0x2db   : > { %8731 = vmatprep.mubr.msk.bf16.mxu1 %vm613_vm1, %v2419_v36 }
 0x2dc   : > { %v2139_v16 = vpop.f32.mrf.mxu0  ;;  %v2277_v43 = vpop.f32.mrf.mxu1 }
 0x2dd   : > { %v2362_v23 = vadd.f32 %v9974_v21, %v2139_v16  ;;  %v2365_v8 = vadd.f32 %v9974_v21, %v2277_v43 }
 0x2de   : > { %v8673_v26 = vpop.f32.mrf.mxu0  ;;  %v8691_v27 = vpop.f32.mrf.mxu1 }
 0x2df   : > { %v2394_v31 = vmax.f32 %v2362_v23, 0.0  ;;  %v2397_v36 = vmax.f32 %v2365_v8, 0.0 }
 0x2e0   : > { %v2142_v60 = vpop.f32.mrf.mxu0  ;;  %v2280_v63 = vpop.f32.mrf.mxu1 }
 0x2e1   : > { %v2420_v3 = vpack.c.bf16 %v2394_v31, %v2393_v22 }
 0x2e2   : > { %v8674_v10 = vpop.f32.mrf.mxu0  ;;  %v8692_v12 = vpop.f32.mrf.mxu1 }
 0x2e3   : > { %8732 = vmatmul.mubr.msk.bf16.gmra.mxu1 %vm613_vm1, %v2420_v3 }
 0x2e4   : > { %v2231_v44 = vpop.f32.mrf.mxu0 }
 0x2e5   : > { %v2364_v47 = vadd.f32 %v9974_v21, %v2231_v44 }
 0x2e6   : > { %v8685_v52 = vpop.f32.mrf.mxu0 }
 0x2e7   : > { %v2396_v55 = vmax.f32 %v2364_v47, 0.0 }
 0x2e8   : > { %v2234_v56 = vpop.f32.mrf.mxu0 }
 0x2e9   : > { %v2421_v62 = vpack.c.bf16 %v2396_v55, %v2395_v14 }
 0x2ea   : > { %v8686_v29 = vpop.f32.mrf.mxu0 }
 0x2eb   : > { %8735 = vmatprep.mubr.msk.bf16.mxu1 %vm613_vm1, %v2421_v62 }
 0x2ec   : > { %v2323_v34 = vpop.f32.mrf.mxu0 }
 0x2ed   : > { %v2366_v15 = vadd.f32 %v9974_v21, %v2323_v34 }
 0x2ee   : > { %v8697_v38 = vpop.f32.mrf.mxu0 }
 0x2ef   : > { %v2398_v41 = vmax.f32 %v2366_v15, 0.0 }
 0x2f0   : > { %v2326_v42 = vpop.f32.mrf.mxu0 }
 0x2f1   : > { %v2422_v16 = vpack.c.bf16 %v2398_v41, %v2397_v36 }
 0x2f2   : > { %v8698_v22 = vpop.f32.mrf.mxu0 }
 0x2f3   : > { %8736 = vmatmul.mubr.msk.bf16.gmra.mxu1 %vm613_vm1, %v2422_v16 }
 0x2f4   : > { %8795 = vmatprep.mubr.msk.bf16.mxu1 %vm9501_vm2, %v9500_v46 }
 0x343   : > { %v8709_v23 = vpop.f32.mrf.mxu1 }
 0x344   : > { %v2658_v3 = vpack.c.bf16 %v8709_v23, %v8709_v23 }
 0x345   : > { %v2529_v26 = vpop.f32.mrf.mxu1 }
 0x346   : > { %v2656_v43 = vpack.c.bf16 %v2529_v26, %v2529_v26  ;;  %v2775_v6 = vsel %vm859_vm3, %v2658_v3, 0 }
 0x347   : > { %v8710_v27 = vpop.f32.mrf.mxu1 }
 0x348   : > { %v2689_v31 = vsel %vm859_vm3, %v2656_v43, 0  ;;  %v2659_v12 = vpack.c.bf16 %v8710_v27, %v8710_v27 }
 0x349   : > { %8740 = vmatpush3.bf16.msra.mxu0 %v2689_v31  ;;  %v2532_v60 = vpop.f32.mrf.mxu1 }
 0x34a   : > { %v2657_v63 = vpack.c.bf16 %v2532_v60, %v2532_v60  ;;  %8745 = vmatprep.subr.bf16.mxu0 %v9500_v46  ;;  %v2818_v14 = vsel %vm859_vm3, %v2659_v12, 0 }
 0x34c   : > { %8742 = vmatmul.mubr.msk.bf16.vlgmr.msra.gmra.mxu0 %vm855_vm4, %v9678_v58  ;;  %v2732_v21 = vsel %vm859_vm3, %v2657_v63, 0 }
 0x34d   : > { %8746 = vmatpush3.bf16.msra.mxu0 %v2732_v21  ;;  %8747 = vmatprep.mubr.msk.bf16.mxu0 %vm9501_vm2, %v9500_v46 }
 0x34e   : > { %8751 = vmatprep.subr.bf16.mxu0 %v9500_v46 }
 0x353   : > { %v8713_v10 = vpop.f32.mrf.mxu1 }
 0x354   : > { %8748 = vmatmul.mubr.msk.bf16.vlgmr.msra.gmra.mxu0 %vm855_vm4, %v9694_v7  ;;  %v2662_v22 = vpack.c.bf16 %v8713_v10, %v8713_v10 }
 0x355   : > { %8752 = vmatpush3.bf16.msra.mxu0 %v2775_v6  ;;  %8753 = vmatprep.mubr.msk.bf16.mxu0 %vm9501_vm2, %v9500_v46  ;;  %v2545_v44 = vpop.f32.mrf.mxu1 }
 0x356   : > { %8757 = vmatprep.subr.bf16.mxu0 %v9500_v46  ;;  %v2660_v52 = vpack.c.bf16 %v2545_v44, %v2545_v44  ;;  %v2947_v26 = vsel %vm859_vm3, %v2662_v22, 0 }
 0x357   : > { %v8714_v47 = vpop.f32.mrf.mxu1 }
 0x358   : > { %v2861_v56 = vsel %vm859_vm3, %v2660_v52, 0  ;;  %v2663_v31 = vpack.c.bf16 %v8714_v47, %v8714_v47 }
 0x359   : > { %v2548_v55 = vpop.f32.mrf.mxu1 }
 0x35a   : > { %v2661_v34 = vpack.c.bf16 %v2548_v55, %v2548_v55  ;;  %v2990_v3 = vsel %vm859_vm3, %v2663_v31, 0 }
 0x35c   : > { %8754 = vmatmul.mubr.msk.bf16.vlgmr.msra.gmra.mxu0 %vm855_vm4, %v9675_v54  ;;  %v2904_v41 = vsel %vm859_vm3, %v2661_v34, 0 }
 0x35d   : > { %8758 = vmatpush3.bf16.msra.mxu0 %v2818_v14  ;;  %8759 = vmatprep.mubr.msk.bf16.mxu0 %vm9501_vm2, %v9500_v46 }
 0x35e   : > { %8763 = vmatprep.subr.bf16.mxu0 %v9500_v46 }
 0x363   : > { %v10047_v62 = vpop.f32.mrf.mxu1 }
 0x364   : > { %8760 = vmatmul.mubr.msk.bf16.vlgmr.msra.gmra.mxu0 %vm855_vm4, %v9714_v19  ;;  %v2666_v52 = vpack.c.bf16 %v10047_v62, %v10047_v62 }
 0x365   : > { %8764 = vmatpush3.bf16.msra.mxu0 %v2861_v56  ;;  %8765 = vmatprep.mubr.msk.bf16.mxu0 %vm9501_vm2, %v9500_v46  ;;  %v2561_v8 = vpop.f32.mrf.mxu1 }
 0x366   : > { %8769 = vmatprep.subr.bf16.mxu0 %v9500_v46  ;;  %v2664_v10 = vpack.c.bf16 %v2561_v8, %v2561_v8  ;;  %v3119_v8 = vsel %vm859_vm3, %v2666_v52, 0 }
 0x367   : > { %v8718_v29 = vpop.f32.mrf.mxu1 }
 0x368   : > { %v2667_v38 = vpack.c.bf16 %v8718_v29, %v8718_v29  ;;  %v3033_v44 = vsel %vm859_vm3, %v2664_v10, 0 }
 0x369   : > { %v2564_v36 = vpop.f32.mrf.mxu1 }
 0x36a   : > { %v2665_v15 = vpack.c.bf16 %v2564_v36, %v2564_v36  ;;  %v3162_v16 = vsel %vm859_vm3, %v2667_v38, 0 }
 0x36c   : > { %8766 = vmatmul.mubr.msk.bf16.vlgmr.msra.gmra.mxu0 %vm855_vm4, %v9697_v9  ;;  %v3076_v42 = vsel %vm859_vm3, %v2665_v15, 0 }
 0x36d   : > { %8770 = vmatpush3.bf16.msra.mxu0 %v2904_v41  ;;  %8771 = vmatprep.mubr.msk.bf16.mxu0 %vm9501_vm2, %v9500_v46 }
 0x36e   : > { %8775 = vmatprep.subr.bf16.mxu0 %v9500_v46  ;;  %8794 = vmatpush3.bf16.msra.mxu1 %v3076_v42 }
 0x36f   : > { %8805 = vmatprep.subr.bf16.mxu1 %v9500_v46 }
 0x371   : > { %8796 = vmatmul.mubr.msk.bf16.vlgmr.msra.gmra.mxu1 %vm855_vm4, %v9768_v48 }
 0x372   : > { %8806 = vmatpush3.bf16.msra.mxu1 %v3162_v16  ;;  %8807 = vmatprep.mubr.msk.bf16.mxu1 %vm9501_vm2, %v9500_v46 }
 0x373   : > { %v10067_v23 = vpop.f32.mrf.mxu1  ;;  %8817 = vmatprep.subr.bf16.mxu1 %v9500_v46 }
 0x374   : > { %8772 = vmatmul.mubr.msk.bf16.vlgmr.msra.gmra.mxu0 %vm855_vm4, %v9732_v28  ;;  %v2670_v16 = vpack.c.bf16 %v10067_v23, %v10067_v23 }
 0x375   : > { %8776 = vmatpush3.bf16.msra.mxu0 %v2947_v26  ;;  %8777 = vmatprep.mubr.msk.bf16.mxu0 %vm9501_vm2, %v9500_v46  ;;  %v2577_v43 = vpop.f32.mrf.mxu1 }
 0x376   : > { %8781 = vmatprep.subr.bf16.mxu0 %v9500_v46  ;;  %v2668_v62 = vpack.c.bf16 %v2577_v43, %v2577_v43  ;;  %v3291_v43 = vsel %vm859_vm3, %v2670_v16, 0 }
 0x377   : > { %v8722_v27 = vpop.f32.mrf.mxu1 }
 0x378   : > { %v2671_v21 = vpack.c.bf16 %v8722_v27, %v8722_v27  ;;  %v3205_v38 = vsel %vm859_vm3, %v2668_v62, 0 }
 0x379   : > { %8808 = vmatmul.mubr.msk.bf16.vlgmr.msra.gmra.mxu1 %vm855_vm4, %v9786_v0  ;;  %v2580_v60 = vpop.f32.mrf.mxu1 }
 0x37a   : > { %v2669_v63 = vpack.c.bf16 %v2580_v60, %v2580_v60  ;;  %8819 = vmatprep.mubr.msk.bf16.mxu1 %vm9501_vm2, %v9500_v46  ;;  %v3334_v12 = vsel %vm859_vm3, %v2671_v21, 0 }
 0x37c   : > { %8778 = vmatmul.mubr.msk.bf16.vlgmr.msra.gmra.mxu0 %vm855_vm4, %v9716_v20  ;;  %v3248_v6 = vsel %vm859_vm3, %v2669_v63, 0 }
 0x37d   : > { %8782 = vmatpush3.bf16.msra.mxu0 %v2990_v3  ;;  %8783 = vmatprep.mubr.msk.bf16.mxu0 %vm9501_vm2, %v9500_v46 }
 0x37e   : > { %8787 = vmatprep.subr.bf16.mxu0 %v9500_v46  ;;  %8818 = vmatpush3.bf16.msra.mxu1 %v3248_v6 }
 0x37f   : > { %8829 = vmatprep.subr.bf16.mxu1 %v9500_v46 }
 0x381   : > { %8820 = vmatmul.mubr.msk.bf16.vlgmr.msra.gmra.mxu1 %vm855_vm4, %v9804_v11 }
 0x382   : > { %8830 = vmatpush3.bf16.msra.mxu1 %v3334_v12  ;;  %8831 = vmatprep.mubr.msk.bf16.mxu1 %vm9501_vm2, %v9500_v46 }
 0x383   : > { %v10094_v14 = vpop.f32.mrf.mxu1  ;;  %8841 = vmatprep.subr.bf16.mxu1 %v9500_v46 }
 0x384   : > { %8784 = vmatmul.mubr.msk.bf16.vlgmr.msra.gmra.mxu0 %vm855_vm4, %v9750_v39  ;;  %v2674_v10 = vpack.c.bf16 %v10094_v14, %v10094_v14 }
 0x385   : > { %8788 = vmatpush3.bf16.msra.mxu0 %v3033_v44  ;;  %8789 = vmatprep.mubr.msk.bf16.mxu0 %vm9501_vm2, %v9500_v46  ;;  %v2593_v47 = vpop.f32.mrf.mxu1 }
 0x386   : > { %8799 = vmatprep.subr.bf16.mxu0 %v9500_v46  ;;  %v2672_v23 = vpack.c.bf16 %v2593_v47, %v2593_v47  ;;  %v3463_v47 = vsel %vm859_vm3, %v2674_v10, 0  ;;  %v9263_v10 = vld [vmem:[%s11648_s2 + $0xb0] ss:$8 sps:$4 sm:$0xff]  }
 0x387   : > { %v8726_v55 = vpop.f32.mrf.mxu1 }
 0x388   : > { %v2675_v34 = vpack.c.bf16 %v8726_v55, %v8726_v55  ;;  %v3377_v21 = vsel %vm859_vm3, %v2672_v23, 0 }
 0x389   : > { %8832 = vmatmul.mubr.msk.bf16.vlgmr.msra.gmra.mxu1 %vm855_vm4, %v9822_v24  ;;  %v2596_v56 = vpop.f32.mrf.mxu1 }
 0x38a   : > { %v2673_v29 = vpack.c.bf16 %v2596_v56, %v2596_v56  ;;  %8843 = vmatprep.mubr.msk.bf16.mxu1 %vm9501_vm2, %v9500_v46  ;;  %v3506_v15 = vsel %vm859_vm3, %v2675_v34, 0 }
 0x38c   : > { %8790 = vmatmul.mubr.msk.bf16.vlgmr.msra.gmra.mxu0 %vm855_vm4, %v9734_v30  ;;  %v3420_v36 = vsel %vm859_vm3, %v2673_v29, 0 }
 0x38d   : > { %8800 = vmatpush3.bf16.msra.mxu0 %v3119_v8  ;;  %8801 = vmatprep.mubr.msk.bf16.mxu0 %vm9501_vm2, %v9500_v46 }
 0x38e   : > { %8811 = vmatprep.subr.bf16.mxu0 %v9500_v46  ;;  %8842 = vmatpush3.bf16.msra.mxu1 %v3420_v36 }
 0x38f   : > { %8853 = vmatprep.subr.bf16.mxu1 %v9500_v46 }
 0x391   : > { %8844 = vmatmul.mubr.msk.bf16.vlgmr.msra.gmra.mxu1 %vm855_vm4, %v9840_v35 }
 0x392   : > { %8854 = vmatpush3.bf16.msra.mxu1 %v3506_v15  ;;  %8855 = vmatprep.mubr.msk.bf16.mxu1 %vm9501_vm2, %v9500_v46 }
 0x393   : > { %v10122_v41 = vpop.f32.mrf.mxu1  ;;  %8865 = vmatprep.subr.bf16.mxu1 %v9500_v46 }
 0x394   : > { %8802 = vmatmul.mubr.msk.bf16.vlgmr.msra.gmra.mxu0 %vm855_vm4, %v9752_v40  ;;  %v2678_v62 = vpack.c.bf16 %v10122_v41, %v10122_v41 }
 0x395   : > { %8812 = vmatpush3.bf16.msra.mxu0 %v3205_v38  ;;  %8813 = vmatprep.mubr.msk.bf16.mxu0 %vm9501_vm2, %v9500_v46  ;;  %v2609_v42 = vpop.f32.mrf.mxu1 }
 0x396   : > { %8823 = vmatprep.subr.bf16.mxu0 %v9500_v46  ;;  %v2676_v14 = vpack.c.bf16 %v2609_v42, %v2609_v42  ;;  %v3635_v42 = vsel %vm859_vm3, %v2678_v62, 0 }
 0x397   : > { %v8730_v22 = vpop.f32.mrf.mxu1 }
 0x398   : > { %v2679_v31 = vpack.c.bf16 %v8730_v22, %v8730_v22  ;;  %v3549_v29 = vsel %vm859_vm3, %v2676_v14, 0 }
 0x399   : > { %8856 = vmatmul.mubr.msk.bf16.vlgmr.msra.gmra.mxu1 %vm855_vm4, %v9858_v49  ;;  %v2612_v26 = vpop.f32.mrf.mxu1 }
 0x39a   : > { %v2677_v27 = vpack.c.bf16 %v2612_v26, %v2612_v26  ;;  %8867 = vmatprep.mubr.msk.bf16.mxu1 %vm9501_vm2, %v9500_v46  ;;  %v3678_v63 = vsel %vm859_vm3, %v2679_v31, 0 }
 0x39c   : > { %8814 = vmatmul.mubr.msk.bf16.vlgmr.msra.gmra.mxu0 %vm855_vm4, %v9770_v50  ;;  %v3592_v60 = vsel %vm859_vm3, %v2677_v27, 0 }
 0x39d   : > { %8824 = vmatpush3.bf16.msra.mxu0 %v3291_v43  ;;  %8825 = vmatprep.mubr.msk.bf16.mxu0 %vm9501_vm2, %v9500_v46 }
 0x39e   : > { %8835 = vmatprep.subr.bf16.mxu0 %v9500_v46  ;;  %8866 = vmatpush3.bf16.msra.mxu1 %v3592_v60 }
 0x39f   : > { %8877 = vmatprep.subr.bf16.mxu1 %v9500_v46 }
 0x3a1   : > { %8868 = vmatmul.mubr.msk.bf16.vlgmr.msra.gmra.mxu1 %vm855_vm4, %v9876_v2 }
 0x3a2   : > { %8878 = vmatpush3.bf16.msra.mxu1 %v3678_v63  ;;  %8879 = vmatprep.mubr.msk.bf16.mxu1 %vm9501_vm2, %v9500_v46 }
 0x3a3   : > { %v10150_v3 = vpop.f32.mrf.mxu1  ;;  %8889 = vmatprep.subr.bf16.mxu1 %v9500_v46 }
 0x3a4   : > { %8826 = vmatmul.mubr.msk.bf16.vlgmr.msra.gmra.mxu0 %vm855_vm4, %v9788_v1  ;;  %v2682_v31 = vpack.c.bf16 %v10150_v3, %v10150_v3 }
 0x3a5   : > { %8836 = vmatpush3.bf16.msra.mxu0 %v3377_v21  ;;  %8837 = vmatprep.mubr.msk.bf16.mxu0 %vm9501_vm2, %v9500_v46  ;;  %v2625_v6 = vpop.f32.mrf.mxu1 }
 0x3a6   : > { %8847 = vmatprep.subr.bf16.mxu0 %v9500_v46  ;;  %v2680_v41 = vpack.c.bf16 %v2625_v6, %v2625_v6  ;;  %v3807_v60 = vsel %vm859_vm3, %v2682_v31, 0  ;;  %v9262_v6 = vld [vmem:[%s11648_s2 + $0xc0] ss:$8 sps:$4 sm:$0xff]  }
 0x3a7   : > { %v8734_v12 = vpop.f32.mrf.mxu1 }
 0x3a8   : > { %v2683_v55 = vpack.c.bf16 %v8734_v12, %v8734_v12  ;;  %v3721_v27 = vsel %vm859_vm3, %v2680_v41, 0  ;;  %v9264_v12 = vld [vmem:[%s11648_s2 + $0xa0] ss:$8 sps:$4 sm:$0xff]  }
 0x3a9   : > { %8880 = vmatmul.mubr.msk.bf16.vlgmr.msra.gmra.mxu1 %vm855_vm4, %v9894_v17  ;;  %v2628_v44 = vpop.f32.mrf.mxu1 }
 0x3aa   : > { %v2681_v52 = vpack.c.bf16 %v2628_v44, %v2628_v44  ;;  %8891 = vmatprep.mubr.msk.bf16.mxu1 %vm9501_vm2, %v9500_v46  ;;  %v3850_v8 = vsel %vm859_vm3, %v2683_v55, 0  ;;  %v9265_v44 = vld [vmem:[%s11648_s2 + $0x90] ss:$8 sps:$4 sm:$0xff]  }
 0x3ac   : > { %8838 = vmatmul.mubr.msk.bf16.vlgmr.msra.gmra.mxu0 %vm855_vm4, %v9806_v13  ;;  %v3764_v56 = vsel %vm859_vm3, %v2681_v52, 0 }
 0x3ad   : > { %8848 = vmatpush3.bf16.msra.mxu0 %v3463_v47  ;;  %8849 = vmatprep.mubr.msk.bf16.mxu0 %vm9501_vm2, %v9500_v46  ;;  %v4064_v47 = vld [vmem:[%s11648_s2 + $0x290] sm:$0x1] }
 0x3ae   : > { %8859 = vmatprep.subr.bf16.mxu0 %v9500_v46  ;;  %8890 = vmatpush3.bf16.msra.mxu1 %v3764_v56  ;;  %v4065_v52 = vunpack.c.l.bf16 %v4064_v47 }
 0x3af   : > { %8901 = vmatprep.subr.bf16.mxu1 %v9500_v46 }
 0x3b0   : > { %v10252_v14 = vrot.slane %v4065_v52, %v9607_v57 }
 0x3b1   : > { %8892 = vmatmul.mubr.msk.bf16.vlgmr.msra.gmra.mxu1 %vm855_vm4, %v9912_v32 }
 0x3b2   : > { %8902 = vmatpush3.bf16.msra.mxu1 %v3850_v8  ;;  %8903 = vmatprep.mubr.msk.bf16.mxu1 %vm9501_vm2, %v9500_v46 }
 0x3b3   : > { %v8737_v34 = vpop.f32.mrf.mxu1  ;;  %8913 = vmatprep.subr.bf16.mxu1 %v9500_v46 }
 0x3b4   : > { %8850 = vmatmul.mubr.msk.bf16.vlgmr.msra.gmra.mxu0 %vm855_vm4, %v9824_v25  ;;  %v2686_v21 = vpack.c.bf16 %v8737_v34, %v8737_v34 }
 0x3b5   : > { %8860 = vmatpush3.bf16.msra.mxu0 %v3549_v29  ;;  %8861 = vmatprep.mubr.msk.bf16.mxu0 %vm9501_vm2, %v9500_v46  ;;  %v2641_v36 = vpop.f32.mrf.mxu1 }
 0x3b6   : > { %8871 = vmatprep.subr.bf16.mxu0 %v9500_v46  ;;  %v2684_v23 = vpack.c.bf16 %v2641_v36, %v2641_v36  ;;  %v3979_v3 = vsel %vm859_vm3, %v2686_v21, 0 }
 0x3b7   : > { %v8738_v15 = vpop.f32.mrf.mxu1 }
 0x3b8   : > { %v2687_v22 = vpack.c.bf16 %v8738_v15, %v8738_v15  ;;  %v3893_v63 = vsel %vm859_vm3, %v2684_v23, 0 }
 0x3b9   : > { %8904 = vmatmul.mubr.msk.bf16.vlgmr.msra.gmra.mxu1 %vm855_vm4, %v9932_v45  ;;  %v2644_v38 = vpop.f32.mrf.mxu1 }
 0x3ba   : > { %v2685_v16 = vpack.c.bf16 %v2644_v38, %v2644_v38  ;;  %8915 = vmatprep.mubr.msk.bf16.mxu1 %vm9501_vm2, %v9500_v46  ;;  %v4022_v43 = vsel %vm859_vm3, %v2687_v22, 0 }
 0x3bc   : > { %8862 = vmatmul.mubr.msk.bf16.vlgmr.msra.gmra.mxu0 %vm855_vm4, %v9842_v37  ;;  %v3936_v26 = vsel %vm859_vm3, %v2685_v16, 0 }
 0x3bd   : > { %8872 = vmatpush3.bf16.msra.mxu0 %v3635_v42  ;;  %8873 = vmatprep.mubr.msk.bf16.mxu0 %vm9501_vm2, %v9500_v46 }
 0x3be   : > { %8883 = vmatprep.subr.bf16.mxu0 %v9500_v46  ;;  %8914 = vmatpush3.bf16.msra.mxu1 %v3936_v26 }
 0x3bf   : > { %8925 = vmatprep.subr.bf16.mxu1 %v9500_v46 }
 0x3c1   : > { %8916 = vmatmul.mubr.msk.bf16.vlgmr.msra.gmra.mxu1 %vm855_vm4, %v9951_v61 }
 0x3c2   : > { %8926 = vmatpush3.bf16.msra.mxu1 %v4022_v43  ;;  %8927 = vmatprep.mubr.msk.bf16.mxu1 %vm9501_vm2, %v9500_v46 }
 0x3c3   : > { %8971 = vmatprep.subr.bf16.mxu1 %v9500_v46 }
 0x3c4   : > { %8874 = vmatmul.mubr.msk.bf16.vlgmr.msra.gmra.mxu0 %vm855_vm4, %v9860_v51 }
 0x3c5   : > { %8884 = vmatpush3.bf16.msra.mxu0 %v3721_v27  ;;  %8885 = vmatprep.mubr.msk.bf16.mxu0 %vm9501_vm2, %v9500_v46 }
 0x3c6   : > { %8895 = vmatprep.subr.bf16.mxu0 %v9500_v46 }
 0x3c9   : > { %8928 = vmatmul.mubr.msk.bf16.vlgmr.msra.gmra.mxu1 %vm855_vm4, %v9963_v5 }
 0x3ca   : > { %8973 = vmatprep.mubr.msk.bf16.mxu1 %vm9501_vm2, %v9500_v46 }
 0x3cc   : > { %8886 = vmatmul.mubr.msk.bf16.vlgmr.msra.gmra.mxu0 %vm855_vm4, %v9878_v4 }
 0x3cd   : > { %8896 = vmatpush3.bf16.msra.mxu0 %v3807_v60  ;;  %8897 = vmatprep.mubr.msk.bf16.mxu0 %vm9501_vm2, %v9500_v46 }
 0x3ce   : > { %8907 = vmatprep.subr.bf16.mxu0 %v9500_v46 }
 0x3d4   : > { %8898 = vmatmul.mubr.msk.bf16.vlgmr.msra.gmra.mxu0 %vm855_vm4, %v9896_v18 }
 0x3d5   : > { %8908 = vmatpush3.bf16.msra.mxu0 %v3893_v63  ;;  %8909 = vmatprep.mubr.msk.bf16.mxu0 %vm9501_vm2, %v9500_v46 }
 0x3d6   : > { %8919 = vmatprep.subr.bf16.mxu0 %v9500_v46 }
 0x3dc   : > { %8910 = vmatmul.mubr.msk.bf16.vlgmr.msra.gmra.mxu0 %vm855_vm4, %v9914_v33 }
 0x3dd   : > { %8920 = vmatpush3.bf16.msra.mxu0 %v3979_v3  ;;  %8921 = vmatprep.mubr.msk.bf16.mxu0 %vm9501_vm2, %v9500_v46 }
 0x3de   : > { %8931 = vmatprep.subr.bf16.mxu0 %v9262_v6 }
 0x3e4   : > { %8922 = vmatmul.mubr.msk.bf16.vlgmr.msra.gmra.mxu0 %vm855_vm4, %v9934_v59 }
 0x3e5   : > { %8932 = vmatpush3.bf16.msra.mxu0 %v9262_v6 }
 0x3e6   : > { %8933 = vmatprep.subr.bf16.mxu0 %v9263_v10 }
 0x3e9   : > { %8934 = vmatpush3.bf16.msra.mxu0 %v9263_v10 }
 0x3ea   : > { %8935 = vmatprep.subr.bf16.mxu0 %v9264_v12 }
 0x3ed   : > { %8936 = vmatpush3.bf16.msra.mxu0 %v9264_v12 }
 0x3ee   : > { %8937 = vmatprep.subr.bf16.mxu0 %v9265_v44 }
 0x3f1   : > { %8938 = vmatpush3.bf16.msra.mxu0 %v9265_v44 }
 0x3f2   : > { %9025 = vmatprep.subr.bf16.mxu0 %v9500_v46 }
 0x40c   : > { %v2725_v55 = vpop.f32.mrf.mxu0 }
 0x40d   : > { %v4070_v34 = vadd.f32 %v10252_v14, %v2725_v55 }
 0x40e   : > { %v8743_v56 = vpop.f32.mrf.mxu0 }
 0x40f   : > { %v4102_v38 = vmax.f32 %v4070_v34, 0.0 }
 0x410   : > { %v2728_v8 = vpop.f32.mrf.mxu0 }
 0x412   : > { %v8744_v29 = vpop.f32.mrf.mxu0 }
 0x414   : > { %v2768_v36 = vpop.f32.mrf.mxu0 }
 0x415   : > { %v4071_v62 = vadd.f32 %v10252_v14, %v2768_v36 }
 0x416   : > { %v8749_v15 = vpop.f32.mrf.mxu0 }
 0x417   : > { %v4103_v42 = vmax.f32 %v4071_v62, 0.0 }
 0x418   : > { %v2771_v16 = vpop.f32.mrf.mxu0 }
 0x419   : > { %v4142_v22 = vpack.c.bf16 %v4103_v42, %v4102_v38 }
 0x41a   : > { %v8750_v26 = vpop.f32.mrf.mxu0 }
 0x41b   : > { %8939 = vmatprep.mubr.msk.bf16.mxu0 %vm613_vm1, %v4142_v22 }
 0x41c   : > { %v2811_v41 = vpop.f32.mrf.mxu0 }
 0x41d   : > { %v4072_v60 = vadd.f32 %v10252_v14, %v2811_v41 }
 0x41e   : > { %v8755_v43 = vpop.f32.mrf.mxu0 }
 0x41f   : > { %v4104_v3 = vmax.f32 %v4072_v60, 0.0 }
 0x420   : > { %v2814_v27 = vpop.f32.mrf.mxu0 }
 0x422   : > { %v8756_v31 = vpop.f32.mrf.mxu0 }
 0x424   : > { %v2854_v23 = vpop.f32.mrf.mxu0 }
 0x425   : > { %v4073_v63 = vadd.f32 %v10252_v14, %v2854_v23 }
 0x426   : > { %v8761_v21 = vpop.f32.mrf.mxu0 }
 0x427   : > { %v4105_v6 = vmax.f32 %v4073_v63, 0.0 }
 0x428   : > { %v2857_v10 = vpop.f32.mrf.mxu0 }
 0x429   : > { %v4143_v12 = vpack.c.bf16 %v4105_v6, %v4104_v3 }
 0x42a   : > { %v8762_v44 = vpop.f32.mrf.mxu0 }
 0x42b   : > { %8940 = vmatmul.mubr.msk.bf16.vlgmr.msra.gmra.mxu0 %vm613_vm1, %v4143_v12 }
 0x42c   : > { %v2897_v47 = vpop.f32.mrf.mxu0 }
 0x42d   : > { %v4074_v29 = vadd.f32 %v10252_v14, %v2897_v47 }
 0x42e   : > { %v8767_v52 = vpop.f32.mrf.mxu0 }
 0x42f   : > { %v4106_v42 = vmax.f32 %v4074_v29, 0.0 }
 0x430   : > { %v2900_v55 = vpop.f32.mrf.mxu0 }
 0x431   : > { %v3112_v56 = vpop.f32.mrf.mxu1 }
 0x432   : > { %v8768_v8 = vpop.f32.mrf.mxu0 }
 0x433   : > { %v8797_v34 = vpop.f32.mrf.mxu1 }
 0x434   : > { %v2940_v36 = vpop.f32.mrf.mxu0 }
 0x435   : > { %v4075_v62 = vadd.f32 %v10252_v14, %v2940_v36  ;;  %v3115_v15 = vpop.f32.mrf.mxu1 }
 0x436   : > { %v8773_v38 = vpop.f32.mrf.mxu0 }
 0x437   : > { %v4107_v16 = vmax.f32 %v4075_v62, 0.0  ;;  %v8798_v22 = vpop.f32.mrf.mxu1  ;;  %v4079_v38 = vadd.f32 %v10252_v14, %v3112_v56 }
 0x438   : > { %v2943_v26 = vpop.f32.mrf.mxu0 }
 0x439   : > { %v4144_v41 = vpack.c.bf16 %v4107_v16, %v4106_v42  ;;  %v3198_v43 = vpop.f32.mrf.mxu1 }
 0x43a   : > { %v8774_v27 = vpop.f32.mrf.mxu0 }
 0x43b   : > { %8943 = vmatprep.mubr.msk.bf16.mxu0 %vm613_vm1, %v4144_v41  ;;  %v8809_v31 = vpop.f32.mrf.mxu1  ;;  %v4111_v27 = vmax.f32 %v4079_v38, 0.0 }
 0x43c   : > { %v2983_v60 = vpop.f32.mrf.mxu0 }
 0x43d   : > { %v3201_v23 = vpop.f32.mrf.mxu1  ;;  %v4076_v12 = vadd.f32 %v10252_v14, %v2983_v60 }
 0x43e   : > { %v8779_v63 = vpop.f32.mrf.mxu0 }
 0x43f   : > { %v8810_v21 = vpop.f32.mrf.mxu1  ;;  %v4108_v29 = vmax.f32 %v4076_v12, 0.0 }
 0x440   : > { %v2986_v3 = vpop.f32.mrf.mxu0 }
 0x441   : > { %v3284_v6 = vpop.f32.mrf.mxu1 }
 0x442   : > { %v8780_v10 = vpop.f32.mrf.mxu0  ;;  %v4083_v38 = vadd.f32 %v10252_v14, %v3284_v6 }
 0x443   : > { %v8821_v44 = vpop.f32.mrf.mxu1  ;;  %v4081_v10 = vadd.f32 %v10252_v14, %v3198_v43 }
 0x444   : > { %v3026_v47 = vpop.f32.mrf.mxu0 }
 0x445   : > { %v4077_v52 = vadd.f32 %v10252_v14, %v3026_v47  ;;  %v3287_v55 = vpop.f32.mrf.mxu1 }
 0x446   : > { %v8785_v8 = vpop.f32.mrf.mxu0  ;;  %v4113_v55 = vmax.f32 %v4081_v10, 0.0 }
 0x447   : > { %v4109_v34 = vmax.f32 %v4077_v52, 0.0  ;;  %v8822_v36 = vpop.f32.mrf.mxu1 }
 0x448   : > { %v3029_v62 = vpop.f32.mrf.mxu0 }
 0x449   : > { %v4145_v15 = vpack.c.bf16 %v4109_v34, %v4108_v29  ;;  %v3370_v42 = vpop.f32.mrf.mxu1 }
 0x44a   : > { %v8786_v16 = vpop.f32.mrf.mxu0  ;;  %v4085_v10 = vadd.f32 %v10252_v14, %v3370_v42 }
 0x44b   : > { %8944 = vmatmul.mubr.msk.bf16.gmra.mxu0 %vm613_vm1, %v4145_v15  ;;  %v8833_v22 = vpop.f32.mrf.mxu1 }
 0x44c   : > { %v3069_v26 = vpop.f32.mrf.mxu0 }
 0x44d   : > { %v4078_v41 = vadd.f32 %v10252_v14, %v3069_v26  ;;  %v3373_v31 = vpop.f32.mrf.mxu1 }
 0x44e   : > { %v8791_v60 = vpop.f32.mrf.mxu0 }
 0x44f   : > { %v4110_v23 = vmax.f32 %v4078_v41, 0.0  ;;  %v8834_v63 = vpop.f32.mrf.mxu1 }
 0x450   : > { %v3072_v21 = vpop.f32.mrf.mxu0 }
 0x451   : > { %v4146_v3 = vpack.c.bf16 %v4111_v27, %v4110_v23  ;;  %v3456_v12 = vpop.f32.mrf.mxu1  ;;  %v4115_v27 = vmax.f32 %v4083_v38, 0.0 }
 0x452   : > { %v8792_v44 = vpop.f32.mrf.mxu0  ;;  %v4087_v38 = vadd.f32 %v10252_v14, %v3456_v12 }
 0x453   : > { %8947 = vmatprep.mubr.msk.bf16.mxu0 %vm613_vm1, %v4146_v3  ;;  %v8845_v56 = vpop.f32.mrf.mxu1 }
 0x454   : > { %v3155_v47 = vpop.f32.mrf.mxu0 }
 0x455   : > { %v4080_v52 = vadd.f32 %v10252_v14, %v3155_v47  ;;  %v3459_v8 = vpop.f32.mrf.mxu1 }
 0x456   : > { %v8803_v29 = vpop.f32.mrf.mxu0 }
 0x457   : > { %v4112_v34 = vmax.f32 %v4080_v52, 0.0  ;;  %v8846_v36 = vpop.f32.mrf.mxu1 }
 0x458   : > { %v3158_v62 = vpop.f32.mrf.mxu0 }
 0x459   : > { %v4147_v15 = vpack.c.bf16 %v4113_v55, %v4112_v34  ;;  %v3542_v16 = vpop.f32.mrf.mxu1  ;;  %v4117_v55 = vmax.f32 %v4085_v10, 0.0 }
 0x45a   : > { %v8804_v22 = vpop.f32.mrf.mxu0  ;;  %v4089_v10 = vadd.f32 %v10252_v14, %v3542_v16 }
 0x45b   : > { %8948 = vmatmul.mubr.msk.bf16.gmra.mxu0 %vm613_vm1, %v4147_v15  ;;  %v8857_v43 = vpop.f32.mrf.mxu1 }
 0x45c   : > { %v3241_v26 = vpop.f32.mrf.mxu0 }
 0x45d   : > { %v4082_v41 = vadd.f32 %v10252_v14, %v3241_v26  ;;  %v3545_v31 = vpop.f32.mrf.mxu1 }
 0x45e   : > { %v8815_v60 = vpop.f32.mrf.mxu0 }
 0x45f   : > { %v4114_v23 = vmax.f32 %v4082_v41, 0.0  ;;  %v8858_v63 = vpop.f32.mrf.mxu1 }
 0x460   : > { %v3244_v21 = vpop.f32.mrf.mxu0 }
 0x461   : > { %v4148_v3 = vpack.c.bf16 %v4115_v27, %v4114_v23  ;;  %v3628_v44 = vpop.f32.mrf.mxu1  ;;  %v4119_v27 = vmax.f32 %v4087_v38, 0.0 }
 0x462   : > { %v8816_v56 = vpop.f32.mrf.mxu0  ;;  %v4091_v38 = vadd.f32 %v10252_v14, %v3628_v44 }
 0x463   : > { %8951 = vmatprep.mubr.msk.bf16.mxu0 %vm613_vm1, %v4148_v3  ;;  %v8869_v6 = vpop.f32.mrf.mxu1 }
 0x464   : > { %v3327_v47 = vpop.f32.mrf.mxu0 }
 0x465   : > { %v4084_v52 = vadd.f32 %v10252_v14, %v3327_v47  ;;  %v3631_v8 = vpop.f32.mrf.mxu1 }
 0x466   : > { %v8827_v29 = vpop.f32.mrf.mxu0 }
 0x467   : > { %v4116_v34 = vmax.f32 %v4084_v52, 0.0  ;;  %v8870_v36 = vpop.f32.mrf.mxu1 }
 0x468   : > { %v3330_v62 = vpop.f32.mrf.mxu0 }
 0x469   : > { %v4149_v15 = vpack.c.bf16 %v4117_v55, %v4116_v34  ;;  %v3714_v22 = vpop.f32.mrf.mxu1  ;;  %v4121_v55 = vmax.f32 %v4089_v10, 0.0 }
 0x46a   : > { %v8828_v43 = vpop.f32.mrf.mxu0  ;;  %v4093_v10 = vadd.f32 %v10252_v14, %v3714_v22 }
 0x46b   : > { %8952 = vmatmul.mubr.msk.bf16.gmra.mxu0 %vm613_vm1, %v4149_v15  ;;  %v8881_v42 = vpop.f32.mrf.mxu1 }
 0x46c   : > { %v3413_v26 = vpop.f32.mrf.mxu0 }
 0x46d   : > { %v4086_v41 = vadd.f32 %v10252_v14, %v3413_v26  ;;  %v3717_v31 = vpop.f32.mrf.mxu1 }
 0x46e   : > { %v8839_v60 = vpop.f32.mrf.mxu0 }
 0x46f   : > { %v4118_v23 = vmax.f32 %v4086_v41, 0.0  ;;  %v8882_v63 = vpop.f32.mrf.mxu1 }
 0x470   : > { %v3416_v21 = vpop.f32.mrf.mxu0 }
 0x471   : > { %v4150_v3 = vpack.c.bf16 %v4119_v27, %v4118_v23  ;;  %v3800_v56 = vpop.f32.mrf.mxu1  ;;  %v4123_v27 = vmax.f32 %v4091_v38, 0.0 }
 0x472   : > { %v8840_v6 = vpop.f32.mrf.mxu0  ;;  %v4095_v38 = vadd.f32 %v10252_v14, %v3800_v56 }
 0x473   : > { %8955 = vmatprep.mubr.msk.bf16.mxu0 %vm613_vm1, %v4150_v3  ;;  %v8893_v12 = vpop.f32.mrf.mxu1 }
 0x474   : > { %v3499_v47 = vpop.f32.mrf.mxu0 }
 0x475   : > { %v4088_v52 = vadd.f32 %v10252_v14, %v3499_v47  ;;  %v3803_v8 = vpop.f32.mrf.mxu1 }
 0x476   : > { %v8851_v29 = vpop.f32.mrf.mxu0 }
 0x477   : > { %v4120_v34 = vmax.f32 %v4088_v52, 0.0  ;;  %v8894_v36 = vpop.f32.mrf.mxu1 }
 0x478   : > { %v3502_v62 = vpop.f32.mrf.mxu0 }
 0x479   : > { %v4151_v15 = vpack.c.bf16 %v4121_v55, %v4120_v34  ;;  %v3886_v43 = vpop.f32.mrf.mxu1  ;;  %v4125_v55 = vmax.f32 %v4093_v10, 0.0 }
 0x47a   : > { %v8852_v42 = vpop.f32.mrf.mxu0  ;;  %v4097_v10 = vadd.f32 %v10252_v14, %v3886_v43 }
 0x47b   : > { %8956 = vmatmul.mubr.msk.bf16.gmra.mxu0 %vm613_vm1, %v4151_v15  ;;  %v8905_v16 = vpop.f32.mrf.mxu1 }
 0x47c   : > { %v3585_v26 = vpop.f32.mrf.mxu0 }
 0x47d   : > { %v4090_v41 = vadd.f32 %v10252_v14, %v3585_v26  ;;  %v3889_v31 = vpop.f32.mrf.mxu1 }
 0x47e   : > { %v8863_v60 = vpop.f32.mrf.mxu0 }
 0x47f   : > { %v4122_v23 = vmax.f32 %v4090_v41, 0.0  ;;  %v8906_v63 = vpop.f32.mrf.mxu1 }
 0x480   : > { %v3588_v21 = vpop.f32.mrf.mxu0 }
 0x481   : > { %v4152_v3 = vpack.c.bf16 %v4123_v27, %v4122_v23  ;;  %v3972_v6 = vpop.f32.mrf.mxu1  ;;  %v4127_v27 = vmax.f32 %v4095_v38, 0.0 }
 0x482   : > { %v8864_v12 = vpop.f32.mrf.mxu0 }
 0x483   : > { %8959 = vmatprep.mubr.msk.bf16.mxu0 %vm613_vm1, %v4152_v3  ;;  %v8917_v44 = vpop.f32.mrf.mxu1 }
 0x484   : > { %v3671_v47 = vpop.f32.mrf.mxu0 }
 0x485   : > { %v4092_v52 = vadd.f32 %v10252_v14, %v3671_v47  ;;  %v3975_v8 = vpop.f32.mrf.mxu1  ;;  %v4129_v47 = vmax.f32 %v4097_v10, 0.0 }
 0x486   : > { %v8875_v29 = vpop.f32.mrf.mxu0 }
 0x487   : > { %v4124_v34 = vmax.f32 %v4092_v52, 0.0  ;;  %v8918_v36 = vpop.f32.mrf.mxu1 }
 0x488   : > { %v3674_v62 = vpop.f32.mrf.mxu0 }
 0x489   : > { %v4153_v15 = vpack.c.bf16 %v4125_v55, %v4124_v34  ;;  %v4058_v42 = vpop.f32.mrf.mxu1  ;;  %v4099_v34 = vadd.f32 %v10252_v14, %v3972_v6 }
 0x48a   : > { %v8876_v16 = vpop.f32.mrf.mxu0 }
 0x48b   : > { %8960 = vmatmul.mubr.msk.bf16.gmra.mxu0 %vm613_vm1, %v4153_v15  ;;  %v8929_v22 = vpop.f32.mrf.mxu1  ;;  %v4131_v43 = vmax.f32 %v4099_v34, 0.0 }
 0x48c   : > { %v3757_v26 = vpop.f32.mrf.mxu0 }
 0x48d   : > { %v4094_v41 = vadd.f32 %v10252_v14, %v3757_v26  ;;  %v4061_v31 = vpop.f32.mrf.mxu1 }
 0x48e   : > { %v8887_v60 = vpop.f32.mrf.mxu0 }
 0x48f   : > { %v4126_v23 = vmax.f32 %v4094_v41, 0.0  ;;  %v8930_v63 = vpop.f32.mrf.mxu1  ;;  %v4101_v41 = vadd.f32 %v10252_v14, %v4058_v42 }
 0x490   : > { %v3760_v21 = vpop.f32.mrf.mxu0 }
 0x491   : > { %v4154_v3 = vpack.c.bf16 %v4127_v27, %v4126_v23  ;;  %v4133_v6 = vmax.f32 %v4101_v41, 0.0 }
 0x492   : > { %v8888_v12 = vpop.f32.mrf.mxu0 }
 0x493   : > { %8963 = vmatprep.mubr.msk.bf16.mxu0 %vm613_vm1, %v4154_v3 }
 0x494   : > { %v3843_v56 = vpop.f32.mrf.mxu0 }
 0x495   : > { %v4096_v44 = vadd.f32 %v10252_v14, %v3843_v56 }
 0x496   : > { %v8899_v52 = vpop.f32.mrf.mxu0 }
 0x497   : > { %v4128_v55 = vmax.f32 %v4096_v44, 0.0 }
 0x498   : > { %v3846_v8 = vpop.f32.mrf.mxu0 }
 0x499   : > { %v4155_v29 = vpack.c.bf16 %v4129_v47, %v4128_v55 }
 0x49a   : > { %v8900_v36 = vpop.f32.mrf.mxu0 }
 0x49b   : > { %8964 = vmatmul.mubr.msk.bf16.gmra.mxu0 %vm613_vm1, %v4155_v29 }
 0x49c   : > { %v3929_v62 = vpop.f32.mrf.mxu0 }
 0x49d   : > { %v4098_v15 = vadd.f32 %v10252_v14, %v3929_v62 }
 0x49e   : > { %v8911_v38 = vpop.f32.mrf.mxu0 }
 0x49f   : > { %v4130_v16 = vmax.f32 %v4098_v15, 0.0 }
 0x4a0   : > { %v3932_v22 = vpop.f32.mrf.mxu0 }
 0x4a1   : > { %v4156_v26 = vpack.c.bf16 %v4131_v43, %v4130_v16 }
 0x4a2   : > { %v8912_v27 = vpop.f32.mrf.mxu0 }
 0x4a3   : > { %8967 = vmatprep.mubr.msk.bf16.mxu0 %vm613_vm1, %v4156_v26 }
 0x4a4   : > { %v4015_v31 = vpop.f32.mrf.mxu0 }
 0x4a5   : > { %v4100_v60 = vadd.f32 %v10252_v14, %v4015_v31 }
 0x4a6   : > { %v8923_v23 = vpop.f32.mrf.mxu0 }
 0x4a7   : > { %v4132_v63 = vmax.f32 %v4100_v60, 0.0 }
 0x4a8   : > { %v4018_v21 = vpop.f32.mrf.mxu0 }
 0x4a9   : > { %v4157_v3 = vpack.c.bf16 %v4133_v6, %v4132_v63 }
 0x4aa   : > { %v8924_v10 = vpop.f32.mrf.mxu0 }
 0x4ab   : > { %8968 = vmatmul.mubr.msk.bf16.gmra.mxu0 %vm613_vm1, %v4157_v3 }
 0x4ac   : > { %9027 = vmatprep.mubr.msk.bf16.mxu0 %vm9501_vm2, %v9500_v46 }
 0x4eb   : > { %v8941_v12 = vpop.f32.mrf.mxu0 }
 0x4ec   : > { %v4393_v8 = vpack.c.bf16 %v8941_v12, %v8941_v12 }
 0x4ed   : > { %v4264_v56 = vpop.f32.mrf.mxu0 }
 0x4ee   : > { %v4391_v42 = vpack.c.bf16 %v4264_v56, %v4264_v56  ;;  %v4510_v29 = vsel %vm859_vm3, %v4393_v8, 0 }
 0x4ef   : > { %v8942_v44 = vpop.f32.mrf.mxu0 }
 0x4f0   : > { %v4424_v47 = vsel %vm859_vm3, %v4391_v42, 0 }
 0x4f1   : > { %v4267_v52 = vpop.f32.mrf.mxu0  ;;  %8972 = vmatpush3.bf16.msra.mxu1 %v4424_v47 }
 0x4f2   : > { %v4392_v14 = vpack.c.bf16 %v4267_v52, %v4267_v52  ;;  %8977 = vmatprep.subr.bf16.mxu1 %v9500_v46 }
 0x4f4   : > { %8974 = vmatmul.mubr.msk.bf16.vlgmr.msra.gmra.mxu1 %vm855_vm4, %v9678_v58  ;;  %v4467_v55 = vsel %vm859_vm3, %v4392_v14, 0  ;;  %v4394_v58 = vpack.c.bf16 %v8942_v44, %v8942_v44 }
 0x4f5   : > { %8978 = vmatpush3.bf16.msra.mxu1 %v4467_v55  ;;  %8979 = vmatprep.mubr.msk.bf16.mxu1 %vm9501_vm2, %v9500_v46 }
 0x4f6   : > { %8983 = vmatprep.subr.bf16.mxu1 %v9500_v46  ;;  %v4553_v34 = vsel %vm859_vm3, %v4394_v58, 0 }
 0x4fc   : > { %8980 = vmatmul.mubr.msk.bf16.vlgmr.msra.gmra.mxu1 %vm855_vm4, %v9694_v7 }
 0x4fd   : > { %8984 = vmatpush3.bf16.msra.mxu1 %v4510_v29  ;;  %8985 = vmatprep.mubr.msk.bf16.mxu1 %vm9501_vm2, %v9500_v46 }
 0x4fe   : > { %8989 = vmatprep.subr.bf16.mxu1 %v9500_v46 }
 0x504   : > { %8986 = vmatmul.mubr.msk.bf16.vlgmr.msra.gmra.mxu1 %vm855_vm4, %v9675_v54 }
 0x505   : > { %8990 = vmatpush3.bf16.msra.mxu1 %v4553_v34  ;;  %8991 = vmatprep.mubr.msk.bf16.mxu1 %vm9501_vm2, %v9500_v46 }
 0x506   : > { %8995 = vmatprep.subr.bf16.mxu1 %v9500_v46 }
 0x50b   : > { %v8945_v36 = vpop.f32.mrf.mxu0 }
 0x50c   : > { %8992 = vmatmul.mubr.msk.bf16.vlgmr.msra.gmra.mxu1 %vm855_vm4, %v9714_v19  ;;  %v4397_v19 = vpack.c.bf16 %v8945_v36, %v8945_v36 }
 0x50d   : > { %v4280_v7 = vpop.f32.mrf.mxu0  ;;  %8997 = vmatprep.mubr.msk.bf16.mxu1 %vm9501_vm2, %v9500_v46 }
 0x50e   : > { %v4395_v62 = vpack.c.bf16 %v4280_v7, %v4280_v7  ;;  %v4682_v26 = vsel %vm859_vm3, %v4397_v19, 0 }
 0x50f   : > { %v8946_v15 = vpop.f32.mrf.mxu0 }
 0x510   : > { %v4596_v43 = vsel %vm859_vm3, %v4395_v62, 0  ;;  %v4398_v27 = vpack.c.bf16 %v8946_v15, %v8946_v15 }
 0x511   : > { %v4283_v38 = vpop.f32.mrf.mxu0  ;;  %8996 = vmatpush3.bf16.msra.mxu1 %v4596_v43 }
 0x512   : > { %v4396_v54 = vpack.c.bf16 %v4283_v38, %v4283_v38  ;;  %9001 = vmatprep.subr.bf16.mxu1 %v9500_v46  ;;  %v4725_v23 = vsel %vm859_vm3, %v4398_v27, 0 }
 0x514   : > { %8998 = vmatmul.mubr.msk.bf16.vlgmr.msra.gmra.mxu1 %vm855_vm4, %v9697_v9  ;;  %v4639_v16 = vsel %vm859_vm3, %v4396_v54, 0 }
 0x515   : > { %9002 = vmatpush3.bf16.msra.mxu1 %v4639_v16  ;;  %9003 = vmatprep.mubr.msk.bf16.mxu1 %vm9501_vm2, %v9500_v46 }
 0x516   : > { %9007 = vmatprep.subr.bf16.mxu1 %v9500_v46 }
 0x51b   : > { %v8949_v22 = vpop.f32.mrf.mxu0 }
 0x51c   : > { %9004 = vmatmul.mubr.msk.bf16.vlgmr.msra.gmra.mxu1 %vm855_vm4, %v9732_v28  ;;  %v4401_v12 = vpack.c.bf16 %v8949_v22, %v8949_v22 }
 0x51d   : > { %9008 = vmatpush3.bf16.msra.mxu1 %v4682_v26  ;;  %v4296_v41 = vpop.f32.mrf.mxu0  ;;  %9009 = vmatprep.mubr.msk.bf16.mxu1 %vm9501_vm2, %v9500_v46 }
 0x51e   : > { %9013 = vmatprep.subr.bf16.mxu1 %v9500_v46  ;;  %v4399_v28 = vpack.c.bf16 %v4296_v41, %v4296_v41 }
 0x51f   : > { %v8950_v9 = vpop.f32.mrf.mxu0 }
 0x520   : > { %v4402_v60 = vpack.c.bf16 %v8950_v9, %v8950_v9 }
 0x521   : > { %v4299_v31 = vpop.f32.mrf.mxu0 }
 0x522   : > { %v4400_v6 = vpack.c.bf16 %v4299_v31, %v4299_v31  ;;  %v4897_v21 = vsel %vm859_vm3, %v4402_v60, 0 }
 0x524   : > { %9010 = vmatmul.mubr.msk.bf16.vlgmr.msra.gmra.mxu1 %vm855_vm4, %v9716_v20  ;;  %v4811_v63 = vsel %vm859_vm3, %v4400_v6, 0  ;;  %v4768_v20 = vsel %vm859_vm3, %v4399_v28, 0 }
 0x525   : > { %9014 = vmatpush3.bf16.msra.mxu1 %v4725_v23  ;;  %9026 = vmatpush3.bf16.msra.mxu0 %v4811_v63 }
 0x526   : > { %9037 = vmatprep.subr.bf16.mxu0 %v9500_v46  ;;  %9015 = vmatprep.mubr.msk.bf16.mxu1 %vm9501_vm2, %v9500_v46 }
 0x527   : > { %9019 = vmatprep.subr.bf16.mxu1 %v9500_v46 }
 0x528   : > { %9028 = vmatmul.mubr.msk.bf16.vlgmr.msra.gmra.mxu0 %vm855_vm4, %v9768_v48 }
 0x529   : > { %9038 = vmatpush3.bf16.msra.mxu0 %v4897_v21  ;;  %9039 = vmatprep.mubr.msk.bf16.mxu0 %vm9501_vm2, %v9500_v46 }
 0x52a   : > { %9049 = vmatprep.subr.bf16.mxu0 %v9500_v46 }
 0x52b   : > { %v8953_v3 = vpop.f32.mrf.mxu0 }
 0x52c   : > { %9016 = vmatmul.mubr.msk.bf16.vlgmr.msra.gmra.mxu1 %vm855_vm4, %v9750_v39  ;;  %v4854_v39 = vsel %vm859_vm3, %v4401_v12, 0  ;;  %v4405_v8 = vpack.c.bf16 %v8953_v3, %v8953_v3 }
 0x52d   : > { %9020 = vmatpush3.bf16.msra.mxu1 %v4768_v20  ;;  %9021 = vmatprep.mubr.msk.bf16.mxu1 %vm9501_vm2, %v9500_v46  ;;  %v4312_v10 = vpop.f32.mrf.mxu0 }
 0x52e   : > { %9031 = vmatprep.subr.bf16.mxu1 %v9500_v46  ;;  %v4403_v52 = vpack.c.bf16 %v4312_v10, %v4312_v10 }
 0x52f   : > { %v8954_v48 = vpop.f32.mrf.mxu0 }
 0x530   : > { %9040 = vmatmul.mubr.msk.bf16.vlgmr.msra.gmra.mxu0 %vm855_vm4, %v9786_v0  ;;  %v4406_v44 = vpack.c.bf16 %v8954_v48, %v8954_v48  ;;  %v4940_v14 = vsel %vm859_vm3, %v4403_v52, 0  ;;  %v5799_v52 = vld [vmem:[%s11648_s2 + $0x2a0] sm:$0x1] }
 0x531   : > { %v4315_v56 = vpop.f32.mrf.mxu0  ;;  %9051 = vmatprep.mubr.msk.bf16.mxu0 %vm9501_vm2, %v9500_v46 }
 0x532   : > { %v4404_v42 = vpack.c.bf16 %v4315_v56, %v4315_v56  ;;  %v5069_v0 = vsel %vm859_vm3, %v4406_v44, 0  ;;  %v9502_v44 = vmov 0  }
 0x534   : > { %9022 = vmatmul.mubr.msk.bf16.vlgmr.msra.gmra.mxu1 %vm855_vm4, %v9734_v30  ;;  %v4983_v47 = vsel %vm859_vm3, %v4404_v42, 0 }
 0x535   : > { %9032 = vmatpush3.bf16.msra.mxu1 %v4854_v39  ;;  %9033 = vmatprep.mubr.msk.bf16.mxu1 %vm9501_vm2, %v9500_v46  ;;  %v9272_v39 = vld [vmem:[%s11648_s2 + $0xe0] ss:$8 sps:$4 sm:$0xff]  }
 0x536   : > { %9043 = vmatprep.subr.bf16.mxu1 %v9500_v46  ;;  %9050 = vmatpush3.bf16.msra.mxu0 %v4983_v47  ;;  %v9275_v47 = vld [vmem:[%s11648_s2 + $0xd0] ss:$8 sps:$4 sm:$0xff]  }
 0x537   : > { %9061 = vmatprep.subr.bf16.mxu0 %v9500_v46 }
 0x539   : > { %9052 = vmatmul.mubr.msk.bf16.vlgmr.msra.gmra.mxu0 %vm855_vm4, %v9804_v11 }
 0x53a   : > { %9062 = vmatpush3.bf16.msra.mxu0 %v5069_v0  ;;  %9063 = vmatprep.mubr.msk.bf16.mxu0 %vm9501_vm2, %v9500_v46  ;;  %v5800_v0 = vunpack.c.l.bf16 %v5799_v52  ;;  %v9282_v52 = vld [vmem:[%s11648_s2 + $0x1c0] ss:$8 sps:$4 sm:$0xff]  }
 0x53b   : > { %v8957_v30 = vpop.f32.mrf.mxu0  ;;  %9073 = vmatprep.subr.bf16.mxu0 %v9500_v46 }
 0x53c   : > { %9034 = vmatmul.mubr.msk.bf16.vlgmr.msra.gmra.mxu1 %vm855_vm4, %v9752_v40  ;;  %v5026_v40 = vsel %vm859_vm3, %v4405_v8, 0  ;;  %v4409_v43 = vpack.c.bf16 %v8957_v30, %v8957_v30 }
 0x53d   : > { %9044 = vmatpush3.bf16.msra.mxu1 %v4940_v14  ;;  %9045 = vmatprep.mubr.msk.bf16.mxu1 %vm9501_vm2, %v9500_v46  ;;  %v4328_v55 = vpop.f32.mrf.mxu0 }
 0x53e   : > { %9055 = vmatprep.subr.bf16.mxu1 %v9500_v46  ;;  %v4407_v7 = vpack.c.bf16 %v4328_v55, %v4328_v55  ;;  %v10519_v55 = vrot.slane %v5800_v0, %v9607_v57 }
 0x53f   : > { %v8958_v11 = vpop.f32.mrf.mxu0 }
 0x540   : > { %v4410_v34 = vpack.c.bf16 %v8958_v11, %v8958_v11  ;;  %v5112_v62 = vsel %vm859_vm3, %v4407_v7, 0 }
 0x541   : > { %9064 = vmatmul.mubr.msk.bf16.vlgmr.msra.gmra.mxu0 %vm855_vm4, %v9822_v24  ;;  %v4331_v29 = vpop.f32.mrf.mxu0 }
 0x542   : > { %v4408_v58 = vpack.c.bf16 %v4331_v29, %v4331_v29  ;;  %9075 = vmatprep.mubr.msk.bf16.mxu0 %vm9501_vm2, %v9500_v46  ;;  %v5241_v24 = vsel %vm859_vm3, %v4410_v34, 0 }
 0x544   : > { %9046 = vmatmul.mubr.msk.bf16.vlgmr.msra.gmra.mxu1 %vm855_vm4, %v9770_v50  ;;  %v5155_v36 = vsel %vm859_vm3, %v4408_v58, 0 }
 0x545   : > { %9056 = vmatpush3.bf16.msra.mxu1 %v5026_v40  ;;  %9057 = vmatprep.mubr.msk.bf16.mxu1 %vm9501_vm2, %v9500_v46 }
 0x546   : > { %9067 = vmatprep.subr.bf16.mxu1 %v9500_v46  ;;  %9074 = vmatpush3.bf16.msra.mxu0 %v5155_v36 }
 0x547   : > { %9085 = vmatprep.subr.bf16.mxu0 %v9500_v46 }
 0x549   : > { %9076 = vmatmul.mubr.msk.bf16.vlgmr.msra.gmra.mxu0 %vm855_vm4, %v9840_v35 }
 0x54a   : > { %9086 = vmatpush3.bf16.msra.mxu0 %v5241_v24  ;;  %9087 = vmatprep.mubr.msk.bf16.mxu0 %vm9501_vm2, %v9500_v46 }
 0x54b   : > { %v8961_v50 = vpop.f32.mrf.mxu0  ;;  %9097 = vmatprep.subr.bf16.mxu0 %v9500_v46 }
 0x54c   : > { %9058 = vmatmul.mubr.msk.bf16.vlgmr.msra.gmra.mxu1 %vm855_vm4, %v9788_v1  ;;  %v5198_v1 = vsel %vm859_vm3, %v4409_v43, 0  ;;  %v4413_v9 = vpack.c.bf16 %v8961_v50, %v8961_v50 }
 0x54d   : > { %9068 = vmatpush3.bf16.msra.mxu1 %v5112_v62  ;;  %9069 = vmatprep.mubr.msk.bf16.mxu1 %vm9501_vm2, %v9500_v46  ;;  %v4344_v15 = vpop.f32.mrf.mxu0 }
 0x54e   : > { %9079 = vmatprep.subr.bf16.mxu1 %v9500_v46  ;;  %v4411_v22 = vpack.c.bf16 %v4344_v15, %v4344_v15 }
 0x54f   : > { %v8962_v35 = vpop.f32.mrf.mxu0 }
 0x550   : > { %v4414_v16 = vpack.c.bf16 %v8962_v35, %v8962_v35  ;;  %v5284_v26 = vsel %vm859_vm3, %v4411_v22, 0 }
 0x551   : > { %9088 = vmatmul.mubr.msk.bf16.vlgmr.msra.gmra.mxu0 %vm855_vm4, %v9858_v49  ;;  %v4347_v38 = vpop.f32.mrf.mxu0 }
 0x552   : > { %v4412_v54 = vpack.c.bf16 %v4347_v38, %v4347_v38  ;;  %9099 = vmatprep.mubr.msk.bf16.mxu0 %vm9501_vm2, %v9500_v46  ;;  %v5413_v49 = vsel %vm859_vm3, %v4414_v16, 0 }
 0x554   : > { %9070 = vmatmul.mubr.msk.bf16.vlgmr.msra.gmra.mxu1 %vm855_vm4, %v9806_v13  ;;  %v5327_v19 = vsel %vm859_vm3, %v4412_v54, 0 }
 0x555   : > { %9080 = vmatpush3.bf16.msra.mxu1 %v5198_v1  ;;  %9081 = vmatprep.mubr.msk.bf16.mxu1 %vm9501_vm2, %v9500_v46 }
 0x556   : > { %9091 = vmatprep.subr.bf16.mxu1 %v9500_v46  ;;  %9098 = vmatpush3.bf16.msra.mxu0 %v5327_v19 }
 0x557   : > { %9109 = vmatprep.subr.bf16.mxu0 %v9500_v46 }
 0x559   : > { %9100 = vmatmul.mubr.msk.bf16.vlgmr.msra.gmra.mxu0 %vm855_vm4, %v9876_v2 }
 0x55a   : > { %9110 = vmatpush3.bf16.msra.mxu0 %v5413_v49  ;;  %9111 = vmatprep.mubr.msk.bf16.mxu0 %vm9501_vm2, %v9500_v46 }
 0x55b   : > { %v8965_v13 = vpop.f32.mrf.mxu0  ;;  %9121 = vmatprep.subr.bf16.mxu0 %v9500_v46 }
 0x55c   : > { %9082 = vmatmul.mubr.msk.bf16.vlgmr.msra.gmra.mxu1 %vm855_vm4, %v9824_v25  ;;  %v5370_v25 = vsel %vm859_vm3, %v4413_v9, 0  ;;  %v4417_v21 = vpack.c.bf16 %v8965_v13, %v8965_v13 }
 0x55d   : > { %9092 = vmatpush3.bf16.msra.mxu1 %v5284_v26  ;;  %9093 = vmatprep.mubr.msk.bf16.mxu1 %vm9501_vm2, %v9500_v46  ;;  %v4360_v41 = vpop.f32.mrf.mxu0 }
 0x55e   : > { %9103 = vmatprep.subr.bf16.mxu1 %v9500_v46  ;;  %v4415_v23 = vpack.c.bf16 %v4360_v41, %v4360_v41 }
 0x55f   : > { %v8966_v2 = vpop.f32.mrf.mxu0 }
 0x560   : > { %v4418_v60 = vpack.c.bf16 %v8966_v2, %v8966_v2  ;;  %v5456_v63 = vsel %vm859_vm3, %v4415_v23, 0 }
 0x561   : > { %9112 = vmatmul.mubr.msk.bf16.vlgmr.msra.gmra.mxu0 %vm855_vm4, %v9894_v17  ;;  %v4363_v27 = vpop.f32.mrf.mxu0 }
 0x562   : > { %v4416_v31 = vpack.c.bf16 %v4363_v27, %v4363_v27  ;;  %9123 = vmatprep.mubr.msk.bf16.mxu0 %vm9501_vm2, %v9500_v46  ;;  %v5585_v17 = vsel %vm859_vm3, %v4418_v60, 0 }
 0x564   : > { %9094 = vmatmul.mubr.msk.bf16.vlgmr.msra.gmra.mxu1 %vm855_vm4, %v9842_v37  ;;  %v5499_v6 = vsel %vm859_vm3, %v4416_v31, 0 }
 0x565   : > { %9104 = vmatpush3.bf16.msra.mxu1 %v5370_v25  ;;  %9105 = vmatprep.mubr.msk.bf16.mxu1 %vm9501_vm2, %v9500_v46 }
 0x566   : > { %9115 = vmatprep.subr.bf16.mxu1 %v9500_v46  ;;  %9122 = vmatpush3.bf16.msra.mxu0 %v5499_v6 }
 0x567   : > { %9133 = vmatprep.subr.bf16.mxu0 %v9500_v46 }
 0x569   : > { %9124 = vmatmul.mubr.msk.bf16.vlgmr.msra.gmra.mxu0 %vm855_vm4, %v9912_v32 }
 0x56a   : > { %9134 = vmatpush3.bf16.msra.mxu0 %v5585_v17  ;;  %9135 = vmatprep.mubr.msk.bf16.mxu0 %vm9501_vm2, %v9500_v46 }
 0x56b   : > { %v8969_v37 = vpop.f32.mrf.mxu0  ;;  %9145 = vmatprep.subr.bf16.mxu0 %v9500_v46 }
 0x56c   : > { %9106 = vmatmul.mubr.msk.bf16.vlgmr.msra.gmra.mxu1 %vm855_vm4, %v9860_v51  ;;  %v5542_v51 = vsel %vm859_vm3, %v4417_v21, 0 }
 0x56d   : > { %9116 = vmatpush3.bf16.msra.mxu1 %v5456_v63  ;;  %9117 = vmatprep.mubr.msk.bf16.mxu1 %vm9501_vm2, %v9500_v46  ;;  %v4376_v28 = vpop.f32.mrf.mxu0 }
 0x56e   : > { %9127 = vmatprep.subr.bf16.mxu1 %v9500_v46  ;;  %v4419_v12 = vpack.c.bf16 %v4376_v28, %v4376_v28 }
 0x56f   : > { %v8970_v32 = vpop.f32.mrf.mxu0 }
 0x570   : > { %v4422_v10 = vpack.c.bf16 %v8970_v32, %v8970_v32  ;;  %v5628_v56 = vsel %vm859_vm3, %v4419_v12, 0 }
 0x571   : > { %9136 = vmatmul.mubr.msk.bf16.vlgmr.msra.gmra.mxu0 %vm855_vm4, %v9932_v45  ;;  %v4379_v20 = vpop.f32.mrf.mxu0 }
 0x572   : > { %v4420_v3 = vpack.c.bf16 %v4379_v20, %v4379_v20  ;;  %9147 = vmatprep.mubr.msk.bf16.mxu0 %vm9501_vm2, %v9500_v46  ;;  %v5757_v45 = vsel %vm859_vm3, %v4422_v10, 0 }
 0x574   : > { %9118 = vmatmul.mubr.msk.bf16.vlgmr.msra.gmra.mxu1 %vm855_vm4, %v9878_v4  ;;  %v5671_v48 = vsel %vm859_vm3, %v4420_v3, 0  ;;  %v4421_v4 = vpack.c.bf16 %v8969_v37, %v8969_v37 }
 0x575   : > { %9128 = vmatpush3.bf16.msra.mxu1 %v5542_v51  ;;  %9129 = vmatprep.mubr.msk.bf16.mxu1 %vm9501_vm2, %v9500_v46 }
 0x576   : > { %9139 = vmatprep.subr.bf16.mxu1 %v9500_v46  ;;  %9146 = vmatpush3.bf16.msra.mxu0 %v5671_v48  ;;  %v5714_v42 = vsel %vm859_vm3, %v4421_v4, 0 }
 0x577   : > { %9157 = vmatprep.subr.bf16.mxu0 %v9500_v46 }
 0x579   : > { %9148 = vmatmul.mubr.msk.bf16.vlgmr.msra.gmra.mxu0 %vm855_vm4, %v9951_v61  ;;  %v9268_v61 = vld [vmem:[%s11648_s2 + $0x104] ss:$8 sps:$4 sm:$0xff]  }
 0x57a   : > { %9158 = vmatpush3.bf16.msra.mxu0 %v5757_v45  ;;  %9159 = vmatprep.mubr.msk.bf16.mxu0 %vm9501_vm2, %v9500_v46 }
 0x57c   : > { %9130 = vmatmul.mubr.msk.bf16.vlgmr.msra.gmra.mxu1 %vm855_vm4, %v9896_v18  ;;  %v9266_v18 = vld [vmem:[%s11648_s2 + $0x100] ss:$8 sps:$4 sm:$0xff]  }
 0x57d   : > { %9140 = vmatpush3.bf16.msra.mxu1 %v5628_v56  ;;  %9141 = vmatprep.mubr.msk.bf16.mxu1 %vm9501_vm2, %v9500_v46 }
 0x57e   : > { %9151 = vmatprep.subr.bf16.mxu1 %v9500_v46 }
 0x581   : > { %9160 = vmatmul.mubr.msk.bf16.vlgmr.msra.gmra.mxu0 %vm855_vm4, %v9963_v5  ;;  %v9271_v5 = vld [vmem:[%s11648_s2 + $0xf4] ss:$8 sps:$4 sm:$0xff]  }
 0x584   : > { %9142 = vmatmul.mubr.msk.bf16.vlgmr.msra.gmra.mxu1 %vm855_vm4, %v9914_v33  ;;  %v9269_v33 = vld [vmem:[%s11648_s2 + $0xf0] ss:$8 sps:$4 sm:$0xff]  }
 0x585   : > { %9152 = vmatpush3.bf16.msra.mxu1 %v5714_v42  ;;  %9153 = vmatprep.mubr.msk.bf16.mxu1 %vm9501_vm2, %v9500_v46  ;;  %v9274_v46 = vld [vmem:[%s11648_s2 + $0xe4] ss:$8 sps:$4 sm:$0xff]  }
 0x586   : > { %6000 = vmatprep.subr.bf16.mxu1 %v9268_v61 }
 0x58c   : > { %9154 = vmatmul.mubr.msk.bf16.vlgmr.msra.gmra.mxu1 %vm855_vm4, %v9934_v59  ;;  %v9277_v59 = vld [vmem:[%s11648_s2 + $0xd4] ss:$8 sps:$4 sm:$0xff]  }
 0x58d   : > { %6001 = vmatpush1.bf16.msra.mxu1 %v9266_v18  ;;  %6024 = vmatprep.mubr.bf16.mxu1 %v9502_v44 }
 0x58e   : > { %6002 = vmatprep.subr.bf16.mxu1 %v9271_v5 }
 0x591   : > { %6003 = vmatpush1.bf16.msra.mxu1 %v9269_v33 }
 0x592   : > { %6004 = vmatprep.subr.bf16.mxu1 %v9274_v46 }
 0x595   : > { %6005 = vmatpush1.bf16.msra.mxu1 %v9272_v39  ;;  %v9281_v39 = vld [vmem:[%s11648_s2 + $0x240] ss:$8 sps:$4 sm:$0xff]  }
 0x596   : > { %6006 = vmatprep.subr.bf16.mxu1 %v9277_v59 }
 0x599   : > { %6007 = vmatpush1.bf16.msra.mxu1 %v9275_v47 }
 0x59a   : > { %8321 = vmatprep.subr.bf16.mxu1 %v9281_v39 }
 0x5b4   : > { %v4460_v14 = vpop.f32.mrf.mxu1 }
 0x5b5   : > { %v5805_v29 = vadd.f32 %v10519_v55, %v4460_v14 }
 0x5b6   : > { %v8975_v30 = vpop.f32.mrf.mxu1 }
 0x5b7   : > { %v5837_v36 = vmax.f32 %v5805_v29, 0.0 }
 0x5b8   : > { %v4463_v11 = vpop.f32.mrf.mxu1 }
 0x5ba   : > { %v8976_v8 = vpop.f32.mrf.mxu1 }
 0x5bb   : > { %v9284_v8 = vld [vmem:[%s11648_s2 + $0x230] ss:$8 sps:$4 sm:$0xff]  }
 0x5bc   : > { %v4503_v58 = vpop.f32.mrf.mxu1 }
 0x5bd   : > { %v5806_v34 = vadd.f32 %v10519_v55, %v4503_v58 }
 0x5be   : > { %v8981_v40 = vpop.f32.mrf.mxu1 }
 0x5bf   : > { %v5838_v7 = vmax.f32 %v5806_v34, 0.0  ;;  %v9285_v34 = vld [vmem:[%s11648_s2 + $0x1b0] ss:$8 sps:$4 sm:$0xff]  }
 0x5c0   : > { %v4506_v24 = vpop.f32.mrf.mxu1 }
 0x5c1   : > { %v5869_v62 = vpack.c.bf16 %v5838_v7, %v5837_v36 }
 0x5c2   : > { %v8982_v50 = vpop.f32.mrf.mxu1 }
 0x5c3   : > { %7942 = vmatmul.mubr.msk.bf16.vlgmr.msra.gmra.mxu1 %vm613_vm1, %v5869_v62  ;;  %v9286_v62 = vld [vmem:[%s11648_s2 + $0x220] ss:$8 sps:$4 sm:$0xff]  }
 0x5c4   : > { %v4546_v15 = vpop.f32.mrf.mxu1  ;;  %6034 = vmatprep.mubr.bf16.mxu1 %v9502_v44  ;;  %8322 = vmatpush3.bf16.msra.mxu1 %v9282_v52  ;;  %v9297_v52 = vld [vmem:[%s11648_s2 + $0x150] ss:$8 sps:$4 sm:$0xff]  }
 0x5c5   : > { %v5807_v54 = vadd.f32 %v10519_v55, %v4546_v15  ;;  %8323 = vmatprep.subr.bf16.mxu1 %v9284_v8 }
 0x5c6   : > { %v8987_v35 = vpop.f32.mrf.mxu1 }
 0x5c7   : > { %v5839_v22 = vmax.f32 %v5807_v54, 0.0 }
 0x5c8   : > { %v4549_v43 = vpop.f32.mrf.mxu1  ;;  %8324 = vmatpush3.bf16.msra.mxu1 %v9285_v34 }
 0x5c9   : > { %v9287_v43 = vld [vmem:[%s11648_s2 + $0x1a0] ss:$8 sps:$4 sm:$0xff]   ;;  %8325 = vmatprep.subr.bf16.mxu1 %v9286_v62 }
 0x5ca   : > { %v8988_v38 = vpop.f32.mrf.mxu1 }
 0x5cc   : > { %v4589_v16 = vpop.f32.mrf.mxu1  ;;  %8326 = vmatpush3.bf16.msra.mxu1 %v9287_v43 }
 0x5cd   : > { %v5808_v1 = vadd.f32 %v10519_v55, %v4589_v16 }
 0x5ce   : > { %v8993_v19 = vpop.f32.mrf.mxu1 }
 0x5cf   : > { %v5840_v49 = vmax.f32 %v5808_v1, 0.0  ;;  %v9288_v1 = vld [vmem:[%s11648_s2 + $0x210] ss:$8 sps:$4 sm:$0xff]  }
 0x5d0   : > { %v4592_v26 = vpop.f32.mrf.mxu1  ;;  %8327 = vmatprep.subr.bf16.mxu1 %v9288_v1 }
 0x5d1   : > { %v5870_v13 = vpack.c.bf16 %v5840_v49, %v5839_v22  ;;  %v9289_v26 = vld [vmem:[%s11648_s2 + $0x190] ss:$8 sps:$4 sm:$0xff]  }
 0x5d2   : > { %v8994_v41 = vpop.f32.mrf.mxu1  ;;  %8328 = vmatpush3.bf16.msra.mxu1 %v9289_v26  ;;  %v9283_v26 = vld [vmem:[%s11648_s2 + $0x110] ss:$8 sps:$4 sm:$0xff]  }
 0x5d3   : > { %7943 = vmatmul.mubr.msk.bf16.gmra.mxu1 %vm613_vm1, %v5870_v13 }
 0x5d4   : > { %v4632_v2 = vpop.f32.mrf.mxu1  ;;  %6044 = vmatprep.mubr.bf16.mxu1 %v9502_v44 }
 0x5d5   : > { %v5809_v60 = vadd.f32 %v10519_v55, %v4632_v2 }
 0x5d6   : > { %v8999_v9 = vpop.f32.mrf.mxu1 }
 0x5d7   : > { %v5841_v17 = vmax.f32 %v5809_v60, 0.0 }
 0x5d8   : > { %v4635_v27 = vpop.f32.mrf.mxu1 }
 0x5d9   : > { %v9290_v27 = vld [vmem:[%s11648_s2 + $0x200] ss:$8 sps:$4 sm:$0xff]  }
 0x5da   : > { %v9000_v31 = vpop.f32.mrf.mxu1  ;;  %8329 = vmatprep.subr.bf16.mxu1 %v9290_v27 }
 0x5dc   : > { %v4675_v25 = vpop.f32.mrf.mxu1 }
 0x5dd   : > { %v5810_v6 = vadd.f32 %v10519_v55, %v4675_v25 }
 0x5de   : > { %v9005_v23 = vpop.f32.mrf.mxu1 }
 0x5df   : > { %v5842_v63 = vmax.f32 %v5810_v6, 0.0  ;;  %v9291_v6 = vld [vmem:[%s11648_s2 + $0x180] ss:$8 sps:$4 sm:$0xff]  }
 0x5e0   : > { %v4678_v37 = vpop.f32.mrf.mxu1  ;;  %8330 = vmatpush3.bf16.msra.mxu1 %v9291_v6 }
 0x5e1   : > { %v5871_v28 = vpack.c.bf16 %v5842_v63, %v5841_v17  ;;  %v9292_v37 = vld [vmem:[%s11648_s2 + $0x1f0] ss:$8 sps:$4 sm:$0xff]  }
 0x5e2   : > { %v9006_v32 = vpop.f32.mrf.mxu1  ;;  %8331 = vmatprep.subr.bf16.mxu1 %v9292_v37 }
 0x5e3   : > { %7944 = vmatmul.mubr.msk.bf16.gmra.mxu1 %vm613_vm1, %v5871_v28 }
 0x5e4   : > { %v4718_v21 = vpop.f32.mrf.mxu1  ;;  %6054 = vmatprep.mubr.bf16.mxu1 %v9502_v44 }
 0x5e5   : > { %v5811_v12 = vadd.f32 %v10519_v55, %v4718_v21 }
 0x5e6   : > { %v9011_v20 = vpop.f32.mrf.mxu1 }
 0x5e7   : > { %v5843_v18 = vmax.f32 %v5811_v12, 0.0  ;;  %v9293_v20 = vld [vmem:[%s11648_s2 + $0x170] ss:$8 sps:$4 sm:$0xff]   ;;  %v9294_v12 = vld [vmem:[%s11648_s2 + $0x1e0] ss:$8 sps:$4 sm:$0xff]  }
 0x5e8   : > { %v4721_v3 = vpop.f32.mrf.mxu1  ;;  %v4847_v10 = vpop.f32.mrf.mxu0  ;;  %8332 = vmatpush3.bf16.msra.mxu1 %v9293_v20 }
 0x5e9   : > { %v5814_v47 = vadd.f32 %v10519_v55, %v4847_v10  ;;  %8333 = vmatprep.subr.bf16.mxu1 %v9294_v12 }
 0x5ea   : > { %v9012_v51 = vpop.f32.mrf.mxu1  ;;  %v9029_v48 = vpop.f32.mrf.mxu0 }
 0x5eb   : > { %v5846_v58 = vmax.f32 %v5814_v47, 0.0 }
 0x5ec   : > { %v4761_v45 = vpop.f32.mrf.mxu1  ;;  %v4850_v56 = vpop.f32.mrf.mxu0 }
 0x5ed   : > { %v5812_v4 = vadd.f32 %v10519_v55, %v4761_v45 }
 0x5ee   : > { %v9017_v61 = vpop.f32.mrf.mxu1  ;;  %v9030_v42 = vpop.f32.mrf.mxu0 }
 0x5ef   : > { %v5844_v5 = vmax.f32 %v5812_v4, 0.0  ;;  %v9295_v61 = vld [vmem:[%s11648_s2 + $0x160] ss:$8 sps:$4 sm:$0xff]  }
 0x5f0   : > { %v4764_v33 = vpop.f32.mrf.mxu1  ;;  %v4933_v46 = vpop.f32.mrf.mxu0  ;;  %8334 = vmatpush3.bf16.msra.mxu1 %v9295_v61 }
 0x5f1   : > { %v5872_v59 = vpack.c.bf16 %v5844_v5, %v5843_v18  ;;  %v5816_v15 = vadd.f32 %v10519_v55, %v4933_v46  ;;  %v9278_v33 = vld [vmem:[%s11648_s2 + $0x140] ss:$8 sps:$4 sm:$0xff]   ;;  %v9296_v46 = vld [vmem:[%s11648_s2 + $0x1d0] ss:$8 sps:$4 sm:$0xff]  }
 0x5f2   : > { %v9018_v0 = vpop.f32.mrf.mxu1  ;;  %v9041_v14 = vpop.f32.mrf.mxu0  ;;  %9163 = vmatprep.subr.bf16.mxu0 %v9278_v33  ;;  %8335 = vmatprep.subr.bf16.mxu1 %v9296_v46 }
 0x5f3   : > { %7945 = vmatmul.mubr.msk.bf16.gmra.mxu1 %vm613_vm1, %v5872_v59  ;;  %v5848_v22 = vmax.f32 %v5816_v15, 0.0  ;;  %9164 = vmatpush3.bf16.msra.mxu0 %v9278_v33 }
 0x5f4   : > { %v4804_v30 = vpop.f32.mrf.mxu1  ;;  %6064 = vmatprep.mubr.bf16.mxu1 %v9502_v44  ;;  %v4936_v11 = vpop.f32.mrf.mxu0  ;;  %8336 = vmatpush3.bf16.msra.mxu1 %v9297_v52 }
 0x5f5   : > { %v5813_v29 = vadd.f32 %v10519_v55, %v4804_v30 }
 0x5f6   : > { %v9023_v40 = vpop.f32.mrf.mxu1  ;;  %v9042_v36 = vpop.f32.mrf.mxu0 }
 0x5f7   : > { %v5845_v7 = vmax.f32 %v5813_v29, 0.0  ;;  %v9279_v36 = vld [vmem:[%s11648_s2 + $0x130] ss:$8 sps:$4 sm:$0xff]  }
 0x5f8   : > { %v4807_v24 = vpop.f32.mrf.mxu1  ;;  %9165 = vmatprep.subr.bf16.mxu0 %v9279_v36 }
 0x5f9   : > { %v5873_v50 = vpack.c.bf16 %v5846_v58, %v5845_v7  ;;  %v5019_v35 = vpop.f32.mrf.mxu0  ;;  %9166 = vmatpush3.bf16.msra.mxu0 %v9279_v36 }
 0x5fa   : > { %v9024_v38 = vpop.f32.mrf.mxu1  ;;  %v5818_v60 = vadd.f32 %v10519_v55, %v5019_v35 }
 0x5fb   : > { %7946 = vmatmul.mubr.msk.bf16.gmra.mxu1 %vm613_vm1, %v5873_v50  ;;  %v9053_v54 = vpop.f32.mrf.mxu0  ;;  %v9280_v38 = vld [vmem:[%s11648_s2 + $0x120] ss:$8 sps:$4 sm:$0xff]  }
 0x5fc   : > { %v4890_v16 = vpop.f32.mrf.mxu1  ;;  %6074 = vmatprep.mubr.bf16.mxu1 %v9502_v44  ;;  %v5850_v32 = vmax.f32 %v5818_v60, 0.0  ;;  %9167 = vmatprep.subr.bf16.mxu0 %v9280_v38 }
 0x5fd   : > { %v5815_v19 = vadd.f32 %v10519_v55, %v4890_v16  ;;  %v5022_v49 = vpop.f32.mrf.mxu0  ;;  %9168 = vmatpush3.bf16.msra.mxu0 %v9280_v38 }
 0x5fe   : > { %v9035_v13 = vpop.f32.mrf.mxu1  ;;  %9169 = vmatprep.subr.bf16.mxu0 %v9283_v26 }
 0x5ff   : > { %v5847_v41 = vmax.f32 %v5815_v19, 0.0  ;;  %v9054_v2 = vpop.f32.mrf.mxu0 }
 0x600   : > { %v4893_v9 = vpop.f32.mrf.mxu1 }
 0x601   : > { %v5874_v31 = vpack.c.bf16 %v5848_v22, %v5847_v41  ;;  %v5105_v25 = vpop.f32.mrf.mxu0  ;;  %9170 = vmatpush3.bf16.msra.mxu0 %v9283_v26 }
 0x602   : > { %v9036_v23 = vpop.f32.mrf.mxu1  ;;  %v5820_v56 = vadd.f32 %v10519_v55, %v5105_v25 }
 0x603   : > { %7947 = vmatmul.mubr.msk.bf16.gmra.mxu1 %vm613_vm1, %v5874_v31  ;;  %v9065_v17 = vpop.f32.mrf.mxu0 }
 0x604   : > { %v4976_v63 = vpop.f32.mrf.mxu1  ;;  %6084 = vmatprep.mubr.bf16.mxu1 %v9502_v44  ;;  %v5852_v59 = vmax.f32 %v5820_v56, 0.0 }
 0x605   : > { %v5817_v28 = vadd.f32 %v10519_v55, %v4976_v63  ;;  %v5108_v21 = vpop.f32.mrf.mxu0 }
 0x606   : > { %v9047_v3 = vpop.f32.mrf.mxu1 }
 0x607   : > { %v5849_v10 = vmax.f32 %v5817_v28, 0.0  ;;  %v9066_v51 = vpop.f32.mrf.mxu0 }
 0x608   : > { %v4979_v48 = vpop.f32.mrf.mxu1 }
 0x609   : > { %v5875_v45 = vpack.c.bf16 %v5850_v32, %v5849_v10  ;;  %v5191_v4 = vpop.f32.mrf.mxu0 }
 0x60a   : > { %v9048_v42 = vpop.f32.mrf.mxu1  ;;  %v5822_v29 = vadd.f32 %v10519_v55, %v5191_v4 }
 0x60b   : > { %7948 = vmatmul.mubr.msk.bf16.gmra.mxu1 %vm613_vm1, %v5875_v45  ;;  %v9077_v18 = vpop.f32.mrf.mxu0 }
 0x60c   : > { %v5062_v5 = vpop.f32.mrf.mxu1  ;;  %6094 = vmatprep.mubr.bf16.mxu1 %v9502_v44  ;;  %v5854_v62 = vmax.f32 %v5822_v29, 0.0 }
 0x60d   : > { %v5819_v39 = vadd.f32 %v10519_v55, %v5062_v5  ;;  %v5194_v47 = vpop.f32.mrf.mxu0 }
 0x60e   : > { %v9059_v0 = vpop.f32.mrf.mxu1 }
 0x60f   : > { %v5851_v14 = vmax.f32 %v5819_v39, 0.0  ;;  %v9078_v30 = vpop.f32.mrf.mxu0 }
 0x610   : > { %v5065_v11 = vpop.f32.mrf.mxu1 }
 0x611   : > { %v5876_v8 = vpack.c.bf16 %v5852_v59, %v5851_v14  ;;  %v5277_v58 = vpop.f32.mrf.mxu0 }
 0x612   : > { %v9060_v34 = vpop.f32.mrf.mxu1  ;;  %v5824_v1 = vadd.f32 %v10519_v55, %v5277_v58 }
 0x613   : > { %7949 = vmatmul.mubr.msk.bf16.gmra.mxu1 %vm613_vm1, %v5876_v8  ;;  %v9089_v40 = vpop.f32.mrf.mxu0 }
 0x614   : > { %v5148_v7 = vpop.f32.mrf.mxu1  ;;  %6104 = vmatprep.mubr.bf16.mxu1 %v9502_v44  ;;  %v5856_v2 = vmax.f32 %v5824_v1, 0.0 }
 0x615   : > { %v5821_v24 = vadd.f32 %v10519_v55, %v5148_v7  ;;  %v5280_v50 = vpop.f32.mrf.mxu0 }
 0x616   : > { %v9071_v15 = vpop.f32.mrf.mxu1 }
 0x617   : > { %v5853_v35 = vmax.f32 %v5821_v24, 0.0  ;;  %v9090_v43 = vpop.f32.mrf.mxu0 }
 0x618   : > { %v5151_v54 = vpop.f32.mrf.mxu1 }
 0x619   : > { %v5877_v16 = vpack.c.bf16 %v5854_v62, %v5853_v35  ;;  %v5363_v19 = vpop.f32.mrf.mxu0 }
 0x61a   : > { %v9072_v22 = vpop.f32.mrf.mxu1  ;;  %v5826_v23 = vadd.f32 %v10519_v55, %v5363_v19 }
 0x61b   : > { %7950 = vmatmul.mubr.msk.bf16.gmra.mxu1 %vm613_vm1, %v5877_v16  ;;  %v9101_v49 = vpop.f32.mrf.mxu0 }
 0x61c   : > { %v5234_v13 = vpop.f32.mrf.mxu1  ;;  %6114 = vmatprep.mubr.bf16.mxu1 %v9502_v44  ;;  %v5858_v21 = vmax.f32 %v5826_v23, 0.0 }
 0x61d   : > { %v5823_v41 = vadd.f32 %v10519_v55, %v5234_v13  ;;  %v5366_v9 = vpop.f32.mrf.mxu0 }
 0x61e   : > { %v9083_v27 = vpop.f32.mrf.mxu1 }
 0x61f   : > { %v5855_v31 = vmax.f32 %v5823_v41, 0.0  ;;  %v9102_v60 = vpop.f32.mrf.mxu0 }
 0x620   : > { %v5237_v25 = vpop.f32.mrf.mxu1 }
 0x621   : > { %v5878_v6 = vpack.c.bf16 %v5856_v2, %v5855_v31  ;;  %v5449_v17 = vpop.f32.mrf.mxu0 }
 0x622   : > { %v9084_v63 = vpop.f32.mrf.mxu1  ;;  %v5828_v45 = vadd.f32 %v10519_v55, %v5449_v17 }
 0x623   : > { %7951 = vmatmul.mubr.msk.bf16.gmra.mxu1 %vm613_vm1, %v5878_v6  ;;  %v9113_v37 = vpop.f32.mrf.mxu0 }
 0x624   : > { %v5320_v28 = vpop.f32.mrf.mxu1  ;;  %6124 = vmatprep.mubr.bf16.mxu1 %v9502_v44  ;;  %v5860_v5 = vmax.f32 %v5828_v45, 0.0 }
 0x625   : > { %v5825_v32 = vadd.f32 %v10519_v55, %v5320_v28  ;;  %v5452_v20 = vpop.f32.mrf.mxu0 }
 0x626   : > { %v9095_v3 = vpop.f32.mrf.mxu1 }
 0x627   : > { %v5857_v10 = vmax.f32 %v5825_v32, 0.0  ;;  %v9114_v51 = vpop.f32.mrf.mxu0 }
 0x628   : > { %v5323_v48 = vpop.f32.mrf.mxu1 }
 0x629   : > { %v5879_v12 = vpack.c.bf16 %v5858_v21, %v5857_v10  ;;  %v5535_v56 = vpop.f32.mrf.mxu0 }
 0x62a   : > { %v9096_v4 = vpop.f32.mrf.mxu1  ;;  %v5830_v0 = vadd.f32 %v10519_v55, %v5535_v56 }
 0x62b   : > { %7952 = vmatmul.mubr.msk.bf16.gmra.mxu1 %vm613_vm1, %v5879_v12  ;;  %v9125_v61 = vpop.f32.mrf.mxu0  ;;  %v5893_v4 = vld [vmem:[%s11648_s2 + $0x2b0] sm:$0x11] }
 0x62c   : > { %v5406_v42 = vpop.f32.mrf.mxu1  ;;  %6134 = vmatprep.mubr.bf16.mxu1 %v9502_v44  ;;  %v5862_v58 = vmax.f32 %v5830_v0, 0.0  ;;  %v5895_v61 = vunpack.c.h.bf16 %v5893_v4 }
 0x62d   : > { %v5827_v18 = vadd.f32 %v10519_v55, %v5406_v42  ;;  %v5538_v33 = vpop.f32.mrf.mxu0  ;;  %v5894_v42 = vunpack.c.l.bf16 %v5893_v4 }
 0x62e   : > { %v9107_v46 = vpop.f32.mrf.mxu1 }
 0x62f   : > { %v5859_v39 = vmax.f32 %v5827_v18, 0.0  ;;  %v9126_v59 = vpop.f32.mrf.mxu0 }
 0x630   : > { %v5409_v47 = vpop.f32.mrf.mxu1 }
 0x631   : > { %v5880_v52 = vpack.c.bf16 %v5860_v5, %v5859_v39  ;;  %v5621_v14 = vpop.f32.mrf.mxu0  ;;  %v10648_v5 = vrot.slane %v5895_v61, %v9607_v57 }
 0x632   : > { %v9108_v30 = vpop.f32.mrf.mxu1  ;;  %v5832_v50 = vadd.f32 %v10519_v55, %v5621_v14 }
 0x633   : > { %7953 = vmatmul.mubr.msk.bf16.gmra.mxu1 %vm613_vm1, %v5880_v52  ;;  %v9137_v11 = vpop.f32.mrf.mxu0 }
 0x634   : > { %v5492_v8 = vpop.f32.mrf.mxu1  ;;  %6144 = vmatprep.mubr.bf16.mxu1 %v9502_v44  ;;  %v5864_v16 = vmax.f32 %v5832_v50, 0.0 }
 0x635   : > { %v5829_v29 = vadd.f32 %v10519_v55, %v5492_v8  ;;  %v5624_v34 = vpop.f32.mrf.mxu0 }
 0x636   : > { %v9119_v40 = vpop.f32.mrf.mxu1 }
 0x637   : > { %v5861_v36 = vmax.f32 %v5829_v29, 0.0  ;;  %v9138_v7 = vpop.f32.mrf.mxu0 }
 0x638   : > { %v5495_v24 = vpop.f32.mrf.mxu1 }
 0x639   : > { %v5881_v62 = vpack.c.bf16 %v5862_v58, %v5861_v36  ;;  %v5707_v15 = vpop.f32.mrf.mxu0 }
 0x63a   : > { %v9120_v35 = vpop.f32.mrf.mxu1  ;;  %v5834_v41 = vadd.f32 %v10519_v55, %v5707_v15 }
 0x63b   : > { %7954 = vmatmul.mubr.msk.bf16.gmra.mxu1 %vm613_vm1, %v5881_v62  ;;  %v9149_v43 = vpop.f32.mrf.mxu0 }
 0x63c   : > { %v5578_v38 = vpop.f32.mrf.mxu1  ;;  %6154 = vmatprep.mubr.bf16.mxu1 %v9502_v44  ;;  %v5866_v25 = vmax.f32 %v5834_v41, 0.0 }
 0x63d   : > { %v5831_v54 = vadd.f32 %v10519_v55, %v5578_v38  ;;  %v5710_v1 = vpop.f32.mrf.mxu0 }
 0x63e   : > { %v9131_v19 = vpop.f32.mrf.mxu1 }
 0x63f   : > { %v5863_v22 = vmax.f32 %v5831_v54, 0.0  ;;  %v9150_v49 = vpop.f32.mrf.mxu0 }
 0x640   : > { %v5581_v26 = vpop.f32.mrf.mxu1 }
 0x641   : > { %v5882_v13 = vpack.c.bf16 %v5864_v16, %v5863_v22  ;;  %v5793_v2 = vpop.f32.mrf.mxu0 }
 0x642   : > { %v9132_v9 = vpop.f32.mrf.mxu1  ;;  %v5836_v32 = vadd.f32 %v10519_v55, %v5793_v2 }
 0x643   : > { %7955 = vmatmul.mubr.msk.bf16.gmra.mxu1 %vm613_vm1, %v5882_v13  ;;  %v9161_v27 = vpop.f32.mrf.mxu0 }
 0x644   : > { %v5664_v31 = vpop.f32.mrf.mxu1  ;;  %6164 = vmatprep.mubr.bf16.mxu1 %v9502_v44  ;;  %v5868_v10 = vmax.f32 %v5836_v32, 0.0 }
 0x645   : > { %v5833_v60 = vadd.f32 %v10519_v55, %v5664_v31  ;;  %v5796_v6 = vpop.f32.mrf.mxu0 }
 0x646   : > { %v9143_v23 = vpop.f32.mrf.mxu1 }
 0x647   : > { %v5865_v17 = vmax.f32 %v5833_v60, 0.0  ;;  %v9162_v63 = vpop.f32.mrf.mxu0 }
 0x648   : > { %v5667_v37 = vpop.f32.mrf.mxu1 }
 0x649   : > { %v5883_v28 = vpack.c.bf16 %v5866_v25, %v5865_v17 }
 0x64a   : > { %v9144_v21 = vpop.f32.mrf.mxu1 }
 0x64b   : > { %7956 = vmatmul.mubr.msk.bf16.gmra.mxu1 %vm613_vm1, %v5883_v28 }
 0x64c   : > { %v5750_v20 = vpop.f32.mrf.mxu1  ;;  %6174 = vmatprep.mubr.bf16.mxu1 %v9502_v44  ;;  %v10651_v44 = vrot.slane %v5894_v42, %v9607_v57 }
 0x64d   : > { %v5835_v3 = vadd.f32 %v10519_v55, %v5750_v20 }
 0x64e   : > { %v9155_v51 = vpop.f32.mrf.mxu1 }
 0x64f   : > { %v5867_v48 = vmax.f32 %v5835_v3, 0.0 }
 0x650   : > { %v5753_v12 = vpop.f32.mrf.mxu1 }
 0x651   : > { %v5884_v45 = vpack.c.bf16 %v5868_v10, %v5867_v48 }
 0x652   : > { %v9156_v56 = vpop.f32.mrf.mxu1 }
 0x653   : > { %7957 = vmatmul.mubr.msk.bf16.gmra.mxu1 %vm613_vm1, %v5884_v45 }
 0x683   : > { %v6026_v18 = vpop.f32.mrf.mxu1 }
 0x684   : > { %v6027_v59 = vadd.f32 %v6026_v18, %v10651_v44 }
 0x685   : > { %v6028_v55 = vpop.f32.mrf.mxu1 }
 0x686   : > { %v6029_v46 = vadd.f32 %v6028_v55, %v10648_v5  ;;  %v6185_v11 = vmax.f32 %v6027_v59, 0.0 }
 0x687   : > { %v6030_v33 = vpop.f32.mrf.mxu1 }
 0x688   : > { %v6031_v39 = vadd.f32 %v6030_v33, %v10651_v44  ;;  %v6186_v14 = vmax.f32 %v6029_v46, 0.0 }
 0x689   : > { %v6032_v47 = vpop.f32.mrf.mxu1 }
 0x68a   : > { %v6033_v52 = vadd.f32 %v6032_v47, %v10648_v5  ;;  %v6187_v0 = vmax.f32 %v6031_v39, 0.0 }
 0x68c   : > { %v6188_v30 = vmax.f32 %v6033_v52, 0.0  ;;  %v6544_v29 = vpack.c.bf16 %v6187_v0, %v6185_v11 }
 0x68e   : > { %v6249_v8 = vpack.c.bf16 %v6188_v30, %v6186_v14 }
 0x690   : > { %9171 = vmatprep.mubr.msk.bf16.mxu0 %vm613_vm1, %v6249_v8  ;;  %6962 = vmatprep.mubr.bf16.mxu1 %v6249_v8 }
 0x691   : > { %6963 = vmatmul.mubr.bf16.vlgmr.msra.gmra.mxu1 %v6544_v29 }
 0x693   : > { %v6036_v58 = vpop.f32.mrf.mxu1 }
 0x694   : > { %v6037_v24 = vadd.f32 %v6036_v58, %v10651_v44 }
 0x695   : > { %v6038_v34 = vpop.f32.mrf.mxu1 }
 0x696   : > { %v6039_v36 = vadd.f32 %v6038_v34, %v10648_v5  ;;  %v6189_v38 = vmax.f32 %v6037_v24, 0.0 }
 0x697   : > { %v6040_v40 = vpop.f32.mrf.mxu1 }
 0x698   : > { %v6041_v7 = vadd.f32 %v6040_v40, %v10651_v44  ;;  %v6190_v35 = vmax.f32 %v6039_v36, 0.0 }
 0x699   : > { %v6042_v62 = vpop.f32.mrf.mxu1 }
 0x69a   : > { %v6043_v50 = vadd.f32 %v6042_v62, %v10648_v5  ;;  %v6191_v15 = vmax.f32 %v6041_v7, 0.0 }
 0x69c   : > { %v6192_v43 = vmax.f32 %v6043_v50, 0.0  ;;  %v6545_v16 = vpack.c.bf16 %v6191_v15, %v6189_v38 }
 0x69e   : > { %v6250_v54 = vpack.c.bf16 %v6192_v43, %v6190_v35 }
 0x6a0   : > { %9172 = vmatmul.mubr.msk.bf16.vlgmr.msra.gmra.mxu0 %vm613_vm1, %v6250_v54  ;;  %6970 = vmatprep.mubr.bf16.mxu1 %v6250_v54 }
 0x6a1   : > { %6971 = vmatmul.mubr.bf16.gmra.mxu1 %v6545_v16 }
 0x6a3   : > { %v6046_v1 = vpop.f32.mrf.mxu1 }
 0x6a4   : > { %v6047_v13 = vadd.f32 %v6046_v1, %v10651_v44 }
 0x6a5   : > { %v6048_v19 = vpop.f32.mrf.mxu1 }
 0x6a6   : > { %v6049_v49 = vadd.f32 %v6048_v19, %v10648_v5  ;;  %v6193_v60 = vmax.f32 %v6047_v13, 0.0 }
 0x6a7   : > { %v6050_v22 = vpop.f32.mrf.mxu1 }
 0x6a8   : > { %v6051_v26 = vadd.f32 %v6050_v22, %v10651_v44  ;;  %v6194_v27 = vmax.f32 %v6049_v49, 0.0 }
 0x6a9   : > { %v6052_v41 = vpop.f32.mrf.mxu1 }
 0x6aa   : > { %v6053_v2 = vadd.f32 %v6052_v41, %v10648_v5  ;;  %v6195_v9 = vmax.f32 %v6051_v26, 0.0 }
 0x6ac   : > { %v6196_v31 = vmax.f32 %v6053_v2, 0.0  ;;  %v6546_v6 = vpack.c.bf16 %v6195_v9, %v6193_v60 }
 0x6ae   : > { %v6251_v25 = vpack.c.bf16 %v6196_v31, %v6194_v27 }
 0x6b0   : > { %9175 = vmatprep.mubr.msk.bf16.mxu0 %vm613_vm1, %v6251_v25  ;;  %6978 = vmatprep.mubr.bf16.mxu1 %v6251_v25 }
 0x6b1   : > { %6979 = vmatmul.mubr.bf16.gmra.mxu1 %v6546_v6 }
 0x6b3   : > { %v6056_v23 = vpop.f32.mrf.mxu1 }
 0x6b4   : > { %v6057_v32 = vadd.f32 %v6056_v23, %v10651_v44 }
 0x6b5   : > { %v6058_v17 = vpop.f32.mrf.mxu1 }
 0x6b6   : > { %v6059_v37 = vadd.f32 %v6058_v17, %v10648_v5  ;;  %v6197_v12 = vmax.f32 %v6057_v32, 0.0 }
 0x6b7   : > { %v6060_v63 = vpop.f32.mrf.mxu1 }
 0x6b8   : > { %v6061_v28 = vadd.f32 %v6060_v63, %v10651_v44  ;;  %v6198_v51 = vmax.f32 %v6059_v37, 0.0 }
 0x6b9   : > { %v6062_v21 = vpop.f32.mrf.mxu1 }
 0x6ba   : > { %v6063_v20 = vadd.f32 %v6062_v21, %v10648_v5  ;;  %v6199_v3 = vmax.f32 %v6061_v28, 0.0 }
 0x6bb   : > { %v6066_v10 = vpop.f32.mrf.mxu1 }
 0x6bc   : > { %v6200_v48 = vmax.f32 %v6063_v20, 0.0  ;;  %v6547_v4 = vpack.c.bf16 %v6199_v3, %v6197_v12  ;;  %v6067_v55 = vadd.f32 %v6066_v10, %v10651_v44 }
 0x6bd   : > { %v6068_v45 = vpop.f32.mrf.mxu1 }
 0x6be   : > { %v6252_v56 = vpack.c.bf16 %v6200_v48, %v6198_v51  ;;  %v6069_v42 = vadd.f32 %v6068_v45, %v10648_v5  ;;  %v6201_v0 = vmax.f32 %v6067_v55, 0.0 }
 0x6bf   : > { %v6070_v61 = vpop.f32.mrf.mxu1 }
 0x6c0   : > { %v6071_v18 = vadd.f32 %v6070_v61, %v10651_v44  ;;  %9176 = vmatmul.mubr.msk.bf16.gmra.mxu0 %vm613_vm1, %v6252_v56  ;;  %6986 = vmatprep.mubr.bf16.mxu1 %v6252_v56  ;;  %v6202_v47 = vmax.f32 %v6069_v42, 0.0 }
 0x6c1   : > { %v6072_v33 = vpop.f32.mrf.mxu1  ;;  %6987 = vmatmul.mubr.bf16.gmra.mxu1 %v6547_v4 }
 0x6c2   : > { %v6073_v46 = vadd.f32 %v6072_v33, %v10648_v5  ;;  %v6203_v39 = vmax.f32 %v6071_v18, 0.0 }
 0x6c3   : > { %v6076_v59 = vpop.f32.mrf.mxu1 }
 0x6c4   : > { %v6204_v52 = vmax.f32 %v6073_v46, 0.0  ;;  %v6548_v11 = vpack.c.bf16 %v6203_v39, %v6201_v0  ;;  %v6077_v34 = vadd.f32 %v6076_v59, %v10651_v44 }
 0x6c5   : > { %v6078_v14 = vpop.f32.mrf.mxu1 }
 0x6c6   : > { %v6253_v30 = vpack.c.bf16 %v6204_v52, %v6202_v47  ;;  %v6079_v29 = vadd.f32 %v6078_v14, %v10648_v5  ;;  %v6205_v15 = vmax.f32 %v6077_v34, 0.0  ;;  %v9298_v47 = vld [vmem:[%s11648_s2 + $0x260] ss:$8 sps:$4 sm:$0xff]  }
 0x6c7   : > { %v6080_v8 = vpop.f32.mrf.mxu1  ;;  %9203 = vmatprep.subr.bf16.mxu0 %v9298_v47 }
 0x6c8   : > { %v6081_v58 = vadd.f32 %v6080_v8, %v10651_v44  ;;  %9179 = vmatprep.mubr.msk.bf16.mxu0 %vm613_vm1, %v6253_v30  ;;  %6994 = vmatprep.mubr.bf16.mxu1 %v6253_v30  ;;  %v6206_v62 = vmax.f32 %v6079_v29, 0.0 }
 0x6c9   : > { %v6082_v40 = vpop.f32.mrf.mxu1  ;;  %6995 = vmatmul.mubr.bf16.gmra.mxu1 %v6548_v11  ;;  %9204 = vmatpush3.bf16.msra.mxu0 %v9298_v47 }
 0x6ca   : > { %v6083_v36 = vadd.f32 %v6082_v40, %v10648_v5  ;;  %v6207_v7 = vmax.f32 %v6081_v58, 0.0  ;;  %v9299_v58 = vld [vmem:[%s11648_s2 + $0x250] ss:$8 sps:$4 sm:$0xff]  }
 0x6cb   : > { %v6086_v24 = vpop.f32.mrf.mxu1  ;;  %9205 = vmatprep.subr.bf16.mxu0 %v9299_v58 }
 0x6cc   : > { %v6208_v50 = vmax.f32 %v6083_v36, 0.0  ;;  %v6549_v38 = vpack.c.bf16 %v6207_v7, %v6205_v15  ;;  %v6087_v19 = vadd.f32 %v6086_v24, %v10651_v44 }
 0x6cd   : > { %v6088_v35 = vpop.f32.mrf.mxu1  ;;  %9206 = vmatpush3.bf16.msra.mxu0 %v9299_v58 }
 0x6ce   : > { %v6254_v43 = vpack.c.bf16 %v6208_v50, %v6206_v62  ;;  %v6089_v16 = vadd.f32 %v6088_v35, %v10648_v5  ;;  %v6209_v9 = vmax.f32 %v6087_v19, 0.0 }
 0x6cf   : > { %v6090_v54 = vpop.f32.mrf.mxu1 }
 0x6d0   : > { %v6091_v1 = vadd.f32 %v6090_v54, %v10651_v44  ;;  %9180 = vmatmul.mubr.msk.bf16.gmra.mxu0 %vm613_vm1, %v6254_v43  ;;  %7002 = vmatprep.mubr.bf16.mxu1 %v6254_v43  ;;  %v6210_v41 = vmax.f32 %v6089_v16, 0.0 }
 0x6d1   : > { %v6092_v22 = vpop.f32.mrf.mxu1  ;;  %7003 = vmatmul.mubr.bf16.gmra.mxu1 %v6549_v38 }
 0x6d2   : > { %v6093_v49 = vadd.f32 %v6092_v22, %v10648_v5  ;;  %v6211_v26 = vmax.f32 %v6091_v1, 0.0 }
 0x6d3   : > { %v6096_v13 = vpop.f32.mrf.mxu1 }
 0x6d4   : > { %v6212_v2 = vmax.f32 %v6093_v49, 0.0  ;;  %v6550_v60 = vpack.c.bf16 %v6211_v26, %v6209_v9  ;;  %v6097_v17 = vadd.f32 %v6096_v13, %v10651_v44 }
 0x6d5   : > { %v6098_v27 = vpop.f32.mrf.mxu1 }
 0x6d6   : > { %v6255_v31 = vpack.c.bf16 %v6212_v2, %v6210_v41  ;;  %v6099_v6 = vadd.f32 %v6098_v27, %v10648_v5  ;;  %v6213_v3 = vmax.f32 %v6097_v17, 0.0 }
 0x6d7   : > { %v6100_v25 = vpop.f32.mrf.mxu1 }
 0x6d8   : > { %v6101_v23 = vadd.f32 %v6100_v25, %v10651_v44  ;;  %9183 = vmatprep.mubr.msk.bf16.mxu0 %vm613_vm1, %v6255_v31  ;;  %7010 = vmatprep.mubr.bf16.mxu1 %v6255_v31  ;;  %v6214_v21 = vmax.f32 %v6099_v6, 0.0 }
 0x6d9   : > { %v6102_v63 = vpop.f32.mrf.mxu1  ;;  %7011 = vmatmul.mubr.bf16.gmra.mxu1 %v6550_v60 }
 0x6da   : > { %v6103_v37 = vadd.f32 %v6102_v63, %v10648_v5  ;;  %v6215_v28 = vmax.f32 %v6101_v23, 0.0 }
 0x6db   : > { %v6106_v32 = vpop.f32.mrf.mxu1 }
 0x6dc   : > { %v6216_v20 = vmax.f32 %v6103_v37, 0.0  ;;  %v6551_v48 = vpack.c.bf16 %v6215_v28, %v6213_v3  ;;  %v6107_v4 = vadd.f32 %v6106_v32, %v10651_v44 }
 0x6dd   : > { %v6108_v10 = vpop.f32.mrf.mxu1 }
 0x6de   : > { %v6256_v51 = vpack.c.bf16 %v6216_v20, %v6214_v21  ;;  %v6109_v45 = vadd.f32 %v6108_v10, %v10648_v5  ;;  %v6217_v39 = vmax.f32 %v6107_v4, 0.0 }
 0x6df   : > { %v6110_v12 = vpop.f32.mrf.mxu1 }
 0x6e0   : > { %v6111_v56 = vadd.f32 %v6110_v12, %v10651_v44  ;;  %9184 = vmatmul.mubr.msk.bf16.gmra.mxu0 %vm613_vm1, %v6256_v51  ;;  %7018 = vmatprep.mubr.bf16.mxu1 %v6256_v51  ;;  %v6218_v33 = vmax.f32 %v6109_v45, 0.0 }
 0x6e1   : > { %v6112_v61 = vpop.f32.mrf.mxu1  ;;  %7019 = vmatmul.mubr.bf16.gmra.mxu1 %v6551_v48 }
 0x6e2   : > { %v6113_v42 = vadd.f32 %v6112_v61, %v10648_v5  ;;  %v6219_v18 = vmax.f32 %v6111_v56, 0.0 }
 0x6e3   : > { %v6116_v55 = vpop.f32.mrf.mxu1 }
 0x6e4   : > { %v6220_v46 = vmax.f32 %v6113_v42, 0.0  ;;  %v6552_v0 = vpack.c.bf16 %v6219_v18, %v6217_v39  ;;  %v6117_v8 = vadd.f32 %v6116_v55, %v10651_v44 }
 0x6e5   : > { %v6118_v59 = vpop.f32.mrf.mxu1 }
 0x6e6   : > { %v6257_v52 = vpack.c.bf16 %v6220_v46, %v6218_v33  ;;  %v6119_v30 = vadd.f32 %v6118_v59, %v10648_v5  ;;  %v6221_v62 = vmax.f32 %v6117_v8, 0.0 }
 0x6e7   : > { %v6120_v14 = vpop.f32.mrf.mxu1 }
 0x6e8   : > { %v6121_v11 = vadd.f32 %v6120_v14, %v10651_v44  ;;  %9187 = vmatprep.mubr.msk.bf16.mxu0 %vm613_vm1, %v6257_v52  ;;  %7026 = vmatprep.mubr.bf16.mxu1 %v6257_v52  ;;  %v6222_v7 = vmax.f32 %v6119_v30, 0.0 }
 0x6e9   : > { %v6122_v29 = vpop.f32.mrf.mxu1  ;;  %7027 = vmatmul.mubr.bf16.gmra.mxu1 %v6552_v0 }
 0x6ea   : > { %v6123_v34 = vadd.f32 %v6122_v29, %v10648_v5  ;;  %v6223_v40 = vmax.f32 %v6121_v11, 0.0 }
 0x6eb   : > { %v6126_v36 = vpop.f32.mrf.mxu1 }
 0x6ec   : > { %v6224_v24 = vmax.f32 %v6123_v34, 0.0  ;;  %v6553_v35 = vpack.c.bf16 %v6223_v40, %v6221_v62  ;;  %v6127_v16 = vadd.f32 %v6126_v36, %v10651_v44 }
 0x6ed   : > { %v6128_v50 = vpop.f32.mrf.mxu1 }
 0x6ee   : > { %v6258_v15 = vpack.c.bf16 %v6224_v24, %v6222_v7  ;;  %v6129_v38 = vadd.f32 %v6128_v50, %v10648_v5  ;;  %v6225_v41 = vmax.f32 %v6127_v16, 0.0 }
 0x6ef   : > { %v6130_v43 = vpop.f32.mrf.mxu1 }
 0x6f0   : > { %v6131_v54 = vadd.f32 %v6130_v43, %v10651_v44  ;;  %9188 = vmatmul.mubr.msk.bf16.gmra.mxu0 %vm613_vm1, %v6258_v15  ;;  %7034 = vmatprep.mubr.bf16.mxu1 %v6258_v15  ;;  %v6226_v26 = vmax.f32 %v6129_v38, 0.0 }
 0x6f1   : > { %v6132_v1 = vpop.f32.mrf.mxu1  ;;  %7035 = vmatmul.mubr.bf16.gmra.mxu1 %v6553_v35 }
 0x6f2   : > { %v6133_v19 = vadd.f32 %v6132_v1, %v10648_v5  ;;  %v6227_v22 = vmax.f32 %v6131_v54, 0.0 }
 0x6f3   : > { %v6136_v49 = vpop.f32.mrf.mxu1 }
 0x6f4   : > { %v6228_v13 = vmax.f32 %v6133_v19, 0.0  ;;  %v6554_v27 = vpack.c.bf16 %v6227_v22, %v6225_v41  ;;  %v6137_v6 = vadd.f32 %v6136_v49, %v10651_v44 }
 0x6f5   : > { %v6138_v2 = vpop.f32.mrf.mxu1 }
 0x6f6   : > { %v6259_v9 = vpack.c.bf16 %v6228_v13, %v6226_v26  ;;  %v6139_v60 = vadd.f32 %v6138_v2, %v10648_v5  ;;  %v6229_v21 = vmax.f32 %v6137_v6, 0.0 }
 0x6f7   : > { %v6140_v31 = vpop.f32.mrf.mxu1 }
 0x6f8   : > { %v6141_v25 = vadd.f32 %v6140_v31, %v10651_v44  ;;  %9191 = vmatprep.mubr.msk.bf16.mxu0 %vm613_vm1, %v6259_v9  ;;  %7042 = vmatprep.mubr.bf16.mxu1 %v6259_v9  ;;  %v6230_v28 = vmax.f32 %v6139_v60, 0.0 }
 0x6f9   : > { %v6142_v23 = vpop.f32.mrf.mxu1  ;;  %7043 = vmatmul.mubr.bf16.gmra.mxu1 %v6554_v27 }
 0x6fa   : > { %v6143_v17 = vadd.f32 %v6142_v23, %v10648_v5  ;;  %v6231_v63 = vmax.f32 %v6141_v25, 0.0 }
 0x6fb   : > { %v6146_v37 = vpop.f32.mrf.mxu1 }
 0x6fc   : > { %v6232_v32 = vmax.f32 %v6143_v17, 0.0  ;;  %v6555_v10 = vpack.c.bf16 %v6231_v63, %v6229_v21  ;;  %v6147_v45 = vadd.f32 %v6146_v37, %v10651_v44 }
 0x6fd   : > { %v6148_v20 = vpop.f32.mrf.mxu1 }
 0x6fe   : > { %v6260_v3 = vpack.c.bf16 %v6232_v32, %v6230_v28  ;;  %v6149_v48 = vadd.f32 %v6148_v20, %v10648_v5  ;;  %v6233_v33 = vmax.f32 %v6147_v45, 0.0  ;;  %v6273_v28 = vld [vmem:[%s11648_s2 + $0x2c0] sm:$0x1] }
 0x6ff   : > { %v6150_v51 = vpop.f32.mrf.mxu1  ;;  %v6274_v32 = vunpack.c.l.bf16 %v6273_v28 }
 0x700   : > { %v6151_v12 = vadd.f32 %v6150_v51, %v10651_v44  ;;  %9192 = vmatmul.mubr.msk.bf16.gmra.mxu0 %vm613_vm1, %v6260_v3  ;;  %7050 = vmatprep.mubr.bf16.mxu1 %v6260_v3  ;;  %v6234_v18 = vmax.f32 %v6149_v48, 0.0 }
 0x701   : > { %v6152_v56 = vpop.f32.mrf.mxu1  ;;  %7051 = vmatmul.mubr.bf16.gmra.mxu1 %v6555_v10  ;;  %v10743_v21 = vrot.slane %v6274_v32, %v9607_v57 }
 0x702   : > { %v6153_v4 = vadd.f32 %v6152_v56, %v10648_v5  ;;  %v6235_v61 = vmax.f32 %v6151_v12, 0.0 }
 0x703   : > { %v6156_v42 = vpop.f32.mrf.mxu1 }
 0x704   : > { %v6236_v55 = vmax.f32 %v6153_v4, 0.0  ;;  %v6556_v59 = vpack.c.bf16 %v6235_v61, %v6233_v33  ;;  %v6157_v14 = vadd.f32 %v6156_v42, %v10651_v44 }
 0x705   : > { %v6158_v46 = vpop.f32.mrf.mxu1 }
 0x706   : > { %v6261_v39 = vpack.c.bf16 %v6236_v55, %v6234_v18  ;;  %v6159_v52 = vadd.f32 %v6158_v46, %v10648_v5  ;;  %v6237_v40 = vmax.f32 %v6157_v14, 0.0 }
 0x707   : > { %v6160_v47 = vpop.f32.mrf.mxu1 }
 0x708   : > { %v6161_v0 = vadd.f32 %v6160_v47, %v10651_v44  ;;  %9195 = vmatprep.mubr.msk.bf16.mxu0 %vm613_vm1, %v6261_v39  ;;  %7058 = vmatprep.mubr.bf16.mxu1 %v6261_v39  ;;  %v6238_v58 = vmax.f32 %v6159_v52, 0.0 }
 0x709   : > { %v6162_v30 = vpop.f32.mrf.mxu1  ;;  %7059 = vmatmul.mubr.bf16.gmra.mxu1 %v6556_v59 }
 0x70a   : > { %v6163_v11 = vadd.f32 %v6162_v30, %v10648_v5  ;;  %v6239_v8 = vmax.f32 %v6161_v0, 0.0 }
 0x70b   : > { %v6166_v29 = vpop.f32.mrf.mxu1 }
 0x70c   : > { %v6240_v34 = vmax.f32 %v6163_v11, 0.0  ;;  %v6557_v24 = vpack.c.bf16 %v6239_v8, %v6237_v40  ;;  %v6167_v35 = vadd.f32 %v6166_v29, %v10651_v44 }
 0x70d   : > { %v6168_v36 = vpop.f32.mrf.mxu1 }
 0x70e   : > { %v6262_v7 = vpack.c.bf16 %v6240_v34, %v6238_v58  ;;  %v6169_v50 = vadd.f32 %v6168_v36, %v10648_v5  ;;  %v6241_v22 = vmax.f32 %v6167_v35, 0.0 }
 0x70f   : > { %v6170_v62 = vpop.f32.mrf.mxu1 }
 0x710   : > { %v6171_v15 = vadd.f32 %v6170_v62, %v10651_v44  ;;  %9196 = vmatmul.mubr.msk.bf16.gmra.mxu0 %vm613_vm1, %v6262_v7  ;;  %7066 = vmatprep.mubr.bf16.mxu1 %v6262_v7  ;;  %v6242_v1 = vmax.f32 %v6169_v50, 0.0 }
 0x711   : > { %v6172_v43 = vpop.f32.mrf.mxu1  ;;  %7067 = vmatmul.mubr.bf16.gmra.mxu1 %v6557_v24 }
 0x712   : > { %v6173_v38 = vadd.f32 %v6172_v43, %v10648_v5  ;;  %v6243_v54 = vmax.f32 %v6171_v15, 0.0 }
 0x713   : > { %v6176_v16 = vpop.f32.mrf.mxu1 }
 0x714   : > { %v6244_v19 = vmax.f32 %v6173_v38, 0.0  ;;  %v6558_v13 = vpack.c.bf16 %v6243_v54, %v6241_v22  ;;  %v6177_v27 = vadd.f32 %v6176_v16, %v10651_v44 }
 0x715   : > { %v6178_v49 = vpop.f32.mrf.mxu1 }
 0x716   : > { %v6263_v26 = vpack.c.bf16 %v6244_v19, %v6242_v1  ;;  %v6179_v2 = vadd.f32 %v6178_v49, %v10648_v5  ;;  %v6245_v17 = vmax.f32 %v6177_v27, 0.0 }
 0x717   : > { %v6180_v41 = vpop.f32.mrf.mxu1 }
 0x718   : > { %v6181_v9 = vadd.f32 %v6180_v41, %v10651_v44  ;;  %9199 = vmatprep.mubr.msk.bf16.mxu0 %vm613_vm1, %v6263_v26  ;;  %7074 = vmatprep.mubr.bf16.mxu1 %v6263_v26  ;;  %v6246_v6 = vmax.f32 %v6179_v2, 0.0 }
 0x719   : > { %v6182_v31 = vpop.f32.mrf.mxu1  ;;  %7075 = vmatmul.mubr.bf16.gmra.mxu1 %v6558_v13 }
 0x71a   : > { %v6183_v60 = vadd.f32 %v6182_v31, %v10648_v5  ;;  %v6247_v25 = vmax.f32 %v6181_v9, 0.0 }
 0x71c   : > { %v6248_v23 = vmax.f32 %v6183_v60, 0.0  ;;  %v6559_v37 = vpack.c.bf16 %v6247_v25, %v6245_v17 }
 0x71e   : > { %v6264_v63 = vpack.c.bf16 %v6248_v23, %v6246_v6 }
 0x720   : > { %9200 = vmatmul.mubr.msk.bf16.gmra.mxu0 %vm613_vm1, %v6264_v63  ;;  %7082 = vmatprep.mubr.bf16.mxu1 %v6264_v63 }
 0x721   : > { %7083 = vmatmul.mubr.bf16.gmra.mxu1 %v6559_v37 }
 0x760   : > { %v9173_v44 = vpop.f32.mrf.mxu0 }
 0x761   : > { %v6394_v51 = vadd.f32 %v9173_v44, %v10743_v21 }
 0x762   : > { %v6385_v5 = vpop.f32.mrf.mxu0 }
 0x763   : > { %v6386_v3 = vadd.f32 %v6385_v5, %v10743_v21  ;;  %v6514_v61 = vmax.f32 %v6394_v51, 0.0 }
 0x764   : > { %v9174_v20 = vpop.f32.mrf.mxu0 }
 0x765   : > { %v6397_v10 = vadd.f32 %v9174_v20, %v10743_v21  ;;  %v6512_v56 = vmax.f32 %v6386_v3, 0.0 }
 0x766   : > { %v6388_v48 = vpop.f32.mrf.mxu0 }
 0x767   : > { %v6389_v12 = vadd.f32 %v6388_v48, %v10743_v21  ;;  %v6515_v45 = vmax.f32 %v6397_v10, 0.0  ;;  %v10773_v48 = vpop.f32.mrf.mxu1 }
 0x769   : > { %v6513_v4 = vmax.f32 %v6389_v12, 0.0  ;;  %v6593_v18 = vpack.c.bf16 %v6515_v45, %v6514_v61 }
 0x76b   : > { %v6592_v42 = vpack.c.bf16 %v6513_v4, %v6512_v56  ;;  %v10776_v4 = vpop.f32.mrf.mxu1 }
 0x76d   : > { %9207 = vmatprep.mubr.msk.bf16.mxu0 %vm6624_vm5, %v6592_v42  ;;  %v10779_v42 = vpop.f32.mrf.mxu1 }
 0x76e   : > { %9208 = vmatmul.mubr.msk.bf16.vlgmr.msra.gmra.mxu0 %vm6624_vm5, %v6593_v18 }
 0x780   : > { %v9177_v55 = vpop.f32.mrf.mxu0 }
 0x781   : > { %v6410_v47 = vadd.f32 %v9177_v55, %v10743_v21 }
 0x782   : > { %v6401_v33 = vpop.f32.mrf.mxu0 }
 0x783   : > { %v6402_v39 = vadd.f32 %v6401_v33, %v10743_v21  ;;  %v6518_v8 = vmax.f32 %v6410_v47, 0.0 }
 0x784   : > { %v9178_v46 = vpop.f32.mrf.mxu0 }
 0x785   : > { %v6413_v59 = vadd.f32 %v9178_v46, %v10743_v21  ;;  %v6516_v30 = vmax.f32 %v6402_v39, 0.0  ;;  %v10783_v39 = vpop.f32.mrf.mxu1 }
 0x786   : > { %v6404_v52 = vpop.f32.mrf.mxu0 }
 0x787   : > { %v6405_v0 = vadd.f32 %v6404_v52, %v10743_v21  ;;  %v6519_v14 = vmax.f32 %v6413_v59, 0.0 }
 0x789   : > { %v6517_v11 = vmax.f32 %v6405_v0, 0.0  ;;  %v6595_v58 = vpack.c.bf16 %v6519_v14, %v6518_v8  ;;  %v10787_v0 = vpop.f32.mrf.mxu1 }
 0x78b   : > { %v6594_v29 = vpack.c.bf16 %v6517_v11, %v6516_v30 }
 0x78d   : > { %9211 = vmatprep.mubr.msk.bf16.mxu0 %vm6624_vm5, %v6594_v29 }
 0x78e   : > { %9212 = vmatmul.mubr.msk.bf16.gmra.mxu0 %vm6624_vm5, %v6595_v58  ;;  %v10789_v58 = vpop.f32.mrf.mxu1 }
 0x790   : > { %v9181_v34 = vpop.f32.mrf.mxu0 }
 0x791   : > { %v6426_v62 = vadd.f32 %v9181_v34, %v10743_v21 }
 0x792   : > { %v6417_v40 = vpop.f32.mrf.mxu0 }
 0x793   : > { %v6418_v7 = vadd.f32 %v6417_v40, %v10743_v21  ;;  %v6522_v54 = vmax.f32 %v6426_v62, 0.0  ;;  %v10793_v40 = vpop.f32.mrf.mxu1 }
 0x794   : > { %v9182_v36 = vpop.f32.mrf.mxu0 }
 0x795   : > { %v6429_v24 = vadd.f32 %v9182_v36, %v10743_v21  ;;  %v6520_v43 = vmax.f32 %v6418_v7, 0.0 }
 0x796   : > { %v6420_v50 = vpop.f32.mrf.mxu0 }
 0x797   : > { %v6421_v15 = vadd.f32 %v6420_v50, %v10743_v21  ;;  %v6523_v35 = vmax.f32 %v6429_v24, 0.0  ;;  %v10795_v24 = vpop.f32.mrf.mxu1 }
 0x799   : > { %v6521_v38 = vmax.f32 %v6421_v15, 0.0  ;;  %v6597_v1 = vpack.c.bf16 %v6523_v35, %v6522_v54  ;;  %v10799_v35 = vpop.f32.mrf.mxu1 }
 0x79b   : > { %v6596_v16 = vpack.c.bf16 %v6521_v38, %v6520_v43 }
 0x79d   : > { %9215 = vmatprep.mubr.msk.bf16.mxu0 %vm6624_vm5, %v6596_v16 }
 0x79e   : > { %9216 = vmatmul.mubr.msk.bf16.gmra.mxu0 %vm6624_vm5, %v6597_v1 }
 0x7a0   : > { %v9185_v19 = vpop.f32.mrf.mxu0 }
 0x7a1   : > { %v6442_v41 = vadd.f32 %v9185_v19, %v10743_v21 }
 0x7a2   : > { %v6433_v22 = vpop.f32.mrf.mxu0 }
 0x7a3   : > { %v6434_v26 = vadd.f32 %v6433_v22, %v10743_v21  ;;  %v6526_v25 = vmax.f32 %v6442_v41, 0.0  ;;  %v10803_v22 = vpop.f32.mrf.mxu1 }
 0x7a4   : > { %v9186_v49 = vpop.f32.mrf.mxu0 }
 0x7a5   : > { %v6445_v13 = vadd.f32 %v9186_v49, %v10743_v21  ;;  %v6524_v31 = vmax.f32 %v6434_v26, 0.0  ;;  %v10806_v41 = vpop.f32.mrf.mxu1 }
 0x7a6   : > { %v6436_v2 = vpop.f32.mrf.mxu0 }
 0x7a7   : > { %v6437_v9 = vadd.f32 %v6436_v2, %v10743_v21  ;;  %v6527_v27 = vmax.f32 %v6445_v13, 0.0 }
 0x7a9   : > { %v6525_v60 = vmax.f32 %v6437_v9, 0.0  ;;  %v6599_v23 = vpack.c.bf16 %v6527_v27, %v6526_v25  ;;  %v10809_v9 = vpop.f32.mrf.mxu1 }
 0x7ab   : > { %v6598_v6 = vpack.c.bf16 %v6525_v60, %v6524_v31  ;;  %v10811_v31 = vpop.f32.mrf.mxu1 }
 0x7ad   : > { %9219 = vmatprep.mubr.msk.bf16.mxu0 %vm6624_vm5, %v6598_v6 }
 0x7ae   : > { %9220 = vmatmul.mubr.msk.bf16.gmra.mxu0 %vm6624_vm5, %v6599_v23 }
 0x7b0   : > { %v9189_v17 = vpop.f32.mrf.mxu0 }
 0x7b1   : > { %v6458_v44 = vadd.f32 %v9189_v17, %v10743_v21 }
 0x7b2   : > { %v6449_v63 = vpop.f32.mrf.mxu0 }
 0x7b3   : > { %v6450_v28 = vadd.f32 %v6449_v63, %v10743_v21  ;;  %v6530_v12 = vmax.f32 %v6458_v44, 0.0 }
 0x7b4   : > { %v9190_v37 = vpop.f32.mrf.mxu0 }
 0x7b5   : > { %v6461_v32 = vadd.f32 %v9190_v37, %v10743_v21  ;;  %v6528_v10 = vmax.f32 %v6450_v28, 0.0  ;;  %v10817_v37 = vpop.f32.mrf.mxu1 }
 0x7b6   : > { %v6452_v5 = vpop.f32.mrf.mxu0 }
 0x7b7   : > { %v6453_v20 = vadd.f32 %v6452_v5, %v10743_v21  ;;  %v6531_v3 = vmax.f32 %v6461_v32, 0.0 }
 0x7b9   : > { %v6529_v51 = vmax.f32 %v6453_v20, 0.0  ;;  %v6601_v56 = vpack.c.bf16 %v6531_v3, %v6530_v12  ;;  %v10819_v3 = vpop.f32.mrf.mxu1 }
 0x7bb   : > { %v6600_v45 = vpack.c.bf16 %v6529_v51, %v6528_v10  ;;  %v8359_v51 = vpop.f32.mrf.mxu1 }
 0x7bd   : > { %9223 = vmatprep.mubr.msk.bf16.mxu0 %vm6624_vm5, %v6600_v45  ;;  %v10823_v12 = vpop.f32.mrf.mxu1 }
 0x7be   : > { %9224 = vmatmul.mubr.msk.bf16.gmra.mxu0 %vm6624_vm5, %v6601_v56 }
 0x7bf   : > { %v10825_v45 = vpop.f32.mrf.mxu1 }
 0x7c0   : > { %v9193_v61 = vpop.f32.mrf.mxu0 }
 0x7c1   : > { %v6474_v59 = vadd.f32 %v9193_v61, %v10743_v21 }
 0x7c2   : > { %v6465_v18 = vpop.f32.mrf.mxu0 }
 0x7c3   : > { %v6466_v33 = vadd.f32 %v6465_v18, %v10743_v21  ;;  %v6534_v8 = vmax.f32 %v6474_v59, 0.0 }
 0x7c4   : > { %v9194_v55 = vpop.f32.mrf.mxu0 }
 0x7c5   : > { %v6477_v46 = vadd.f32 %v9194_v55, %v10743_v21  ;;  %v6532_v30 = vmax.f32 %v6466_v33, 0.0 }
 0x7c6   : > { %v6468_v47 = vpop.f32.mrf.mxu0 }
 0x7c7   : > { %v6469_v52 = vadd.f32 %v6468_v47, %v10743_v21  ;;  %v6535_v14 = vmax.f32 %v6477_v46, 0.0 }
 0x7c9   : > { %v6533_v11 = vmax.f32 %v6469_v52, 0.0  ;;  %v6603_v34 = vpack.c.bf16 %v6535_v14, %v6534_v8 }
 0x7cb   : > { %v6602_v29 = vpack.c.bf16 %v6533_v11, %v6532_v30  ;;  %v7091_v30 = vld [vmem:[%s11648_s2 + $0x2d0] sm:$0x1] }
 0x7cc   : > { %v7092_v8 = vunpack.c.l.bf16 %v7091_v30 }
 0x7cd   : > { %9227 = vmatprep.mubr.msk.bf16.mxu0 %vm6624_vm5, %v6602_v29  ;;  %v10855_v29 = vand.u32 127, %v313_v53 }
 0x7ce   : > { %9228 = vmatmul.mubr.msk.bf16.gmra.mxu0 %vm6624_vm5, %v6603_v34 }
 0x7cf   : > { %vm7134_vm6 = vcmp.ge.s32.totalorder %v10855_v29, 5  ;;  %vm7135_vm7 = vcmp.le.s32.totalorder %v10855_v29, 7  ;;  %vm7131_vm9 = vcmp.ge.s32.totalorder %v10855_v29, 1  ;;  %vm7132_vm10 = vcmp.le.s32.totalorder %v10855_v29, 3 }
 0x7d0   : > { %v9197_v36 = vpop.f32.mrf.mxu0  ;;  %vm10870_vm8 = vmand %vm7134_vm6, %vm7135_vm7 }
 0x7d1   : > { %v6490_v43 = vadd.f32 %v9197_v36, %v10743_v21  ;;  %v8345_v36 = vadd.f32 %v10789_v58, %v10787_v0  ;;  %vm11359_vm11 = vmand %vm7131_vm9, %vm7132_vm10 }
 0x7d2   : > { %v6481_v7 = vpop.f32.mrf.mxu0 }
 0x7d3   : > { %v6482_v50 = vadd.f32 %v6481_v7, %v10743_v21  ;;  %v6538_v49 = vmax.f32 %v6490_v43, 0.0  ;;  %v10862_v7 = vrot.slane %v7092_v8, %v9607_v57  ;;  %v8348_v57 = vadd.f32 %v10795_v24, %v10793_v40 }
 0x7d4   : > { %v9198_v62 = vpop.f32.mrf.mxu0 }
 0x7d5   : > { %v6493_v15 = vadd.f32 %v9198_v62, %v10743_v21  ;;  %v6536_v1 = vmax.f32 %v6482_v50, 0.0  ;;  %v8339_v50 = vadd.f32 %v10776_v4, %v10773_v48 }
 0x7d6   : > { %v6484_v38 = vpop.f32.mrf.mxu0 }
 0x7d7   : > { %v6485_v54 = vadd.f32 %v6484_v38, %v10743_v21  ;;  %v6539_v16 = vmax.f32 %v6493_v15, 0.0 }
 0x7d9   : > { %v6537_v19 = vmax.f32 %v6485_v54, 0.0  ;;  %v6605_v13 = vpack.c.bf16 %v6539_v16, %v6538_v49  ;;  %v8342_v16 = vadd.f32 %v10783_v39, %v10779_v42 }
 0x7db   : > { %v6604_v26 = vpack.c.bf16 %v6537_v19, %v6536_v1 }
 0x7dd   : > { %9231 = vmatprep.mubr.msk.bf16.mxu0 %vm6624_vm5, %v6604_v26 }
 0x7de   : > { %9232 = vmatmul.mubr.msk.bf16.gmra.mxu0 %vm6624_vm5, %v6605_v13 }
 0x7e0   : > { %v9201_v2 = vpop.f32.mrf.mxu0 }
 0x7e1   : > { %v6506_v23 = vadd.f32 %v9201_v2, %v10743_v21 }
 0x7e2   : > { %v6497_v27 = vpop.f32.mrf.mxu0 }
 0x7e3   : > { %v6498_v25 = vadd.f32 %v6497_v27, %v10743_v21  ;;  %v6542_v5 = vmax.f32 %v6506_v23, 0.0 }
 0x7e4   : > { %v9202_v60 = vpop.f32.mrf.mxu0 }
 0x7e5   : > { %v6509_v6 = vadd.f32 %v9202_v60, %v10743_v21  ;;  %v6540_v32 = vmax.f32 %v6498_v25, 0.0 }
 0x7e6   : > { %v6500_v17 = vpop.f32.mrf.mxu0 }
 0x7e7   : > { %v6501_v63 = vadd.f32 %v6500_v17, %v10743_v21  ;;  %v6543_v28 = vmax.f32 %v6509_v6, 0.0  ;;  %v10827_v21 = vpop.f32.mrf.mxu1  ;;  %v8357_v17 = vadd.f32 %v10817_v37, %v10811_v31 }
 0x7e9   : > { %v6541_v44 = vmax.f32 %v6501_v63, 0.0  ;;  %v6607_v10 = vpack.c.bf16 %v6543_v28, %v6542_v5  ;;  %v10829_v56 = vpop.f32.mrf.mxu1  ;;  %v8351_v28 = vadd.f32 %v10803_v22, %v10799_v35 }
 0x7eb   : > { %v6606_v20 = vpack.c.bf16 %v6541_v44, %v6540_v32  ;;  %v10831_v61 = vpop.f32.mrf.mxu1 }
 0x7ed   : > { %9235 = vmatprep.mubr.msk.bf16.mxu0 %vm6624_vm5, %v6606_v20  ;;  %v10833_v18 = vpop.f32.mrf.mxu1  ;;  %v8360_v20 = vadd.f32 %v8359_v51, %v10819_v3 }
 0x7ee   : > { %9236 = vmatmul.mubr.msk.bf16.gmra.mxu0 %vm6624_vm5, %v6607_v10 }
 0x7ef   : > { %v10835_v55 = vpop.f32.mrf.mxu1 }
 0x7f1   : > { %v10837_v33 = vpop.f32.mrf.mxu1 }
 0x7f3   : > { %v10839_v46 = vpop.f32.mrf.mxu1 }
 0x7f5   : > { %v10841_v59 = vpop.f32.mrf.mxu1 }
 0x7f7   : > { %v10843_v47 = vpop.f32.mrf.mxu1 }
 0x7f9   : > { %v10845_v52 = vpop.f32.mrf.mxu1 }
 0x7fb   : > { %v10847_v14 = vpop.f32.mrf.mxu1 }
 0x7fd   : > { %v10852_v11 = vpop.f32.mrf.mxu1 }
 0x7ff   : > { %v10857_v34 = vpop.f32.mrf.mxu1 }
 0x801   : > { %v10868_v43 = vpop.f32.mrf.mxu1 }
 0x803   : > { %v10889_v19 = vpop.f32.mrf.mxu1 }
 0x805   : > { %v10904_v26 = vpop.f32.mrf.mxu1 }
 0x807   : > { %v10918_v27 = vpop.f32.mrf.mxu1 }
 0x809   : > { %v10920_v60 = vpop.f32.mrf.mxu1 }
 0x80b   : > { %v10922_v25 = vpop.f32.mrf.mxu1 }
 0x80d   : > { %v10924_v6 = vpop.f32.mrf.mxu1 }
 0x80f   : > { %v10926_v23 = vpop.f32.mrf.mxu1 }
 0x811   : > { %v10932_v44 = vpop.f32.mrf.mxu1 }
 0x813   : > { %v10948_v22 = vpop.f32.mrf.mxu1 }
 0x82e   : > { %v9209_v62 = vpop.f32.mrf.mxu0 }
 0x82f   : > { %v6973_v15 = vadd.f32 %v9209_v62, %v8345_v36  ;;  %v8354_v36 = vadd.f32 %v10809_v9, %v10806_v41  ;;  %v10959_v9 = vpop.f32.mrf.mxu1 }
 0x830   : > { %v6707_v53 = vpop.f32.mrf.mxu0 }
 0x831   : > { %v6965_v0 = vadd.f32 %v8339_v50, %v6707_v53  ;;  %v10877_v58 = vadd.f32 %v10862_v7, %v6973_v15  ;;  %v10971_v53 = vpop.f32.mrf.mxu1 }
 0x832   : > { %v9210_v54 = vpop.f32.mrf.mxu0 }
 0x833   : > { %v6976_v48 = vadd.f32 %v9210_v54, %v8348_v57  ;;  %v10884_v4 = vsel %vm10870_vm8, %v10877_v58, -inf  ;;  %v10887_v1 = vadd.f32 %v10862_v7, %v6965_v0  ;;  %v8369_v0 = vadd.f32 %v10833_v18, %v10831_v61 }
 0x834   : > { %7334 = vmax.xlane.f32.xlu1 %v10884_v4  ;;  %v6710_v40 = vpop.f32.mrf.mxu0  ;;  %v8366_v61 = vadd.f32 %v10829_v56, %v10827_v21 }
 0x835   : > { %v6968_v24 = vadd.f32 %v8342_v16, %v6710_v40  ;;  %v10895_v49 = vsel %vm10870_vm8, %v10887_v1, -inf  ;;  %v10899_v42 = vadd.f32 %v10862_v7, %v6976_v48  ;;  %v8363_v16 = vadd.f32 %v10825_v45, %v10823_v12  ;;  %v10983_v40 = vpop.f32.mrf.mxu1 }
 0x836   : > { %7330 = vmax.xlane.f32.xlu0 %v10895_v49 }
 0x837   : > { %v10902_v39 = vadd.f32 %v10862_v7, %v6968_v24  ;;  %v10909_v13 = vsel %vm10870_vm8, %v10899_v42, -inf  ;;  %v10997_v45 = vpop.f32.mrf.mxu1 }
 0x838   : > { %7336 = vmax.xlane.f32.xlu1 %v10909_v13 }
 0x839   : > { %v10915_v2 = vsel %vm10870_vm8, %v10902_v39, -inf  ;;  %v11011_v56 = vpop.f32.mrf.mxu1 }
 0x83a   : > { %7332 = vmax.xlane.f32.xlu0 %v10915_v2 }
 0x84e   : > { %v9213_v63 = vpop.f32.mrf.mxu0 }
 0x84f   : > { %v6989_v32 = vadd.f32 %v9213_v63, %v8357_v17  ;;  %v8372_v17 = vadd.f32 %v10837_v33, %v10835_v55 }
 0x850   : > { %v6723_v5 = vpop.f32.mrf.mxu0 }
 0x851   : > { %v6981_v10 = vadd.f32 %v8351_v28, %v6723_v5  ;;  %v10936_v30 = vadd.f32 %v10862_v7, %v6989_v32 }
 0x852   : > { %v9214_v8 = vpop.f32.mrf.mxu0 }
 0x853   : > { %v6992_v62 = vadd.f32 %v9214_v8, %v8360_v20  ;;  %v10943_v31 = vsel %vm10870_vm8, %v10936_v30, -inf  ;;  %v10946_v35 = vadd.f32 %v10862_v7, %v6981_v10 }
 0x854   : > { %7342 = vmax.xlane.f32.xlu0 %v10943_v31  ;;  %v6726_v37 = vpop.f32.mrf.mxu0 }
 0x855   : > { %v6984_v3 = vadd.f32 %v8354_v36, %v6726_v37  ;;  %v10952_v51 = vadd.f32 %v10862_v7, %v6992_v62  ;;  %v10957_v41 = vsel %vm10870_vm8, %v10946_v35, -inf  ;;  %v11023_v36 = vpop.f32.mrf.mxu1  ;;  %v8381_v37 = vadd.f32 %v10852_v11, %v10847_v14 }
 0x856   : > { %v8378_v14 = vadd.f32 %v10845_v52, %v10843_v47 }
 0x857   : > { %v10965_v50 = vsel %vm10870_vm8, %v10952_v51, -inf  ;;  %v10968_v15 = vadd.f32 %v10862_v7, %v6984_v3 }
 0x858   : > { %7338 = vmax.xlane.f32.xlu0 %v10957_v41  ;;  %7344 = vmax.xlane.f32.xlu1 %v10965_v50 }
 0x859   : > { %v10976_v57 = vsel %vm10870_vm8, %v10968_v15, -inf }
 0x85c   : > { %7340 = vmax.xlane.f32.xlu1 %v10976_v57 }
 0x85e   : > { %v9217_v54 = vpop.f32.mrf.mxu0 }
 0x85f   : > { %v7005_v48 = vadd.f32 %v9217_v54, %v8369_v0  ;;  %v8375_v0 = vadd.f32 %v10841_v59, %v10839_v46 }
 0x860   : > { %v6739_v24 = vpop.f32.mrf.mxu0 }
 0x861   : > { %v6997_v63 = vadd.f32 %v8363_v16, %v6739_v24  ;;  %v10988_v28 = vadd.f32 %v10862_v7, %v7005_v48  ;;  %v8407_v16 = vpop.f32.mrf.mxu1  ;;  %v8384_v24 = vadd.f32 %v10868_v43, %v10857_v34 }
 0x862   : > { %v9218_v32 = vpop.f32.mrf.mxu0 }
 0x863   : > { %v7008_v18 = vadd.f32 %v9218_v32, %v8372_v17  ;;  %v10995_v12 = vsel %vm10870_vm8, %v10988_v28, -inf  ;;  %v11001_v55 = vadd.f32 %v10862_v7, %v6997_v63  ;;  %v11047_v46 = vpop.f32.mrf.mxu1 }
 0x864   : > { %7350 = vmax.xlane.f32.xlu0 %v10995_v12  ;;  %v6742_v5 = vpop.f32.mrf.mxu0 }
 0x865   : > { %v7000_v33 = vadd.f32 %v8366_v61, %v6742_v5  ;;  %v11004_v20 = vadd.f32 %v10862_v7, %v7008_v18  ;;  %v11009_v21 = vsel %vm10870_vm8, %v11001_v55, -inf }
 0x867   : > { %v11017_v10 = vsel %vm10870_vm8, %v11004_v20, -inf  ;;  %v11020_v8 = vadd.f32 %v10862_v7, %v7000_v33  ;;  %v11069_v33 = vpop.f32.mrf.mxu1 }
 0x868   : > { %7346 = vmax.xlane.f32.xlu0 %v11009_v21  ;;  %7352 = vmax.xlane.f32.xlu1 %v11017_v10 }
 0x869   : > { %11669 = vst [vmem:[#allocation2_spill] sm:$0xff] %v11020_v8  ;;  %v11028_v62 = vsel %vm10870_vm8, %v11020_v8, -inf }
 0x86c   : > { %7348 = vmax.xlane.f32.xlu1 %v11028_v62 }
 0x86e   : > { %v9221_v3 = vpop.f32.mrf.mxu0 }
 0x86f   : > { %v7021_v54 = vadd.f32 %v9221_v3, %v8381_v37  ;;  %v11078_v3 = vpop.f32.mrf.mxu1 }
 0x870   : > { %v6755_v48 = vpop.f32.mrf.mxu0 }
 0x871   : > { %v7013_v17 = vadd.f32 %v8375_v0, %v6755_v48  ;;  %v11038_v63 = vadd.f32 %v10862_v7, %v7021_v54  ;;  %v8393_v0 = vadd.f32 %v10924_v6, %v10922_v25  ;;  %v8387_v48 = vadd.f32 %v10904_v26, %v10889_v19 }
 0x872   : > { %v9222_v32 = vpop.f32.mrf.mxu0 }
 0x873   : > { %11670 = vst [vmem:[#allocation3_spill] sm:$0xff] %v11038_v63  ;;  %v7024_v11 = vadd.f32 %v9222_v32, %v8384_v24  ;;  %v11045_v61 = vsel %vm10870_vm8, %v11038_v63, -inf  ;;  %v11051_v34 = vadd.f32 %v10862_v7, %v7013_v17  ;;  %v8413_v17 = vpop.f32.mrf.mxu1 }
 0x874   : > { %7358 = vmax.xlane.f32.xlu0 %v11045_v61  ;;  %v6758_v59 = vpop.f32.mrf.mxu0 }
 0x875   : > { %11671 = vst [vmem:[#allocation4_spill] sm:$0xff] %v11051_v34  ;;  %v7016_v43 = vadd.f32 %v8378_v14, %v6758_v59  ;;  %v11054_v18 = vadd.f32 %v10862_v7, %v7024_v11  ;;  %v11059_v47 = vsel %vm10870_vm8, %v11051_v34, -inf  ;;  %v8396_v14 = vadd.f32 %v10932_v44, %v10926_v23  ;;  %v8415_v19 = vpop.f32.mrf.mxu1 }
 0x877   : > { %11672 = vst [vmem:[#allocation5_spill] sm:$0xff] %v11054_v18  ;;  %v11064_v52 = vsel %vm10870_vm8, %v11054_v18, -inf  ;;  %v11067_v5 = vadd.f32 %v10862_v7, %v7016_v43 }
 0x878   : > { %7354 = vmax.xlane.f32.xlu0 %v11059_v47  ;;  %7360 = vmax.xlane.f32.xlu1 %v11064_v52 }
 0x879   : > { %11673 = vst [vmem:[#allocation6_spill] sm:$0xff] %v11067_v5  ;;  %v11076_v37 = vsel %vm10870_vm8, %v11067_v5, -inf  ;;  %v8390_v5 = vadd.f32 %v10920_v60, %v10918_v27 }
 0x87c   : > { %7356 = vmax.xlane.f32.xlu1 %v11076_v37 }
 0x87e   : > { %v9225_v54 = vpop.f32.mrf.mxu0 }
 0x87f   : > { %v7037_v24 = vadd.f32 %v9225_v54, %v8393_v0  ;;  %v8416_v54 = vpop.f32.mrf.mxu1 }
 0x880   : > { %v6771_v32 = vpop.f32.mrf.mxu0 }
 0x881   : > { %v7029_v11 = vadd.f32 %v8387_v48, %v6771_v32  ;;  %v11088_v59 = vadd.f32 %v10862_v7, %v7037_v24  ;;  %v8405_v48 = vadd.f32 %v11011_v56, %v10997_v45  ;;  %v8399_v32 = vadd.f32 %v10959_v9, %v10948_v22 }
 0x882   : > { %v9226_v43 = vpop.f32.mrf.mxu0 }
 0x883   : > { %11674 = vst [vmem:[#allocation7_spill] sm:$0xff] %v11088_v59  ;;  %v7040_v18 = vadd.f32 %v9226_v43, %v8396_v14  ;;  %v11095_v25 = vsel %vm10870_vm8, %v11088_v59, -inf  ;;  %v11099_v6 = vadd.f32 %v10862_v7, %v7029_v11 }
 0x884   : > { %7366 = vmax.xlane.f32.xlu0 %v11095_v25  ;;  %v6774_v26 = vpop.f32.mrf.mxu0 }
 0x885   : > { %11675 = vst [vmem:[#allocation8_spill] sm:$0xff] %v11099_v6  ;;  %v7032_v23 = vadd.f32 %v8390_v5, %v6774_v26  ;;  %v11102_v44 = vadd.f32 %v10862_v7, %v7040_v18  ;;  %v11107_v27 = vsel %vm10870_vm8, %v11099_v6, -inf  ;;  %v8418_v5 = vpop.f32.mrf.mxu1  ;;  %v8408_v26 = vadd.f32 %v8407_v16, %v11023_v36 }
 0x886   : > { %v8402_v6 = vadd.f32 %v10983_v40, %v10971_v53 }
 0x887   : > { %11676 = vst [vmem:[#allocation9_spill] sm:$0xff] %v11102_v44  ;;  %v11112_v60 = vsel %vm10870_vm8, %v11102_v44, -inf  ;;  %v11115_v0 = vadd.f32 %v10862_v7, %v7032_v23  ;;  %v8419_v11 = vpop.f32.mrf.mxu1 }
 0x888   : > { %7362 = vmax.xlane.f32.xlu0 %v11107_v27  ;;  %7368 = vmax.xlane.f32.xlu1 %v11112_v60 }
 0x889   : > { %11677 = vst [vmem:[#allocation10_spill] sm:$0xff] %v11115_v0  ;;  %v11122_v18 = vsel %vm10870_vm8, %v11115_v0, -inf  ;;  %v8421_v22 = vpop.f32.mrf.mxu1 }
 0x88c   : > { %7364 = vmax.xlane.f32.xlu1 %v11122_v18 }
 0x88e   : > { %v9229_v24 = vpop.f32.mrf.mxu0 }
 0x88f   : > { %v7053_v14 = vadd.f32 %v9229_v24, %v8405_v48  ;;  %v8422_v48 = vpop.f32.mrf.mxu1  ;;  %v8417_v24 = vadd.f32 %v8416_v54, %v8415_v19 }
 0x890   : > { %v6787_v43 = vpop.f32.mrf.mxu0 }
 0x891   : > { %v7045_v23 = vadd.f32 %v8399_v32, %v6787_v43  ;;  %v11131_v44 = vadd.f32 %v10862_v7, %v7053_v14  ;;  %v8411_v14 = vadd.f32 %v11069_v33, %v11047_v46 }
 0x892   : > { %v9230_v0 = vpop.f32.mrf.mxu0 }
 0x893   : > { %11678 = vst [vmem:[#allocation11_spill] sm:$0xff] %v11131_v44  ;;  %v7056_v59 = vadd.f32 %v9230_v0, %v8408_v26  ;;  %v11138_v45 = vsel %vm10870_vm8, %v11131_v44, -inf  ;;  %v11142_v56 = vadd.f32 %v10862_v7, %v7045_v23 }
 0x894   : > { %7374 = vmax.xlane.f32.xlu0 %v11138_v45  ;;  %v6790_v9 = vpop.f32.mrf.mxu0 }
 0x895   : > { %11679 = vst [vmem:[#allocation12_spill] sm:$0xff] %v11142_v56  ;;  %v7048_v36 = vadd.f32 %v8402_v6, %v6790_v9  ;;  %v11145_v16 = vadd.f32 %v10862_v7, %v7056_v59  ;;  %v11150_v53 = vsel %vm10870_vm8, %v11142_v56, -inf  ;;  %v8424_v6 = vpop.f32.mrf.mxu1  ;;  %v8420_v9 = vadd.f32 %v8419_v11, %v8418_v5 }
 0x897   : > { %11680 = vst [vmem:[#allocation13_spill] sm:$0xff] %v11145_v16  ;;  %v11155_v40 = vsel %vm10870_vm8, %v11145_v16, -inf  ;;  %v11158_v0 = vadd.f32 %v10862_v7, %v7048_v36  ;;  %v8425_v26 = vpop.f32.mrf.mxu1 }
 0x898   : > { %7370 = vmax.xlane.f32.xlu0 %v11150_v53  ;;  %7376 = vmax.xlane.f32.xlu1 %v11155_v40 }
 0x899   : > { %11681 = vst [vmem:[#allocation14_spill] sm:$0xff] %v11158_v0  ;;  %v11165_v59 = vsel %vm10870_vm8, %v11158_v0, -inf  ;;  %v8414_v0 = vadd.f32 %v8413_v17, %v11078_v3  ;;  %v8427_v54 = vpop.f32.mrf.mxu1 }
 0x89c   : > { %7372 = vmax.xlane.f32.xlu1 %v11165_v59 }
 0x89e   : > { %v9233_v32 = vpop.f32.mrf.mxu0 }
 0x89f   : > { %v7069_v43 = vadd.f32 %v9233_v32, %v8417_v24  ;;  %v8428_v24 = vpop.f32.mrf.mxu1 }
 0x8a0   : > { %v6803_v23 = vpop.f32.mrf.mxu0 }
 0x8a1   : > { %v7061_v36 = vadd.f32 %v8411_v14, %v6803_v23  ;;  %v11171_v16 = vadd.f32 %v10862_v7, %v7069_v43  ;;  %v8423_v14 = vadd.f32 %v8422_v48, %v8421_v22  ;;  %v8429_v43 = vadd.f32 %v8428_v24, %v8427_v54 }
 0x8a2   : > { %v9234_v56 = vpop.f32.mrf.mxu0 }
 0x8a3   : > { %11682 = vst [vmem:[#allocation15_spill] sm:$0xff] %v11171_v16  ;;  %v7072_v44 = vadd.f32 %v9234_v56, %v8420_v9  ;;  %v11177_v19 = vsel %vm10870_vm8, %v11171_v16, -inf  ;;  %v11181_v33 = vadd.f32 %v10862_v7, %v7061_v36 }
 0x8a4   : > { %7382 = vmax.xlane.f32.xlu0 %v11177_v19  ;;  %v6806_v46 = vpop.f32.mrf.mxu0 }
 0x8a5   : > { %11683 = vst [vmem:[#allocation16_spill] sm:$0xff] %v11181_v33  ;;  %v7064_v5 = vadd.f32 %v8414_v0, %v6806_v46  ;;  %v11184_v11 = vadd.f32 %v10862_v7, %v7072_v44  ;;  %v11189_v3 = vsel %vm10870_vm8, %v11181_v33, -inf  ;;  %v8430_v0 = vpop.f32.mrf.mxu1 }
 0x8a7   : > { %11684 = vst [vmem:[#allocation17_spill] sm:$0xff] %v11184_v11  ;;  %v11194_v17 = vsel %vm10870_vm8, %v11184_v11, -inf  ;;  %v11197_v56 = vadd.f32 %v10862_v7, %v7064_v5  ;;  %v8431_v23 = vpop.f32.mrf.mxu1  ;;  %v8426_v11 = vadd.f32 %v8425_v26, %v8424_v6 }
 0x8a8   : > { %7378 = vmax.xlane.f32.xlu0 %v11189_v3  ;;  %7384 = vmax.xlane.f32.xlu1 %v11194_v17  ;;  %v8432_v33 = vadd.f32 %v8431_v23, %v8430_v0 }
 0x8a9   : > { %11685 = vst [vmem:[#allocation18_spill] sm:$0xff] %v11197_v56  ;;  %v11204_v44 = vsel %vm10870_vm8, %v11197_v56, -inf }
 0x8ac   : > { %7380 = vmax.xlane.f32.xlu1 %v11204_v44 }
 0x8ae   : > { %v9237_v32 = vpop.f32.mrf.mxu0 }
 0x8af   : > { %v7085_v36 = vadd.f32 %v9237_v32, %v8429_v43 }
 0x8b0   : > { %v6819_v9 = vpop.f32.mrf.mxu0 }
 0x8b1   : > { %v7077_v46 = vadd.f32 %v8423_v14, %v6819_v9  ;;  %v11216_v22 = vadd.f32 %v10862_v7, %v7085_v36 }
 0x8b2   : > { %v9238_v5 = vpop.f32.mrf.mxu0 }
 0x8b3   : > { %v11208_v16 = vadd.f32 %v10862_v7, %v7077_v46  ;;  %v7088_v63 = vadd.f32 %v9238_v5, %v8432_v33  ;;  %v11225_v6 = vsel %vm10870_vm8, %v11216_v22, -inf }
 0x8b4   : > { %v6822_v34 = vpop.f32.mrf.mxu0 }
 0x8b5   : > { %v7080_v56 = vadd.f32 %v8426_v11, %v6822_v34  ;;  %v11213_v8 = vsel %vm10870_vm8, %v11208_v16, -inf  ;;  %v11233_v26 = vadd.f32 %v10862_v7, %v7088_v63 }
 0x8b6   : > { %7386 = vmax.xlane.f32.xlu0 %v11213_v8 }
 0x8b7   : > { %v11220_v48 = vadd.f32 %v10862_v7, %v7080_v56  ;;  %v11240_v33 = vsel %vm10870_vm8, %v11233_v26, -inf }
 0x8b9   : > { %v11230_v34 = vsel %vm10870_vm8, %v11220_v48, -inf }
 0x8ba   : > { %7390 = vmax.xlane.f32.xlu0 %v11225_v6  ;;  %7388 = vmax.xlane.f32.xlu1 %v11230_v34 }
 0x8bd   : > { %v7335_v54 = vpop.xlane.xlu1 %7334 }
 0x8be   : > { %v7396_v11 = vsub.f32 %v10884_v4, %v7335_v54  ;;  %7392 = vmax.xlane.f32.xlu1 %v11240_v33 }
 0x8bf   : > { %v7331_v56 = vpop.xlane.xlu0 %7330 }
 0x8c0   : > { %v7430_v24 = vmul.f32 1.442695, %v7396_v11  ;;  %v7394_v0 = vsub.f32 %v10895_v49, %v7331_v56 }
 0x8c1   : > { %v7337_v63 = vpop.xlane.xlu1 %7336 }
 0x8c2   : > { %9300 = vpow2.f32 %v7430_v24  ;;  %v7426_v7 = vmul.f32 1.442695, %v7394_v0  ;;  %v7397_v32 = vsub.f32 %v10909_v13, %v7337_v63 }
 0x8c3   : > { %v7333_v14 = vpop.xlane.xlu0 %7332 }
 0x8c4   : > { %v7395_v43 = vsub.f32 %v10915_v2, %v7333_v14  ;;  %v7432_v23 = vmul.f32 1.442695, %v7397_v32  ;;  %9302 = vpow2.f32 %v7426_v7 }
 0x8c6   : > { %9304 = vpow2.f32 %v7432_v23  ;;  %v7428_v9 = vmul.f32 1.442695, %v7395_v43 }
 0x8c8   : > { %9306 = vpow2.f32 %v7428_v9 }
 0x8cf   : > { %v11247_v4 = vpop.eup %9300 }
 0x8d0   : > { %7494 = vadd.xlane.f32.xlu0 %v11247_v4 }
 0x8d1   : > { %v11250_v36 = vpop.eup %9302 }
 0x8d3   : > { %v11252_v49 = vpop.eup %9304 }
 0x8d4   : > { %7490 = vadd.xlane.f32.xlu0 %v11250_v36  ;;  %7496 = vadd.xlane.f32.xlu1 %v11252_v49 }
 0x8d5   : > { %v11256_v13 = vpop.eup %9306 }
 0x8d8   : > { %7492 = vadd.xlane.f32.xlu1 %v11256_v13 }
 0x8dd   : > { %v7343_v2 = vpop.xlane.xlu0 %7342 }
 0x8de   : > { %v7400_v46 = vsub.f32 %v10943_v31, %v7343_v2 }
 0x8e0   : > { %v7438_v5 = vmul.f32 1.442695, %v7400_v46 }
 0x8e1   : > { %v7339_v54 = vpop.xlane.xlu0 %7338  ;;  %v7345_v56 = vpop.xlane.xlu1 %7344 }
 0x8e2   : > { %9308 = vpow2.f32 %v7438_v5  ;;  %v7398_v11 = vsub.f32 %v10957_v41, %v7339_v54  ;;  %v7401_v24 = vsub.f32 %v10965_v50, %v7345_v56 }
 0x8e4   : > { %v7434_v0 = vmul.f32 1.442695, %v7398_v11  ;;  %v7440_v7 = vmul.f32 1.442695, %v7401_v24 }
 0x8e5   : > { %v7341_v63 = vpop.xlane.xlu1 %7340 }
 0x8e6   : > { %9310 = vpow2.f32 %v7434_v0  ;;  %v7399_v32 = vsub.f32 %v10976_v57, %v7341_v63 }
 0x8e7   : > { %9312 = vpow2.f32 %v7440_v7 }
 0x8e8   : > { %v7436_v14 = vmul.f32 1.442695, %v7399_v32 }
 0x8ea   : > { %9314 = vpow2.f32 %v7436_v14 }
 0x8ed   : > { %v7351_v43 = vpop.xlane.xlu0 %7350 }
 0x8ee   : > { %v7404_v31 = vsub.f32 %v10995_v12, %v7351_v43 }
 0x8ef   : > { %v11264_v23 = vpop.eup %9308 }
 0x8f0   : > { %v7446_v9 = vmul.f32 1.442695, %v7404_v31  ;;  %7502 = vadd.xlane.f32.xlu0 %v11264_v23 }
 0x8f1   : > { %v7347_v41 = vpop.xlane.xlu0 %7346  ;;  %v7353_v2 = vpop.xlane.xlu1 %7352 }
 0x8f2   : > { %9316 = vpow2.f32 %v7446_v9  ;;  %v7402_v50 = vsub.f32 %v11009_v21, %v7347_v41  ;;  %v7405_v5 = vsub.f32 %v11017_v10, %v7353_v2 }
 0x8f3   : > { %v11268_v46 = vpop.eup %9310 }
 0x8f4   : > { %v11271_v57 = vpop.eup %9312  ;;  %v7442_v54 = vmul.f32 1.442695, %v7402_v50  ;;  %7498 = vadd.xlane.f32.xlu0 %v11268_v46  ;;  %v7448_v12 = vmul.f32 1.442695, %v7405_v5 }
 0x8f5   : > { %7504 = vadd.xlane.f32.xlu1 %v11271_v57  ;;  %v7349_v11 = vpop.xlane.xlu1 %7348 }
 0x8f6   : > { %9318 = vpow2.f32 %v7442_v54  ;;  %v7403_v56 = vsub.f32 %v11028_v62, %v7349_v11 }
 0x8f7   : > { %9320 = vpow2.f32 %v7448_v12  ;;  %v11276_v24 = vpop.eup %9314 }
 0x8f8   : > { %v7444_v21 = vmul.f32 1.442695, %v7403_v56 }
 0x8f9   : > { %7500 = vadd.xlane.f32.xlu1 %v11276_v24 }
 0x8fa   : > { %9322 = vpow2.f32 %v7444_v21 }
 0x8fd   : > { %v7359_v10 = vpop.xlane.xlu0 %7358 }
 0x8fe   : > { %v7408_v0 = vsub.f32 %v11045_v61, %v7359_v10 }
 0x8ff   : > { %v11280_v7 = vpop.eup %9316 }
 0x900   : > { %v7454_v63 = vmul.f32 1.442695, %v7408_v0  ;;  %7510 = vadd.xlane.f32.xlu0 %v11280_v7 }
 0x901   : > { %v7355_v32 = vpop.xlane.xlu0 %7354  ;;  %v7361_v14 = vpop.xlane.xlu1 %7360 }
 0x902   : > { %9324 = vpow2.f32 %v7454_v63  ;;  %v7406_v43 = vsub.f32 %v11059_v47, %v7355_v32  ;;  %v7409_v62 = vsub.f32 %v11064_v52, %v7361_v14 }
 0x903   : > { %v11285_v31 = vpop.eup %9318 }
 0x904   : > { %v11287_v9 = vpop.eup %9320  ;;  %v7450_v41 = vmul.f32 1.442695, %v7406_v43  ;;  %v7456_v50 = vmul.f32 1.442695, %v7409_v62  ;;  %7506 = vadd.xlane.f32.xlu0 %v11285_v31 }
 0x905   : > { %7512 = vadd.xlane.f32.xlu1 %v11287_v9  ;;  %v7357_v61 = vpop.xlane.xlu1 %7356 }
 0x906   : > { %9326 = vpow2.f32 %v7450_v41  ;;  %v7407_v2 = vsub.f32 %v11076_v37, %v7357_v61 }
 0x907   : > { %9328 = vpow2.f32 %v7456_v50  ;;  %v11292_v5 = vpop.eup %9322 }
 0x908   : > { %v7452_v47 = vmul.f32 1.442695, %v7407_v2 }
 0x909   : > { %7508 = vadd.xlane.f32.xlu1 %v11292_v5 }
 0x90a   : > { %9330 = vpow2.f32 %v7452_v47 }
 0x90d   : > { %v7367_v52 = vpop.xlane.xlu0 %7366 }
 0x90e   : > { %v7412_v54 = vsub.f32 %v11095_v25, %v7367_v52 }
 0x90f   : > { %v11296_v12 = vpop.eup %9324 }
 0x910   : > { %v7462_v11 = vmul.f32 1.442695, %v7412_v54  ;;  %7518 = vadd.xlane.f32.xlu0 %v11296_v12 }
 0x911   : > { %v7363_v56 = vpop.xlane.xlu0 %7362  ;;  %v7369_v21 = vpop.xlane.xlu1 %7368 }
 0x912   : > { %9332 = vpow2.f32 %v7462_v11  ;;  %v7410_v37 = vsub.f32 %v11107_v27, %v7363_v56  ;;  %v7413_v10 = vsub.f32 %v11112_v60, %v7369_v21 }
 0x913   : > { %v11301_v0 = vpop.eup %9326 }
 0x914   : > { %v11303_v63 = vpop.eup %9328  ;;  %v7458_v32 = vmul.f32 1.442695, %v7410_v37  ;;  %v7464_v14 = vmul.f32 1.442695, %v7413_v10  ;;  %7514 = vadd.xlane.f32.xlu0 %v11301_v0 }
 0x915   : > { %7520 = vadd.xlane.f32.xlu1 %v11303_v63  ;;  %v7365_v25 = vpop.xlane.xlu1 %7364 }
 0x916   : > { %9334 = vpow2.f32 %v7458_v32  ;;  %v7411_v43 = vsub.f32 %v11122_v18, %v7365_v25 }
 0x917   : > { %v11308_v62 = vpop.eup %9330  ;;  %9336 = vpow2.f32 %v7464_v14 }
 0x918   : > { %v7460_v27 = vmul.f32 1.442695, %v7411_v43 }
 0x919   : > { %7516 = vadd.xlane.f32.xlu1 %v11308_v62 }
 0x91a   : > { %9338 = vpow2.f32 %v7460_v27 }
 0x91d   : > { %v7375_v60 = vpop.xlane.xlu0 %7374 }
 0x91e   : > { %v7416_v41 = vsub.f32 %v11138_v45, %v7375_v60 }
 0x91f   : > { %v11312_v50 = vpop.eup %9332 }
 0x920   : > { %v7470_v61 = vmul.f32 1.442695, %v7416_v41  ;;  %7526 = vadd.xlane.f32.xlu0 %v11312_v50 }
 0x921   : > { %v7371_v2 = vpop.xlane.xlu0 %7370  ;;  %v7377_v47 = vpop.xlane.xlu1 %7376 }
 0x922   : > { %9340 = vpow2.f32 %v7470_v61  ;;  %v7414_v18 = vsub.f32 %v11150_v53, %v7371_v2  ;;  %v7417_v52 = vsub.f32 %v11155_v40, %v7377_v47 }
 0x923   : > { %v11317_v54 = vpop.eup %9334 }
 0x924   : > { %v11319_v11 = vpop.eup %9336  ;;  %v7466_v56 = vmul.f32 1.442695, %v7414_v18  ;;  %v7472_v21 = vmul.f32 1.442695, %v7417_v52  ;;  %7522 = vadd.xlane.f32.xlu0 %v11317_v54 }
 0x925   : > { %7528 = vadd.xlane.f32.xlu1 %v11319_v11  ;;  %v7373_v45 = vpop.xlane.xlu1 %7372 }
 0x926   : > { %9342 = vpow2.f32 %v7466_v56  ;;  %v7415_v37 = vsub.f32 %v11165_v59, %v7373_v45 }
 0x927   : > { %v11324_v10 = vpop.eup %9338  ;;  %9344 = vpow2.f32 %v7472_v21 }
 0x928   : > { %v7468_v53 = vmul.f32 1.442695, %v7415_v37 }
 0x929   : > { %7524 = vadd.xlane.f32.xlu1 %v11324_v10 }
 0x92a   : > { %9346 = vpow2.f32 %v7468_v53 }
 0x92d   : > { %v7383_v40 = vpop.xlane.xlu0 %7382 }
 0x92e   : > { %v7420_v32 = vsub.f32 %v11177_v19, %v7383_v40 }
 0x92f   : > { %v11328_v14 = vpop.eup %9340 }
 0x930   : > { %v7478_v25 = vmul.f32 1.442695, %v7420_v32  ;;  %7534 = vadd.xlane.f32.xlu0 %v11328_v14 }
 0x931   : > { %v7379_v43 = vpop.xlane.xlu0 %7378  ;;  %v7385_v27 = vpop.xlane.xlu1 %7384 }
 0x932   : > { %9348 = vpow2.f32 %v7478_v25  ;;  %v7418_v59 = vsub.f32 %v11189_v3, %v7379_v43  ;;  %v7421_v60 = vsub.f32 %v11194_v17, %v7385_v27 }
 0x933   : > { %v11333_v41 = vpop.eup %9342 }
 0x934   : > { %v11335_v61 = vpop.eup %9344  ;;  %v7474_v2 = vmul.f32 1.442695, %v7418_v59  ;;  %v7480_v47 = vmul.f32 1.442695, %v7421_v60  ;;  %7530 = vadd.xlane.f32.xlu0 %v11333_v41 }
 0x935   : > { %7536 = vadd.xlane.f32.xlu1 %v11335_v61  ;;  %v7381_v19 = vpop.xlane.xlu1 %7380 }
 0x936   : > { %9350 = vpow2.f32 %v7474_v2  ;;  %v7419_v18 = vsub.f32 %v11204_v44, %v7381_v19 }
 0x937   : > { %v11340_v52 = vpop.eup %9346  ;;  %9352 = vpow2.f32 %v7480_v47 }
 0x938   : > { %v7476_v3 = vmul.f32 1.442695, %v7419_v18 }
 0x939   : > { %7532 = vadd.xlane.f32.xlu1 %v11340_v52 }
 0x93a   : > { %9354 = vpow2.f32 %v7476_v3 }
 0x93f   : > { %v11343_v17 = vpop.eup %9348  ;;  %v7387_v56 = vpop.xlane.xlu0 %7386 }
 0x940   : > { %v7422_v21 = vsub.f32 %v11213_v8, %v7387_v56  ;;  %7542 = vadd.xlane.f32.xlu0 %v11343_v17 }
 0x942   : > { %v7482_v45 = vmul.f32 1.442695, %v7422_v21 }
 0x943   : > { %v11347_v37 = vpop.eup %9350  ;;  %v7391_v44 = vpop.xlane.xlu0 %7390 }
 0x944   : > { %v7389_v53 = vpop.xlane.xlu1 %7388  ;;  %v11350_v40 = vpop.eup %9352  ;;  %9356 = vpow2.f32 %v7482_v45  ;;  %v7424_v32 = vsub.f32 %v11225_v6, %v7391_v44  ;;  %7538 = vadd.xlane.f32.xlu0 %v11347_v37  ;;  %v9503_v6 = vmov 1.0  }
 0x945   : > { %v7423_v25 = vsub.f32 %v11230_v34, %v7389_v53  ;;  %7544 = vadd.xlane.f32.xlu1 %v11350_v40  ;;  %v11367_v34 = vsel %vm11359_vm11, 0.5, %v9503_v6 }
 0x946   : > { %v7486_v8 = vmul.f32 1.442695, %v7424_v32  ;;  %v7140_v47 = vmul.f32 %v11367_v34, %v10877_v58  ;;  %v7138_v18 = vmul.f32 %v11367_v34, %v10887_v1  ;;  %v7139_v56 = vmul.f32 %v11367_v34, %v10902_v39 }
 0x947   : > { %v7484_v43 = vmul.f32 1.442695, %v7423_v25  ;;  %v11357_v27 = vpop.eup %9354 }
 0x948   : > { %v7393_v60 = vpop.xlane.xlu1 %7392  ;;  %9358 = vpow2.f32 %v7486_v8 }
 0x949   : > { %v7425_v29 = vsub.f32 %v11240_v33, %v7393_v60  ;;  %9360 = vpow2.f32 %v7484_v43  ;;  %7540 = vadd.xlane.f32.xlu1 %v11357_v27  ;;  %v7141_v33 = vmul.f32 %v11367_v34, %v10899_v42 }
 0x94b   : > { %v7488_v2 = vmul.f32 1.442695, %v7425_v29 }
 0x94d   : > { %9362 = vpow2.f32 %v7488_v2 }
 0x94e   : > { %9364 = vtanh.f32 %v7140_v47 }
 0x94f   : > { %9366 = vtanh.f32 %v7138_v18 }
 0x950   : > { %9368 = vtanh.f32 %v7141_v33 }
 0x951   : > { %v11371_v19 = vpop.eup %9356  ;;  %9370 = vtanh.f32 %v7139_v56 }
 0x952   : > { %7546 = vadd.xlane.f32.xlu0 %v11371_v19 }
 0x955   : > { %v11378_v3 = vpop.eup %9358 }
 0x956   : > { %v11382_v21 = vpop.eup %9360  ;;  %7550 = vadd.xlane.f32.xlu0 %v11378_v3 }
 0x957   : > { %7548 = vadd.xlane.f32.xlu1 %v11382_v21 }
 0x959   : > { %v7495_v1 = vpop.xlane.xlu0 %7494 }
 0x95a   : > { %v11386_v58 = vpop.eup %9362  ;;  %9372 = vrcp.f32 %v7495_v1 }
 0x95b   : > { %7552 = vadd.xlane.f32.xlu1 %v11386_v58  ;;  %v9365_v45 = vpop.eup %9364 }
 0x95c   : > { %v7204_v39 = vadd.f32 1.0, %v9365_v45  ;;  %v9367_v53 = vpop.eup %9366 }
 0x95d   : > { %v7491_v42 = vpop.xlane.xlu0 %7490  ;;  %v7497_v44 = vpop.xlane.xlu1 %7496  ;;  %v7202_v43 = vadd.f32 1.0, %v9367_v53 }
 0x95e   : > { %9374 = vrcp.f32 %v7491_v42  ;;  %v9369_v25 = vpop.eup %9368  ;;  %v7236_v8 = vmul.f32 0.5, %v7204_v39 }
 0x95f   : > { %9376 = vrcp.f32 %v7497_v44  ;;  %v9371_v60 = vpop.eup %9370  ;;  %v7205_v29 = vadd.f32 1.0, %v9369_v25  ;;  %v7234_v47 = vmul.f32 0.5, %v7202_v43 }
 0x960   : > { %v7268_v18 = vsel %vm11359_vm11, %v7236_v8, %v9365_v45  ;;  %v7203_v56 = vadd.f32 1.0, %v9371_v60 }
 0x961   : > { %v7493_v32 = vpop.xlane.xlu1 %7492  ;;  %v7237_v33 = vmul.f32 0.5, %v7205_v29 }
 0x962   : > { %9378 = vrcp.f32 %v7493_v32  ;;  %v7144_v32 = vmul.f32 %v11367_v34, %v10936_v30  ;;  %v7235_v8 = vmul.f32 0.5, %v7203_v56  ;;  %v7142_v30 = vmul.f32 %v11367_v34, %v10946_v35 }
 0x963   : > { %v7269_v29 = vsel %vm11359_vm11, %v7237_v33, %v9369_v25  ;;  %v7148_v35 = vmul.f32 %v11367_v34, %v10988_v28  ;;  %v7146_v56 = vmul.f32 %v11367_v34, %v11001_v55  ;;  %v11688_v28 = vld [vmem:[#allocation2_spill] sm:$0xff] }
 0x964   : > { %9380 = vtanh.f32 %v7144_v32 }
 0x965   : > { %9382 = vtanh.f32 %v7142_v30 }
 0x967   : > { %v9373_v6 = vpop.eup %9372 }
 0x968   : > { %v7588_v2 = vmul.f32 %v9373_v6, %v11247_v4  ;;  %v7266_v4 = vsel %vm11359_vm11, %v7234_v47, %v9367_v53  ;;  %v7143_v47 = vmul.f32 %v11367_v34, %v10968_v15  ;;  %v7149_v15 = vmul.f32 %v11367_v34, %v11004_v20 }
 0x96a   : > { %v7620_v1 = vsel %vm10870_vm8, %v7588_v2, %v7268_v18  ;;  %v7267_v2 = vsel %vm11359_vm11, %v7235_v8, %v9371_v60 }
 0x96b   : > { %v9375_v42 = vpop.eup %9374  ;;  %7652 = vst [vmem:[%s11393_s24 + $0x10] sm:$0xff] %v7620_v1 }
 0x96c   : > { %v9377_v44 = vpop.eup %9376  ;;  %v7586_v39 = vmul.f32 %v9375_v42, %v11250_v36 }
 0x96d   : > { %v7589_v45 = vmul.f32 %v9377_v44, %v11252_v49  ;;  %v7145_v49 = vmul.f32 %v11367_v34, %v10952_v51 }
 0x96e   : > { %v7618_v43 = vsel %vm10870_vm8, %v7586_v39, %v7266_v4  ;;  %v7147_v4 = vmul.f32 %v11367_v34, %v11688_v28 }
 0x96f   : > { %7650 = vst [vmem:[%s11393_s24] sm:$0xff] %v7618_v43  ;;  %v7621_v36 = vsel %vm10870_vm8, %v7589_v45, %v7269_v29  ;;  %v9379_v6 = vpop.eup %9378  ;;  %9384 = vtanh.f32 %v7145_v49 }
 0x970   : > { %7653 = vst [vmem:[%s11393_s24 + $0x18] sm:$0xff] %v7621_v36  ;;  %v7587_v53 = vmul.f32 %v9379_v6, %v11256_v13  ;;  %9386 = vtanh.f32 %v7143_v47 }
 0x971   : > { %v9381_v51 = vpop.eup %9380 }
 0x972   : > { %v7619_v25 = vsel %vm10870_vm8, %v7587_v53, %v7267_v2  ;;  %v7208_v60 = vadd.f32 1.0, %v9381_v51  ;;  %v9383_v1 = vpop.eup %9382 }
 0x973   : > { %7651 = vst [vmem:[%s11393_s24 + $0x8] sm:$0xff] %v7619_v25  ;;  %v7206_v32 = vadd.f32 1.0, %v9383_v1 }
 0x974   : > { %v7240_v39 = vmul.f32 0.5, %v7208_v60 }
 0x975   : > { %v7238_v29 = vmul.f32 0.5, %v7206_v32 }
 0x976   : > { %v7272_v20 = vsel %vm11359_vm11, %v7240_v39, %v9381_v51 }
 0x979   : > { %v7503_v18 = vpop.xlane.xlu0 %7502 }
 0x97a   : > { %9388 = vrcp.f32 %v7503_v18  ;;  %v7270_v18 = vsel %vm11359_vm11, %v7238_v29, %v9383_v1 }
 0x97c   : > { %v9385_v44 = vpop.eup %9384 }
 0x97d   : > { %v7499_v13 = vpop.xlane.xlu0 %7498  ;;  %v9387_v45 = vpop.eup %9386  ;;  %v7209_v8 = vadd.f32 1.0, %v9385_v44 }
 0x97e   : > { %9390 = vrcp.f32 %v7499_v13  ;;  %v7505_v33 = vpop.xlane.xlu1 %7504  ;;  %v7207_v30 = vadd.f32 1.0, %v9387_v45 }
 0x97f   : > { %9392 = vrcp.f32 %v7505_v33  ;;  %v7241_v6 = vmul.f32 0.5, %v7209_v8 }
 0x980   : > { %9394 = vtanh.f32 %v7148_v35  ;;  %v7239_v33 = vmul.f32 0.5, %v7207_v30 }
 0x982   : > { %v7501_v42 = vpop.xlane.xlu1 %7500  ;;  %v7271_v8 = vsel %vm11359_vm11, %v7239_v33, %v9387_v45 }
 0x983   : > { %9396 = vrcp.f32 %v7501_v42  ;;  %v11690_v42 = vld [vmem:[#allocation4_spill] sm:$0xff] }
 0x984   : > { %9398 = vtanh.f32 %v7146_v56  ;;  %v7273_v56 = vsel %vm11359_vm11, %v7241_v6, %v9385_v44  ;;  %v7150_v39 = vmul.f32 %v11367_v34, %v11690_v42  ;;  %v11692_v6 = vld [vmem:[#allocation6_spill] sm:$0xff] }
 0x985   : > { %9400 = vtanh.f32 %v7149_v15 }
 0x986   : > { %9402 = vtanh.f32 %v7147_v4  ;;  %v11691_v4 = vld [vmem:[#allocation5_spill] sm:$0xff] }
 0x987   : > { %v9389_v43 = vpop.eup %9388  ;;  %v7153_v44 = vmul.f32 %v11367_v34, %v11691_v4  ;;  %v11694_v4 = vld [vmem:[#allocation8_spill] sm:$0xff] }
 0x988   : > { %v7592_v55 = vmul.f32 %v9389_v43, %v11264_v23  ;;  %v11689_v23 = vld [vmem:[#allocation3_spill] sm:$0xff] }
 0x989   : > { %v7511_v36 = vpop.xlane.xlu0 %7510  ;;  %v7152_v47 = vmul.f32 %v11367_v34, %v11689_v23 }
 0x98a   : > { %v7624_v53 = vsel %vm10870_vm8, %v7592_v55, %v7272_v20  ;;  %9404 = vrcp.f32 %v7511_v36 }
 0x98b   : > { %v9391_v49 = vpop.eup %9390  ;;  %7656 = vst [vmem:[%s11393_s24 + $0x30] sm:$0xff] %v7624_v53 }
 0x98c   : > { %v9393_v2 = vpop.eup %9392  ;;  %v7590_v25 = vmul.f32 %v9391_v49, %v11268_v46 }
 0x98d   : > { %v7593_v35 = vmul.f32 %v9393_v2, %v11271_v57  ;;  %v7507_v13 = vpop.xlane.xlu0 %7506  ;;  %v9395_v51 = vpop.eup %9394 }
 0x98e   : > { %v7622_v60 = vsel %vm10870_vm8, %v7590_v25, %v7270_v18  ;;  %9406 = vrcp.f32 %v7507_v13  ;;  %v7513_v15 = vpop.xlane.xlu1 %7512  ;;  %v7212_v57 = vadd.f32 1.0, %v9395_v51 }
 0x98f   : > { %7654 = vst [vmem:[%s11393_s24 + $0x20] sm:$0xff] %v7622_v60  ;;  %v7625_v46 = vsel %vm10870_vm8, %v7593_v35, %v7273_v56  ;;  %9408 = vrcp.f32 %v7513_v15 }
 0x990   : > { %v9397_v1 = vpop.eup %9396  ;;  %7657 = vst [vmem:[%s11393_s24 + $0x38] sm:$0xff] %v7625_v46  ;;  %9410 = vtanh.f32 %v7152_v47  ;;  %v7244_v20 = vmul.f32 0.5, %v7212_v57 }
 0x991   : > { %v7591_v32 = vmul.f32 %v9397_v1, %v11276_v24  ;;  %v9399_v28 = vpop.eup %9398  ;;  %v7151_v24 = vmul.f32 %v11367_v34, %v11692_v6 }
 0x992   : > { %v7509_v43 = vpop.xlane.xlu1 %7508  ;;  %v9401_v55 = vpop.eup %9400  ;;  %v7210_v36 = vadd.f32 1.0, %v9399_v28  ;;  %v7276_v25 = vsel %vm11359_vm11, %v7244_v20, %v9395_v51 }
 0x993   : > { %v7623_v29 = vsel %vm10870_vm8, %v7591_v32, %v7271_v8  ;;  %9412 = vrcp.f32 %v7509_v43  ;;  %v9403_v30 = vpop.eup %9402  ;;  %v7213_v53 = vadd.f32 1.0, %v9401_v55 }
 0x994   : > { %7655 = vst [vmem:[%s11393_s24 + $0x28] sm:$0xff] %v7623_v29  ;;  %9414 = vtanh.f32 %v7150_v39  ;;  %v7242_v2 = vmul.f32 0.5, %v7210_v36  ;;  %v7211_v18 = vadd.f32 1.0, %v9403_v30  ;;  %v11695_v29 = vld [vmem:[#allocation9_spill] sm:$0xff] }
 0x995   : > { %9416 = vtanh.f32 %v7153_v44  ;;  %v7245_v47 = vmul.f32 0.5, %v7213_v53  ;;  %v7154_v44 = vmul.f32 %v11367_v34, %v11694_v4  ;;  %v11698_v4 = vld [vmem:[#allocation12_spill] sm:$0xff] }
 0x996   : > { %9418 = vtanh.f32 %v7151_v24  ;;  %v7274_v51 = vsel %vm11359_vm11, %v7242_v2, %v9399_v28  ;;  %v7243_v57 = vmul.f32 0.5, %v7211_v18 }
 0x997   : > { %v9405_v49 = vpop.eup %9404  ;;  %v7277_v39 = vsel %vm11359_vm11, %v7245_v47, %v9401_v55  ;;  %v7157_v55 = vmul.f32 %v11367_v34, %v11695_v29  ;;  %v11699_v29 = vld [vmem:[#allocation13_spill] sm:$0xff] }
 0x998   : > { %v7596_v45 = vmul.f32 %v9405_v49, %v11280_v7  ;;  %v11693_v7 = vld [vmem:[#allocation7_spill] sm:$0xff]  ;;  %v7275_v20 = vsel %vm11359_vm11, %v7243_v57, %v9403_v30 }
 0x999   : > { %v7519_v23 = vpop.xlane.xlu0 %7518  ;;  %v7156_v56 = vmul.f32 %v11367_v34, %v11693_v7 }
 0x99a   : > { %v7628_v35 = vsel %vm10870_vm8, %v7596_v45, %v7276_v25  ;;  %9420 = vrcp.f32 %v7519_v23  ;;  %v11696_v45 = vld [vmem:[#allocation10_spill] sm:$0xff] }
 0x99b   : > { %v9407_v13 = vpop.eup %9406  ;;  %7660 = vst [vmem:[%s11393_s24 + $0x50] sm:$0xff] %v7628_v35 }
 0x99c   : > { %v9409_v33 = vpop.eup %9408  ;;  %v7594_v60 = vmul.f32 %v9407_v13, %v11285_v31 }
 0x99d   : > { %v7597_v15 = vmul.f32 %v9409_v33, %v11287_v9  ;;  %v7515_v46 = vpop.xlane.xlu0 %7514  ;;  %v9411_v1 = vpop.eup %9410 }
 0x99e   : > { %v7626_v42 = vsel %vm10870_vm8, %v7594_v60, %v7274_v51  ;;  %9422 = vrcp.f32 %v7515_v46  ;;  %v7521_v32 = vpop.xlane.xlu1 %7520  ;;  %v7216_v9 = vadd.f32 1.0, %v9411_v1 }
 0x99f   : > { %7658 = vst [vmem:[%s11393_s24 + $0x40] sm:$0xff] %v7626_v42  ;;  %v7629_v31 = vsel %vm10870_vm8, %v7597_v15, %v7277_v39  ;;  %9424 = vrcp.f32 %v7521_v32 }
 0x9a0   : > { %v9413_v28 = vpop.eup %9412  ;;  %7661 = vst [vmem:[%s11393_s24 + $0x58] sm:$0xff] %v7629_v31  ;;  %9426 = vtanh.f32 %v7156_v56  ;;  %v7248_v53 = vmul.f32 0.5, %v7216_v9 }
 0x9a1   : > { %v7595_v8 = vmul.f32 %v9413_v28, %v11292_v5  ;;  %v9415_v43 = vpop.eup %9414  ;;  %v7155_v5 = vmul.f32 %v11367_v34, %v11696_v45  ;;  %v11700_v45 = vld [vmem:[#allocation14_spill] sm:$0xff] }
 0x9a2   : > { %v7517_v36 = vpop.xlane.xlu1 %7516  ;;  %v9417_v6 = vpop.eup %9416  ;;  %v7214_v49 = vadd.f32 1.0, %v9415_v43  ;;  %v7280_v18 = vsel %vm11359_vm11, %v7248_v53, %v9411_v1 }
 0x9a3   : > { %v7627_v24 = vsel %vm10870_vm8, %v7595_v8, %v7275_v20  ;;  %9428 = vrcp.f32 %v7517_v36  ;;  %v9419_v2 = vpop.eup %9418  ;;  %v7217_v25 = vadd.f32 1.0, %v9417_v6 }
 0x9a4   : > { %7659 = vst [vmem:[%s11393_s24 + $0x48] sm:$0xff] %v7627_v24  ;;  %9430 = vtanh.f32 %v7154_v44  ;;  %v7246_v47 = vmul.f32 0.5, %v7214_v49  ;;  %v7215_v33 = vadd.f32 1.0, %v9419_v2  ;;  %v7158_v44 = vmul.f32 %v11367_v34, %v11698_v4  ;;  %v11703_v4 = vld [vmem:[#allocation17_spill] sm:$0xff] }
 0x9a5   : > { %9432 = vtanh.f32 %v7157_v55  ;;  %v7249_v13 = vmul.f32 0.5, %v7217_v25  ;;  %v7161_v55 = vmul.f32 %v11367_v34, %v11699_v29 }
 0x9a6   : > { %9434 = vtanh.f32 %v7155_v5  ;;  %v7278_v46 = vsel %vm11359_vm11, %v7246_v47, %v9415_v43  ;;  %v7247_v39 = vmul.f32 0.5, %v7215_v33 }
 0x9a7   : > { %v9421_v23 = vpop.eup %9420  ;;  %v7281_v31 = vsel %vm11359_vm11, %v7249_v13, %v9417_v6 }
 0x9a8   : > { %v7600_v30 = vmul.f32 %v9421_v23, %v11296_v12  ;;  %v11697_v12 = vld [vmem:[#allocation11_spill] sm:$0xff]  ;;  %v7279_v20 = vsel %vm11359_vm11, %v7247_v39, %v9419_v2 }
 0x9a9   : > { %v7527_v35 = vpop.xlane.xlu0 %7526  ;;  %v7160_v15 = vmul.f32 %v11367_v34, %v11697_v12 }
 0x9aa   : > { %v7632_v60 = vsel %vm10870_vm8, %v7600_v30, %v7280_v18  ;;  %9436 = vrcp.f32 %v7527_v35 }
 0x9ab   : > { %v9423_v7 = vpop.eup %9422  ;;  %7664 = vst [vmem:[%s11393_s24 + $0x70] sm:$0xff] %v7632_v60 }
 0x9ac   : > { %v9425_v56 = vpop.eup %9424  ;;  %v7598_v51 = vmul.f32 %v9423_v7, %v11301_v0 }
 0x9ad   : > { %v7601_v1 = vmul.f32 %v9425_v56, %v11303_v63  ;;  %v7523_v57 = vpop.xlane.xlu0 %7522  ;;  %v9427_v42 = vpop.eup %9426 }
 0x9ae   : > { %v7630_v32 = vsel %vm10870_vm8, %v7598_v51, %v7278_v46  ;;  %9438 = vrcp.f32 %v7523_v57  ;;  %v7529_v28 = vpop.xlane.xlu1 %7528  ;;  %v7220_v63 = vadd.f32 1.0, %v9427_v42 }
 0x9af   : > { %7662 = vst [vmem:[%s11393_s24 + $0x60] sm:$0xff] %v7630_v32  ;;  %v7633_v0 = vsel %vm10870_vm8, %v7601_v1, %v7281_v31  ;;  %9440 = vrcp.f32 %v7529_v28  ;;  %v11702_v28 = vld [vmem:[#allocation16_spill] sm:$0xff] }
 0x9b0   : > { %v9429_v9 = vpop.eup %9428  ;;  %7665 = vst [vmem:[%s11393_s24 + $0x78] sm:$0xff] %v7633_v0  ;;  %9442 = vtanh.f32 %v7160_v15  ;;  %v7252_v53 = vmul.f32 0.5, %v7220_v63  ;;  %v7162_v0 = vmul.f32 %v11367_v34, %v11702_v28 }
 0x9b1   : > { %v7599_v8 = vmul.f32 %v9429_v9, %v11308_v62  ;;  %v9431_v43 = vpop.eup %9430  ;;  %v7159_v62 = vmul.f32 %v11367_v34, %v11700_v45 }
 0x9b2   : > { %v7525_v36 = vpop.xlane.xlu1 %7524  ;;  %v9433_v6 = vpop.eup %9432  ;;  %v7218_v49 = vadd.f32 1.0, %v9431_v43  ;;  %v7284_v47 = vsel %vm11359_vm11, %v7252_v53, %v9427_v42 }
 0x9b3   : > { %v7631_v24 = vsel %vm10870_vm8, %v7599_v8, %v7279_v20  ;;  %9444 = vrcp.f32 %v7525_v36  ;;  %v9435_v5 = vpop.eup %9434  ;;  %v7221_v25 = vadd.f32 1.0, %v9433_v6 }
 0x9b4   : > { %7663 = vst [vmem:[%s11393_s24 + $0x68] sm:$0xff] %v7631_v24  ;;  %9446 = vtanh.f32 %v7158_v44  ;;  %v7250_v30 = vmul.f32 0.5, %v7218_v49  ;;  %v7219_v13 = vadd.f32 1.0, %v9435_v5  ;;  %v7165_v44 = vmul.f32 %v11367_v34, %v11703_v4 }
 0x9b5   : > { %9448 = vtanh.f32 %v7161_v55  ;;  %v7253_v35 = vmul.f32 0.5, %v7221_v25 }
 0x9b6   : > { %9450 = vtanh.f32 %v7159_v62  ;;  %v7282_v12 = vsel %vm11359_vm11, %v7250_v30, %v9431_v43  ;;  %v7251_v57 = vmul.f32 0.5, %v7219_v13 }
 0x9b7   : > { %v9437_v23 = vpop.eup %9436  ;;  %v7285_v39 = vsel %vm11359_vm11, %v7253_v35, %v9433_v6  ;;  %v11704_v6 = vld [vmem:[#allocation18_spill] sm:$0xff] }
 0x9b8   : > { %v7604_v2 = vmul.f32 %v9437_v23, %v11312_v50  ;;  %v11701_v50 = vld [vmem:[#allocation15_spill] sm:$0xff]  ;;  %v7283_v8 = vsel %vm11359_vm11, %v7251_v57, %v9435_v5 }
 0x9b9   : > { %v7535_v18 = vpop.xlane.xlu0 %7534  ;;  %v7164_v51 = vmul.f32 %v11367_v34, %v11701_v50 }
 0x9ba   : > { %v7636_v33 = vsel %vm10870_vm8, %v7604_v2, %v7284_v47  ;;  %9452 = vrcp.f32 %v7535_v18 }
 0x9bb   : > { %v9439_v60 = vpop.eup %9438  ;;  %7668 = vst [vmem:[%s11393_s24 + $0x90] sm:$0xff] %v7636_v33 }
 0x9bc   : > { %v9441_v7 = vpop.eup %9440  ;;  %v7602_v56 = vmul.f32 %v9439_v60, %v11317_v54 }
 0x9bd   : > { %v7605_v15 = vmul.f32 %v9441_v7, %v11319_v11  ;;  %v7531_v46 = vpop.xlane.xlu0 %7530  ;;  %v9443_v1 = vpop.eup %9442 }
 0x9be   : > { %v7634_v42 = vsel %vm10870_vm8, %v7602_v56, %v7282_v12  ;;  %9454 = vrcp.f32 %v7531_v46  ;;  %v7537_v32 = vpop.xlane.xlu1 %7536  ;;  %v7224_v11 = vadd.f32 1.0, %v9443_v1  ;;  %v7166_v56 = vmul.f32 %v11367_v34, %v11208_v16 }
 0x9bf   : > { %7666 = vst [vmem:[%s11393_s24 + $0x80] sm:$0xff] %v7634_v42  ;;  %v7637_v54 = vsel %vm10870_vm8, %v7605_v15, %v7285_v39  ;;  %9456 = vrcp.f32 %v7537_v32  ;;  %v7168_v39 = vmul.f32 %v11367_v34, %v11216_v22 }
 0x9c0   : > { %v9445_v31 = vpop.eup %9444  ;;  %7669 = vst [vmem:[%s11393_s24 + $0x98] sm:$0xff] %v7637_v54  ;;  %9458 = vtanh.f32 %v7164_v51  ;;  %v7256_v20 = vmul.f32 0.5, %v7224_v11  ;;  %v7167_v54 = vmul.f32 %v11367_v34, %v11220_v48 }
 0x9c1   : > { %v7603_v9 = vmul.f32 %v9445_v31, %v11324_v10  ;;  %v9447_v63 = vpop.eup %9446  ;;  %v7163_v10 = vmul.f32 %v11367_v34, %v11704_v6 }
 0x9c2   : > { %v7533_v43 = vpop.xlane.xlu1 %7532  ;;  %v9449_v29 = vpop.eup %9448  ;;  %v7222_v36 = vadd.f32 1.0, %v9447_v63  ;;  %v7288_v25 = vsel %vm11359_vm11, %v7256_v20, %v9443_v1 }
 0x9c3   : > { %v7635_v55 = vsel %vm10870_vm8, %v7603_v9, %v7283_v8  ;;  %9460 = vrcp.f32 %v7533_v43  ;;  %v9451_v24 = vpop.eup %9450  ;;  %v7225_v53 = vadd.f32 1.0, %v9449_v29  ;;  %v7169_v9 = vmul.f32 %v11367_v34, %v11233_v26 }
 0x9c4   : > { %7667 = vst [vmem:[%s11393_s24 + $0x88] sm:$0xff] %v7635_v55  ;;  %9462 = vtanh.f32 %v7162_v0  ;;  %v7254_v62 = vmul.f32 0.5, %v7222_v36  ;;  %v7223_v5 = vadd.f32 1.0, %v9451_v24 }
 0x9c5   : > { %9464 = vtanh.f32 %v7165_v44  ;;  %v7257_v2 = vmul.f32 0.5, %v7225_v53 }
 0x9c6   : > { %9466 = vtanh.f32 %v7163_v10  ;;  %v7286_v13 = vsel %vm11359_vm11, %v7254_v62, %v9447_v63 }
 0x9c7   : > { %v9453_v49 = vpop.eup %9452  ;;  %v7289_v51 = vsel %vm11359_vm11, %v7257_v2, %v9449_v29 }
 0x9c8   : > { %v7608_v45 = vmul.f32 %v9453_v49, %v11328_v14  ;;  %v7255_v14 = vmul.f32 0.5, %v7223_v5 }
 0x9c9   : > { %v7543_v23 = vpop.xlane.xlu0 %7542 }
 0x9ca   : > { %v7640_v30 = vsel %vm10870_vm8, %v7608_v45, %v7288_v25  ;;  %9468 = vrcp.f32 %v7543_v23  ;;  %v7287_v1 = vsel %vm11359_vm11, %v7255_v14, %v9451_v24 }
 0x9cb   : > { %v9455_v47 = vpop.eup %9454  ;;  %7672 = vst [vmem:[%s11393_s24 + $0xb0] sm:$0xff] %v7640_v30 }
 0x9cc   : > { %v9457_v18 = vpop.eup %9456  ;;  %v7606_v35 = vmul.f32 %v9455_v47, %v11333_v41 }
 0x9cd   : > { %v7609_v33 = vmul.f32 %v9457_v18, %v11335_v61  ;;  %v7539_v60 = vpop.xlane.xlu0 %7538  ;;  %v9459_v7 = vpop.eup %9458 }
 0x9ce   : > { %v7638_v50 = vsel %vm10870_vm8, %v7606_v35, %v7286_v13  ;;  %9470 = vrcp.f32 %v7539_v60  ;;  %v7545_v12 = vpop.xlane.xlu1 %7544  ;;  %v7228_v15 = vadd.f32 1.0, %v9459_v7 }
 0x9cf   : > { %7670 = vst [vmem:[%s11393_s24 + $0xa0] sm:$0xff] %v7638_v50  ;;  %v7641_v41 = vsel %vm10870_vm8, %v7609_v33, %v7289_v51  ;;  %9472 = vrcp.f32 %v7545_v12 }
 0x9d0   : > { %v9461_v61 = vpop.eup %9460  ;;  %7673 = vst [vmem:[%s11393_s24 + $0xb8] sm:$0xff] %v7641_v41  ;;  %9474 = vtanh.f32 %v7166_v56  ;;  %v7260_v31 = vmul.f32 0.5, %v7228_v15 }
 0x9d1   : > { %v7607_v46 = vmul.f32 %v9461_v61, %v11340_v52  ;;  %v9463_v16 = vpop.eup %9462 }
 0x9d2   : > { %v7541_v57 = vpop.xlane.xlu1 %7540  ;;  %v9465_v42 = vpop.eup %9464  ;;  %v7226_v52 = vadd.f32 1.0, %v9463_v16  ;;  %v7292_v4 = vsel %vm11359_vm11, %v7260_v31, %v9459_v7 }
 0x9d3   : > { %v7639_v32 = vsel %vm10870_vm8, %v7607_v46, %v7287_v1  ;;  %9476 = vrcp.f32 %v7541_v57  ;;  %v9467_v11 = vpop.eup %9466  ;;  %v7229_v28 = vadd.f32 1.0, %v9465_v42 }
 0x9d4   : > { %7671 = vst [vmem:[%s11393_s24 + $0xa8] sm:$0xff] %v7639_v32  ;;  %9478 = vtanh.f32 %v7168_v39  ;;  %v7258_v63 = vmul.f32 0.5, %v7226_v52  ;;  %v7227_v48 = vadd.f32 1.0, %v9467_v11 }
 0x9d5   : > { %9480 = vtanh.f32 %v7167_v54  ;;  %v7261_v44 = vmul.f32 0.5, %v7229_v28 }
 0x9d6   : > { %9482 = vtanh.f32 %v7169_v9  ;;  %v7259_v20 = vmul.f32 0.5, %v7227_v48 }
 0x9d7   : > { %v9469_v0 = vpop.eup %9468  ;;  %v7293_v6 = vsel %vm11359_vm11, %v7261_v44, %v9465_v42 }
 0x9d8   : > { %v7612_v22 = vmul.f32 %v9469_v0, %v11343_v17  ;;  %v7290_v17 = vsel %vm11359_vm11, %v7258_v63, %v9463_v16  ;;  %v7291_v45 = vsel %vm11359_vm11, %v7259_v20, %v9467_v11 }
 0x9da   : > { %v7644_v8 = vsel %vm10870_vm8, %v7612_v22, %v7292_v4 }
 0x9db   : > { %v9471_v43 = vpop.eup %9470  ;;  %7676 = vst [vmem:[%s11393_s24 + $0xd0] sm:$0xff] %v7644_v8  ;;  %v7547_v29 = vpop.xlane.xlu0 %7546 }
 0x9dc   : > { %v9473_v55 = vpop.eup %9472  ;;  %v7610_v26 = vmul.f32 %v9471_v43, %v11347_v37  ;;  %9484 = vrcp.f32 %v7547_v29 }
 0x9dd   : > { %v7613_v34 = vmul.f32 %v9473_v55, %v11350_v40  ;;  %v9475_v10 = vpop.eup %9474 }
 0x9de   : > { %v7642_v36 = vsel %vm10870_vm8, %v7610_v26, %v7290_v17  ;;  %v7230_v62 = vadd.f32 1.0, %v9475_v10 }
 0x9df   : > { %7674 = vst [vmem:[%s11393_s24 + $0xc0] sm:$0xff] %v7642_v36  ;;  %v7645_v24 = vsel %vm10870_vm8, %v7613_v34, %v7293_v6  ;;  %v7551_v37 = vpop.xlane.xlu0 %7550 }
 0x9e0   : > { %v9477_v53 = vpop.eup %9476  ;;  %7677 = vst [vmem:[%s11393_s24 + $0xd8] sm:$0xff] %v7645_v24  ;;  %9486 = vrcp.f32 %v7551_v37  ;;  %v7549_v49 = vpop.xlane.xlu1 %7548  ;;  %v7262_v30 = vmul.f32 0.5, %v7230_v62 }
 0x9e1   : > { %v7611_v40 = vmul.f32 %v9477_v53, %v11357_v27  ;;  %9488 = vrcp.f32 %v7549_v49  ;;  %v9479_v25 = vpop.eup %9478 }
 0x9e2   : > { %v9481_v2 = vpop.eup %9480  ;;  %v7232_v47 = vadd.f32 1.0, %v9479_v25  ;;  %v7294_v33 = vsel %vm11359_vm11, %v7262_v30, %v9475_v10 }
 0x9e3   : > { %v7643_v5 = vsel %vm10870_vm8, %v7611_v40, %v7291_v45  ;;  %v9483_v18 = vpop.eup %9482  ;;  %v7231_v35 = vadd.f32 1.0, %v9481_v2 }
 0x9e4   : > { %7675 = vst [vmem:[%s11393_s24 + $0xc8] sm:$0xff] %v7643_v5  ;;  %v7553_v23 = vpop.xlane.xlu1 %7552  ;;  %v7264_v13 = vmul.f32 0.5, %v7232_v47  ;;  %v7233_v7 = vadd.f32 1.0, %v9483_v18 }
 0x9e5   : > { %9490 = vrcp.f32 %v7553_v23  ;;  %v7263_v60 = vmul.f32 0.5, %v7231_v35 }
 0x9e6   : > { %v7296_v41 = vsel %vm11359_vm11, %v7264_v13, %v9479_v25  ;;  %v7265_v61 = vmul.f32 0.5, %v7233_v7 }
 0x9e7   : > { %v7295_v46 = vsel %vm11359_vm11, %v7263_v60, %v9481_v2 }
 0x9e8   : > { %v7297_v57 = vsel %vm11359_vm11, %v7265_v61, %v9483_v18 }
 0x9e9   : > { %v9485_v14 = vpop.eup %9484 }
 0x9ea   : > { %v7614_v27 = vmul.f32 %v9485_v14, %v11371_v19 }
 0x9ec   : > { %v7646_v56 = vsel %vm10870_vm8, %v7614_v27, %v7294_v33 }
 0x9ed   : > { %v9487_v50 = vpop.eup %9486  ;;  %7678 = vst [vmem:[%s11393_s24 + $0xe0] sm:$0xff] %v7646_v56 }
 0x9ee   : > { %v9489_v51 = vpop.eup %9488  ;;  %v7616_v12 = vmul.f32 %v9487_v50, %v11378_v3 }
 0x9ef   : > { %v7615_v19 = vmul.f32 %v9489_v51, %v11382_v21 }
 0x9f0   : > { %v7648_v15 = vsel %vm10870_vm8, %v7616_v12, %v7296_v41 }
 0x9f1   : > { %7680 = vst [vmem:[%s11393_s24 + $0xf0] sm:$0xff] %v7648_v15  ;;  %v7647_v16 = vsel %vm10870_vm8, %v7615_v19, %v7295_v46 }
 0x9f2   : > { %v9491_v1 = vpop.eup %9490  ;;  %7679 = vst [vmem:[%s11393_s24 + $0xe8] sm:$0xff] %v7647_v16 }
 0x9f3   : > { %v7617_v3 = vmul.f32 %v9491_v1, %v11386_v58 }
 0x9f5   : > { %v7649_v21 = vsel %vm10870_vm8, %v7617_v3, %v7297_v57 }
 0x9f6   : > { %7681 = vst [vmem:[%s11393_s24 + $0xf8] sm:$0xff] %v7649_v21 }
 0x9f7 PF: > { %s13_s12 = sadd.s32 1, %s9498_s12  }
 0x9f8   : > { %p10_p4 = scmp.ge.s32.totalorder %s13_s12, 4  }
 0x9fa   :  { %12 = sbr.rel (!%p10_p4) target bundleno = 1 (0x1), region = 65 }

</bundles_post_ra>
